<compile_context>
chip_gen: v6e
topology: v6e:2x2x1
jax: 0.10.0
libtpu: 0.0.40
codegen_flags: <defaults>
</compile_context>

<pallas_src>
import functools

import jax
import jax.numpy as jnp
from jax.experimental import pallas as pl
from jax.experimental.pallas import tpu as pltpu


_SQRT_2_OVER_PI = 0.7978845608028654


def _gelu(x):
    # TODO(synk): source of `gelus_gt2` not provided; using tanh-approximate GELU.
    return 0.5 * x * (1.0 + jnp.tanh(_SQRT_2_OVER_PI * (x + 0.044715 * x * x * x)))


def _layernorm(x, gamma, beta, eps=1e-5):
    # Fused statistics: mean from sum(x), var from sum(x*x) - mean^2 (single pass).
    n = x.shape[-1]
    inv_n = 1.0 / n
    s1 = jnp.sum(x, axis=-1, keepdims=True)
    s2 = jnp.sum(x * x, axis=-1, keepdims=True)
    mean = s1 * inv_n
    var = s2 * inv_n - mean * mean
    return (x - mean) * jax.lax.rsqrt(var + eps) * gamma + beta


def _cfca_kernel(*refs, layer_per_block, identity):
    # refs layout:
    #   [0]                       x tile                   (TM, in_ch)      f32
    #   [1+4i : 5+4i]             W_i(bf16), b_i, g_i, be_i per base layer  (i < L)
    #   [1+4L : 5+4L]             Wc(bf16), bc, gc, bec     concat layer
    #   [-1]                      out tile                 (TM, concat_ch)
    x_ref = refs[0]
    out_ref = refs[-1]

    x_f32 = x_ref[...].astype(jnp.float32)    # residual + elementwise math in f32
    h_f32 = x_f32
    h_bf = x_f32.astype(jnp.bfloat16)         # bf16 feed for the MXU

    feats = [h_f32]                           # f32 copies kept for the lane concat
    idx = 1
    for _ in range(layer_per_block):
        W = refs[idx][...]                    # bf16 (d_in, stage_ch)
        b = refs[idx + 1][...]                # f32  (1, stage_ch)
        g = refs[idx + 2][...]
        be = refs[idx + 3][...]
        idx += 4
        h_f32 = jnp.dot(h_bf, W, preferred_element_type=jnp.float32) + b
        h_f32 = _gelu(_layernorm(h_f32, g, be))   # f32 VPU/EUP work
        h_bf = h_f32.astype(jnp.bfloat16)
        feats.append(h_f32)

    Wc = refs[idx][...]                       # bf16 (cat_ch, concat_ch)
    bc = refs[idx + 1][...]
    gc = refs[idx + 2][...]
    bec = refs[idx + 3][...]

    # One lane-aligned concat (cat_ch = in_ch + L*stage_ch) and a single K=cat_ch
    # matmul instead of L+1 narrow matmuls.
    cat = jnp.concatenate(feats, axis=-1).astype(jnp.bfloat16)
    del feats
    y = jnp.dot(cat, Wc, preferred_element_type=jnp.float32) + bc
    y = _gelu(_layernorm(y, gc, bec))

    if identity:
        y = y + x_f32                         # concat_ch == in_ch (asserted in wrapper)
    out_ref[...] = y.astype(out_ref.dtype)


def init_params(key, in_ch, stage_ch, concat_ch, layer_per_block):
    """Deterministic synthetic parameters matching the module's shapes (f32)."""
    params = []
    d_in = in_ch
    for _ in range(layer_per_block):
        key, k1, k2 = jax.random.split(key, 3)
        W = jax.random.normal(k1, (d_in, stage_ch), jnp.float32) / jnp.sqrt(d_in)
        b = 0.01 * jax.random.normal(k2, (1, stage_ch), jnp.float32)
        g = jnp.ones((1, stage_ch), jnp.float32)     # LayerNorm weight init
        be = jnp.zeros((1, stage_ch), jnp.float32)   # LayerNorm bias init
        params += [W, b, g, be]
        d_in = stage_ch
    cat_ch = in_ch + layer_per_block * stage_ch
    key, k1, k2 = jax.random.split(key, 3)
    Wc = jax.random.normal(k1, (cat_ch, concat_ch), jnp.float32) / jnp.sqrt(cat_ch)
    bc = 0.01 * jax.random.normal(k2, (1, concat_ch), jnp.float32)
    gc = jnp.ones((1, concat_ch), jnp.float32)
    bec = jnp.zeros((1, concat_ch), jnp.float32)
    params += [Wc, bc, gc, bec]
    return params


def cfca_pallas(x, params, *, layer_per_block, in_ch, stage_ch, concat_ch,
                identity=True, tm=512):
    N, C = x.shape
    assert C == in_ch, f"x channel dim {C} != in_ch {in_ch}"
    if identity:
        assert concat_ch == in_ch, \
            "identity residual requires concat_ch == in_ch (as in the PyTorch module)"
    tm = min(tm, N)
    assert N % tm == 0, f"N={N} must be divisible by tm={tm}"
    assert tm % 8 == 0, f"tm={tm} must be a multiple of 8 (sublane tiling)"
    grid = (N // tm,)

    # Cast matmul weights (every 4th param: W_i, Wc) to bf16 for the MXU; keep
    # biases and LayerNorm affine params in f32.
    kparams = [p.astype(jnp.bfloat16) if i % 4 == 0 else p
               for i, p in enumerate(params)]

    in_specs = [pl.BlockSpec((tm, in_ch), lambda i: (i, 0))]
    for p in kparams:
        # Full-array blocks with a constant index_map -> weights stay resident in
        # VMEM across grid steps (no re-DMA).
        in_specs.append(pl.BlockSpec(p.shape, lambda i: (0, 0)))
    out_spec = pl.BlockSpec((tm, concat_ch), lambda i: (i, 0))

    kernel = functools.partial(
        _cfca_kernel, layer_per_block=layer_per_block, identity=identity)
    return pl.pallas_call(
        kernel,
        out_shape=jax.ShapeDtypeStruct((N, concat_ch), x.dtype),
        grid_spec=pltpu.PrefetchScalarGridSpec(
            num_scalar_prefetch=0,
            grid=grid,
            in_specs=in_specs,
            out_specs=out_spec,
        ),
        compiler_params=pltpu.CompilerParams(dimension_semantics=("parallel",)),
    )(x, *kparams)


def cfca_ref(x, params, *, layer_per_block, identity=True, bf16_matmul=False):
    """Pure-JAX reference mirroring the PyTorch forward.

    bf16_matmul=True mimics the kernel's bf16 MXU inputs (f32 accumulation) so the
    kernel can also be checked with a tight tolerance.
    """
    def mm(a, w):
        if bf16_matmul:
            a = a.astype(jnp.bfloat16)
            w = w.astype(jnp.bfloat16)
        return jnp.dot(a, w, preferred_element_type=jnp.float32)

    feats = [x.astype(jnp.float32)]
    h = x.astype(jnp.float32)
    idx = 0
    for _ in range(layer_per_block):
        W, b, g, be = params[idx:idx + 4]
        idx += 4
        h = _gelu(_layernorm(mm(h, W) + b, g, be))
        feats.append(h)
    Wc, bc, gc, bec = params[idx:idx + 4]
    cat = jnp.concatenate(feats, axis=-1)
    y = _gelu(_layernorm(mm(cat, Wc) + bc, gc, bec))
    if identity:
        y = y + x
    return y


if __name__ == "__main__":
    # in_ch must equal n_gaussians for the module's concat-channel arithmetic, and
    # concat_ch must equal in_ch for the identity residual.
    N = 512                      # rows; tm=128 -> 4 parallel grid steps (megacore)
    in_ch = n_gaussians = 32
    stage_ch = 32
    concat_ch = 32
    layer_per_block = 3          # cat_ch = 32 + 3*32 = 128 (one full lane width)

    key = jax.random.PRNGKey(0)
    kx, kp = jax.random.split(key)
    x = jax.random.normal(kx, (N, in_ch), jnp.float32)
    params = init_params(kp, in_ch, stage_ch, concat_ch, layer_per_block)

    out = cfca_pallas(x, params, layer_per_block=layer_per_block, in_ch=in_ch,
                      stage_ch=stage_ch, concat_ch=concat_ch, identity=True, tm=128)
    out = jax.block_until_ready(out)
    assert out.shape == (N, concat_ch), out.shape
    assert bool(jnp.all(jnp.isfinite(out))), "non-finite values in kernel output"

    # Tight check against a reference that matches the kernel's bf16 matmul inputs
    # (only accumulation-order differences remain).
    ref_bf16 = cfca_ref(x, params, layer_per_block=layer_per_block,
                        identity=True, bf16_matmul=True)
    err_bf16 = float(jnp.max(jnp.abs(out - ref_bf16)))
    assert err_bf16 < 2e-3, f"bf16-matched reference mismatch: {err_bf16}"

    # Loose check against the pure-f32 PyTorch-equivalent forward (allows bf16
    # rounding drift accumulated over 4 matmul+LayerNorm+GELU stages).
    ref_f32 = cfca_ref(x, params, layer_per_block=layer_per_block, identity=True)
    err_f32 = float(jnp.max(jnp.abs(out - ref_f32)))
    assert err_f32 < 1e-1, f"f32 reference mismatch: {err_f32}"

    print("KERNEL_OK")
</pallas_src>

<mosaic_0001>
module attributes {stable_mosaic.version = 11 : i64} {
  func.func @_cfca_kernel(%arg0: i32, %arg1: memref<128x32xf32, #tpu.memory_space<vmem>>, %arg2: memref<32x32xbf16, #tpu.memory_space<vmem>>, %arg3: memref<1x32xf32, #tpu.memory_space<vmem>>, %arg4: memref<1x32xf32, #tpu.memory_space<vmem>>, %arg5: memref<1x32xf32, #tpu.memory_space<vmem>>, %arg6: memref<32x32xbf16, #tpu.memory_space<vmem>>, %arg7: memref<1x32xf32, #tpu.memory_space<vmem>>, %arg8: memref<1x32xf32, #tpu.memory_space<vmem>>, %arg9: memref<1x32xf32, #tpu.memory_space<vmem>>, %arg10: memref<32x32xbf16, #tpu.memory_space<vmem>>, %arg11: memref<1x32xf32, #tpu.memory_space<vmem>>, %arg12: memref<1x32xf32, #tpu.memory_space<vmem>>, %arg13: memref<1x32xf32, #tpu.memory_space<vmem>>, %arg14: memref<128x32xbf16, #tpu.memory_space<vmem>>, %arg15: memref<1x32xf32, #tpu.memory_space<vmem>>, %arg16: memref<1x32xf32, #tpu.memory_space<vmem>>, %arg17: memref<1x32xf32, #tpu.memory_space<vmem>>, %arg18: memref<128x32xf32, #tpu.memory_space<vmem>>) attributes {dimension_semantics = [#tpu.dimension_semantics<parallel>], iteration_bounds = array<i64: 4>, scalar_prefetch = 0 : i64, scratch_operands = 0 : i64, tpu.core_type = #tpu.core_type<tc>, window_params = [{transform_indices = @transform_0, window_bounds = array<i64: 128, 32>}, {pipeline_mode = #tpu.pipeline_mode<synchronous>, transform_indices = @transform_1, window_bounds = array<i64: 32, 32>}, {pipeline_mode = #tpu.pipeline_mode<synchronous>, transform_indices = @transform_2, window_bounds = array<i64: 1, 32>}, {pipeline_mode = #tpu.pipeline_mode<synchronous>, transform_indices = @transform_3, window_bounds = array<i64: 1, 32>}, {pipeline_mode = #tpu.pipeline_mode<synchronous>, transform_indices = @transform_4, window_bounds = array<i64: 1, 32>}, {pipeline_mode = #tpu.pipeline_mode<synchronous>, transform_indices = @transform_5, window_bounds = array<i64: 32, 32>}, {pipeline_mode = #tpu.pipeline_mode<synchronous>, transform_indices = @transform_6, window_bounds = array<i64: 1, 32>}, {pipeline_mode = #tpu.pipeline_mode<synchronous>, transform_indices = @transform_7, window_bounds = array<i64: 1, 32>}, {pipeline_mode = #tpu.pipeline_mode<synchronous>, transform_indices = @transform_8, window_bounds = array<i64: 1, 32>}, {pipeline_mode = #tpu.pipeline_mode<synchronous>, transform_indices = @transform_9, window_bounds = array<i64: 32, 32>}, {pipeline_mode = #tpu.pipeline_mode<synchronous>, transform_indices = @transform_10, window_bounds = array<i64: 1, 32>}, {pipeline_mode = #tpu.pipeline_mode<synchronous>, transform_indices = @transform_11, window_bounds = array<i64: 1, 32>}, {pipeline_mode = #tpu.pipeline_mode<synchronous>, transform_indices = @transform_12, window_bounds = array<i64: 1, 32>}, {pipeline_mode = #tpu.pipeline_mode<synchronous>, transform_indices = @transform_13, window_bounds = array<i64: 128, 32>}, {pipeline_mode = #tpu.pipeline_mode<synchronous>, transform_indices = @transform_14, window_bounds = array<i64: 1, 32>}, {pipeline_mode = #tpu.pipeline_mode<synchronous>, transform_indices = @transform_15, window_bounds = array<i64: 1, 32>}, {pipeline_mode = #tpu.pipeline_mode<synchronous>, transform_indices = @transform_16, window_bounds = array<i64: 1, 32>}, {transform_indices = @transform_17, window_bounds = array<i64: 128, 32>}]} {
    %c0 = arith.constant 0 : index
    %c0_0 = arith.constant 0 : index
    %0 = vector.load %arg1[%c0, %c0_0] : memref<128x32xf32, #tpu.memory_space<vmem>>, vector<128x32xf32>
    %1 = arith.truncf %0 : vector<128x32xf32> to vector<128x32xbf16>
    %c0_1 = arith.constant 0 : index
    %c0_2 = arith.constant 0 : index
    %2 = vector.load %arg2[%c0_1, %c0_2] : memref<32x32xbf16, #tpu.memory_space<vmem>>, vector<32x32xbf16>
    %c0_3 = arith.constant 0 : index
    %c0_4 = arith.constant 0 : index
    %3 = vector.load %arg3[%c0_3, %c0_4] : memref<1x32xf32, #tpu.memory_space<vmem>>, vector<1x32xf32>
    %c0_5 = arith.constant 0 : index
    %c0_6 = arith.constant 0 : index
    %4 = vector.load %arg4[%c0_5, %c0_6] : memref<1x32xf32, #tpu.memory_space<vmem>>, vector<1x32xf32>
    %c0_7 = arith.constant 0 : index
    %c0_8 = arith.constant 0 : index
    %5 = vector.load %arg5[%c0_7, %c0_8] : memref<1x32xf32, #tpu.memory_space<vmem>>, vector<1x32xf32>
    %cst = arith.constant dense<0.000000e+00> : vector<128x32xf32>
    %6 = tpu.matmul %1, %2, %cst {dimension_numbers = #tpu.dot_dimension_numbers<[1], [0], [0], [1], [0, 0, 1, 1], [], []>} : vector<128x32xbf16>, vector<32x32xbf16>, vector<128x32xf32> -> vector<128x32xf32>
    %7 = vector.broadcast %3 : vector<1x32xf32> to vector<128x32xf32>
    %8 = arith.addf %6, %7 : vector<128x32xf32>
    %cst_9 = arith.constant dense<0.000000e+00> : vector<128xf32>
    %9 = vector.multi_reduction <add>, %8, %cst_9 [1] : vector<128x32xf32> to vector<128xf32>
    %10 = vector.shape_cast %9 : vector<128xf32> to vector<128x1xf32>
    %11 = arith.mulf %8, %8 : vector<128x32xf32>
    %cst_10 = arith.constant dense<0.000000e+00> : vector<128xf32>
    %12 = vector.multi_reduction <add>, %11, %cst_10 [1] : vector<128x32xf32> to vector<128xf32>
    %13 = vector.shape_cast %12 : vector<128xf32> to vector<128x1xf32>
    %cst_11 = arith.constant 3.125000e-02 : f32
    %14 = vector.broadcast %cst_11 : f32 to vector<128x1xf32>
    %15 = arith.mulf %10, %14 : vector<128x1xf32>
    %cst_12 = arith.constant 3.125000e-02 : f32
    %16 = vector.broadcast %cst_12 : f32 to vector<128x1xf32>
    %17 = arith.mulf %13, %16 : vector<128x1xf32>
    %18 = arith.mulf %15, %15 : vector<128x1xf32>
    %19 = arith.subf %17, %18 : vector<128x1xf32>
    %20 = vector.broadcast %15 : vector<128x1xf32> to vector<128x32xf32>
    %21 = arith.subf %8, %20 : vector<128x32xf32>
    %cst_13 = arith.constant 9.99999974E-6 : f32
    %22 = vector.broadcast %cst_13 : f32 to vector<128x1xf32>
    %23 = arith.addf %19, %22 : vector<128x1xf32>
    %24 = math.rsqrt %23 : vector<128x1xf32>
    %25 = vector.broadcast %24 : vector<128x1xf32> to vector<128x32xf32>
    %26 = arith.mulf %21, %25 : vector<128x32xf32>
    %27 = vector.broadcast %4 : vector<1x32xf32> to vector<128x32xf32>
    %28 = arith.mulf %26, %27 : vector<128x32xf32>
    %29 = vector.broadcast %5 : vector<1x32xf32> to vector<128x32xf32>
    %30 = arith.addf %28, %29 : vector<128x32xf32>
    %cst_14 = arith.constant 5.000000e-01 : f32
    %31 = vector.broadcast %cst_14 : f32 to vector<128x32xf32>
    %32 = arith.mulf %31, %30 : vector<128x32xf32>
    %cst_15 = arith.constant 4.471500e-02 : f32
    %33 = vector.broadcast %cst_15 : f32 to vector<128x32xf32>
    %34 = arith.mulf %33, %30 : vector<128x32xf32>
    %35 = arith.mulf %34, %30 : vector<128x32xf32>
    %36 = arith.mulf %35, %30 : vector<128x32xf32>
    %37 = arith.addf %30, %36 : vector<128x32xf32>
    %cst_16 = arith.constant 0.797884583 : f32
    %38 = vector.broadcast %cst_16 : f32 to vector<128x32xf32>
    %39 = arith.mulf %38, %37 : vector<128x32xf32>
    %40 = math.tanh %39 : vector<128x32xf32>
    %cst_17 = arith.constant 1.000000e+00 : f32
    %41 = vector.broadcast %cst_17 : f32 to vector<128x32xf32>
    %42 = arith.addf %41, %40 : vector<128x32xf32>
    %43 = arith.mulf %32, %42 : vector<128x32xf32>
    %44 = arith.truncf %43 : vector<128x32xf32> to vector<128x32xbf16>
    %c0_18 = arith.constant 0 : index
    %c0_19 = arith.constant 0 : index
    %45 = vector.load %arg6[%c0_18, %c0_19] : memref<32x32xbf16, #tpu.memory_space<vmem>>, vector<32x32xbf16>
    %c0_20 = arith.constant 0 : index
    %c0_21 = arith.constant 0 : index
    %46 = vector.load %arg7[%c0_20, %c0_21] : memref<1x32xf32, #tpu.memory_space<vmem>>, vector<1x32xf32>
    %c0_22 = arith.constant 0 : index
    %c0_23 = arith.constant 0 : index
    %47 = vector.load %arg8[%c0_22, %c0_23] : memref<1x32xf32, #tpu.memory_space<vmem>>, vector<1x32xf32>
    %c0_24 = arith.constant 0 : index
    %c0_25 = arith.constant 0 : index
    %48 = vector.load %arg9[%c0_24, %c0_25] : memref<1x32xf32, #tpu.memory_space<vmem>>, vector<1x32xf32>
    %cst_26 = arith.constant dense<0.000000e+00> : vector<128x32xf32>
    %49 = tpu.matmul %44, %45, %cst_26 {dimension_numbers = #tpu.dot_dimension_numbers<[1], [0], [0], [1], [0, 0, 1, 1], [], []>} : vector<128x32xbf16>, vector<32x32xbf16>, vector<128x32xf32> -> vector<128x32xf32>
    %50 = vector.broadcast %46 : vector<1x32xf32> to vector<128x32xf32>
    %51 = arith.addf %49, %50 : vector<128x32xf32>
    %cst_27 = arith.constant dense<0.000000e+00> : vector<128xf32>
    %52 = vector.multi_reduction <add>, %51, %cst_27 [1] : vector<128x32xf32> to vector<128xf32>
    %53 = vector.shape_cast %52 : vector<128xf32> to vector<128x1xf32>
    %54 = arith.mulf %51, %51 : vector<128x32xf32>
    %cst_28 = arith.constant dense<0.000000e+00> : vector<128xf32>
    %55 = vector.multi_reduction <add>, %54, %cst_28 [1] : vector<128x32xf32> to vector<128xf32>
    %56 = vector.shape_cast %55 : vector<128xf32> to vector<128x1xf32>
    %cst_29 = arith.constant 3.125000e-02 : f32
    %57 = vector.broadcast %cst_29 : f32 to vector<128x1xf32>
    %58 = arith.mulf %53, %57 : vector<128x1xf32>
    %cst_30 = arith.constant 3.125000e-02 : f32
    %59 = vector.broadcast %cst_30 : f32 to vector<128x1xf32>
    %60 = arith.mulf %56, %59 : vector<128x1xf32>
    %61 = arith.mulf %58, %58 : vector<128x1xf32>
    %62 = arith.subf %60, %61 : vector<128x1xf32>
    %63 = vector.broadcast %58 : vector<128x1xf32> to vector<128x32xf32>
    %64 = arith.subf %51, %63 : vector<128x32xf32>
    %cst_31 = arith.constant 9.99999974E-6 : f32
    %65 = vector.broadcast %cst_31 : f32 to vector<128x1xf32>
    %66 = arith.addf %62, %65 : vector<128x1xf32>
    %67 = math.rsqrt %66 : vector<128x1xf32>
    %68 = vector.broadcast %67 : vector<128x1xf32> to vector<128x32xf32>
    %69 = arith.mulf %64, %68 : vector<128x32xf32>
    %70 = vector.broadcast %47 : vector<1x32xf32> to vector<128x32xf32>
    %71 = arith.mulf %69, %70 : vector<128x32xf32>
    %72 = vector.broadcast %48 : vector<1x32xf32> to vector<128x32xf32>
    %73 = arith.addf %71, %72 : vector<128x32xf32>
    %cst_32 = arith.constant 5.000000e-01 : f32
    %74 = vector.broadcast %cst_32 : f32 to vector<128x32xf32>
    %75 = arith.mulf %74, %73 : vector<128x32xf32>
    %cst_33 = arith.constant 4.471500e-02 : f32
    %76 = vector.broadcast %cst_33 : f32 to vector<128x32xf32>
    %77 = arith.mulf %76, %73 : vector<128x32xf32>
    %78 = arith.mulf %77, %73 : vector<128x32xf32>
    %79 = arith.mulf %78, %73 : vector<128x32xf32>
    %80 = arith.addf %73, %79 : vector<128x32xf32>
    %cst_34 = arith.constant 0.797884583 : f32
    %81 = vector.broadcast %cst_34 : f32 to vector<128x32xf32>
    %82 = arith.mulf %81, %80 : vector<128x32xf32>
    %83 = math.tanh %82 : vector<128x32xf32>
    %cst_35 = arith.constant 1.000000e+00 : f32
    %84 = vector.broadcast %cst_35 : f32 to vector<128x32xf32>
    %85 = arith.addf %84, %83 : vector<128x32xf32>
    %86 = arith.mulf %75, %85 : vector<128x32xf32>
    %87 = arith.truncf %86 : vector<128x32xf32> to vector<128x32xbf16>
    %c0_36 = arith.constant 0 : index
    %c0_37 = arith.constant 0 : index
    %88 = vector.load %arg10[%c0_36, %c0_37] : memref<32x32xbf16, #tpu.memory_space<vmem>>, vector<32x32xbf16>
    %c0_38 = arith.constant 0 : index
    %c0_39 = arith.constant 0 : index
    %89 = vector.load %arg11[%c0_38, %c0_39] : memref<1x32xf32, #tpu.memory_space<vmem>>, vector<1x32xf32>
    %c0_40 = arith.constant 0 : index
    %c0_41 = arith.constant 0 : index
    %90 = vector.load %arg12[%c0_40, %c0_41] : memref<1x32xf32, #tpu.memory_space<vmem>>, vector<1x32xf32>
    %c0_42 = arith.constant 0 : index
    %c0_43 = arith.constant 0 : index
    %91 = vector.load %arg13[%c0_42, %c0_43] : memref<1x32xf32, #tpu.memory_space<vmem>>, vector<1x32xf32>
    %cst_44 = arith.constant dense<0.000000e+00> : vector<128x32xf32>
    %92 = tpu.matmul %87, %88, %cst_44 {dimension_numbers = #tpu.dot_dimension_numbers<[1], [0], [0], [1], [0, 0, 1, 1], [], []>} : vector<128x32xbf16>, vector<32x32xbf16>, vector<128x32xf32> -> vector<128x32xf32>
    %93 = vector.broadcast %89 : vector<1x32xf32> to vector<128x32xf32>
    %94 = arith.addf %92, %93 : vector<128x32xf32>
    %cst_45 = arith.constant dense<0.000000e+00> : vector<128xf32>
    %95 = vector.multi_reduction <add>, %94, %cst_45 [1] : vector<128x32xf32> to vector<128xf32>
    %96 = vector.shape_cast %95 : vector<128xf32> to vector<128x1xf32>
    %97 = arith.mulf %94, %94 : vector<128x32xf32>
    %cst_46 = arith.constant dense<0.000000e+00> : vector<128xf32>
    %98 = vector.multi_reduction <add>, %97, %cst_46 [1] : vector<128x32xf32> to vector<128xf32>
    %99 = vector.shape_cast %98 : vector<128xf32> to vector<128x1xf32>
    %cst_47 = arith.constant 3.125000e-02 : f32
    %100 = vector.broadcast %cst_47 : f32 to vector<128x1xf32>
    %101 = arith.mulf %96, %100 : vector<128x1xf32>
    %cst_48 = arith.constant 3.125000e-02 : f32
    %102 = vector.broadcast %cst_48 : f32 to vector<128x1xf32>
    %103 = arith.mulf %99, %102 : vector<128x1xf32>
    %104 = arith.mulf %101, %101 : vector<128x1xf32>
    %105 = arith.subf %103, %104 : vector<128x1xf32>
    %106 = vector.broadcast %101 : vector<128x1xf32> to vector<128x32xf32>
    %107 = arith.subf %94, %106 : vector<128x32xf32>
    %cst_49 = arith.constant 9.99999974E-6 : f32
    %108 = vector.broadcast %cst_49 : f32 to vector<128x1xf32>
    %109 = arith.addf %105, %108 : vector<128x1xf32>
    %110 = math.rsqrt %109 : vector<128x1xf32>
    %111 = vector.broadcast %110 : vector<128x1xf32> to vector<128x32xf32>
    %112 = arith.mulf %107, %111 : vector<128x32xf32>
    %113 = vector.broadcast %90 : vector<1x32xf32> to vector<128x32xf32>
    %114 = arith.mulf %112, %113 : vector<128x32xf32>
    %115 = vector.broadcast %91 : vector<1x32xf32> to vector<128x32xf32>
    %116 = arith.addf %114, %115 : vector<128x32xf32>
    %cst_50 = arith.constant 5.000000e-01 : f32
    %117 = vector.broadcast %cst_50 : f32 to vector<128x32xf32>
    %118 = arith.mulf %117, %116 : vector<128x32xf32>
    %cst_51 = arith.constant 4.471500e-02 : f32
    %119 = vector.broadcast %cst_51 : f32 to vector<128x32xf32>
    %120 = arith.mulf %119, %116 : vector<128x32xf32>
    %121 = arith.mulf %120, %116 : vector<128x32xf32>
    %122 = arith.mulf %121, %116 : vector<128x32xf32>
    %123 = arith.addf %116, %122 : vector<128x32xf32>
    %cst_52 = arith.constant 0.797884583 : f32
    %124 = vector.broadcast %cst_52 : f32 to vector<128x32xf32>
    %125 = arith.mulf %124, %123 : vector<128x32xf32>
    %126 = math.tanh %125 : vector<128x32xf32>
    %cst_53 = arith.constant 1.000000e+00 : f32
    %127 = vector.broadcast %cst_53 : f32 to vector<128x32xf32>
    %128 = arith.addf %127, %126 : vector<128x32xf32>
    %129 = arith.mulf %118, %128 : vector<128x32xf32>
    %c0_54 = arith.constant 0 : index
    %c0_55 = arith.constant 0 : index
    %130 = vector.load %arg14[%c0_54, %c0_55] : memref<128x32xbf16, #tpu.memory_space<vmem>>, vector<128x32xbf16>
    %c0_56 = arith.constant 0 : index
    %c0_57 = arith.constant 0 : index
    %131 = vector.load %arg15[%c0_56, %c0_57] : memref<1x32xf32, #tpu.memory_space<vmem>>, vector<1x32xf32>
    %c0_58 = arith.constant 0 : index
    %c0_59 = arith.constant 0 : index
    %132 = vector.load %arg16[%c0_58, %c0_59] : memref<1x32xf32, #tpu.memory_space<vmem>>, vector<1x32xf32>
    %c0_60 = arith.constant 0 : index
    %c0_61 = arith.constant 0 : index
    %133 = vector.load %arg17[%c0_60, %c0_61] : memref<1x32xf32, #tpu.memory_space<vmem>>, vector<1x32xf32>
    %134 = tpu.concatenate %0, %43, %86, %129 in 1 : vector<128x32xf32>, vector<128x32xf32>, vector<128x32xf32>, vector<128x32xf32> -> vector<128x128xf32>
    %135 = arith.truncf %134 : vector<128x128xf32> to vector<128x128xbf16>
    %cst_62 = arith.constant dense<0.000000e+00> : vector<128x32xf32>
    %136 = tpu.matmul %135, %130, %cst_62 {dimension_numbers = #tpu.dot_dimension_numbers<[1], [0], [0], [1], [0, 0, 1, 1], [], []>} : vector<128x128xbf16>, vector<128x32xbf16>, vector<128x32xf32> -> vector<128x32xf32>
    %137 = vector.broadcast %131 : vector<1x32xf32> to vector<128x32xf32>
    %138 = arith.addf %136, %137 : vector<128x32xf32>
    %cst_63 = arith.constant dense<0.000000e+00> : vector<128xf32>
    %139 = vector.multi_reduction <add>, %138, %cst_63 [1] : vector<128x32xf32> to vector<128xf32>
    %140 = vector.shape_cast %139 : vector<128xf32> to vector<128x1xf32>
    %141 = arith.mulf %138, %138 : vector<128x32xf32>
    %cst_64 = arith.constant dense<0.000000e+00> : vector<128xf32>
    %142 = vector.multi_reduction <add>, %141, %cst_64 [1] : vector<128x32xf32> to vector<128xf32>
    %143 = vector.shape_cast %142 : vector<128xf32> to vector<128x1xf32>
    %cst_65 = arith.constant 3.125000e-02 : f32
    %144 = vector.broadcast %cst_65 : f32 to vector<128x1xf32>
    %145 = arith.mulf %140, %144 : vector<128x1xf32>
    %cst_66 = arith.constant 3.125000e-02 : f32
    %146 = vector.broadcast %cst_66 : f32 to vector<128x1xf32>
    %147 = arith.mulf %143, %146 : vector<128x1xf32>
    %148 = arith.mulf %145, %145 : vector<128x1xf32>
    %149 = arith.subf %147, %148 : vector<128x1xf32>
    %150 = vector.broadcast %145 : vector<128x1xf32> to vector<128x32xf32>
    %151 = arith.subf %138, %150 : vector<128x32xf32>
    %cst_67 = arith.constant 9.99999974E-6 : f32
    %152 = vector.broadcast %cst_67 : f32 to vector<128x1xf32>
    %153 = arith.addf %149, %152 : vector<128x1xf32>
    %154 = math.rsqrt %153 : vector<128x1xf32>
    %155 = vector.broadcast %154 : vector<128x1xf32> to vector<128x32xf32>
    %156 = arith.mulf %151, %155 : vector<128x32xf32>
    %157 = vector.broadcast %132 : vector<1x32xf32> to vector<128x32xf32>
    %158 = arith.mulf %156, %157 : vector<128x32xf32>
    %159 = vector.broadcast %133 : vector<1x32xf32> to vector<128x32xf32>
    %160 = arith.addf %158, %159 : vector<128x32xf32>
    %cst_68 = arith.constant 5.000000e-01 : f32
    %161 = vector.broadcast %cst_68 : f32 to vector<128x32xf32>
    %162 = arith.mulf %161, %160 : vector<128x32xf32>
    %cst_69 = arith.constant 4.471500e-02 : f32
    %163 = vector.broadcast %cst_69 : f32 to vector<128x32xf32>
    %164 = arith.mulf %163, %160 : vector<128x32xf32>
    %165 = arith.mulf %164, %160 : vector<128x32xf32>
    %166 = arith.mulf %165, %160 : vector<128x32xf32>
    %167 = arith.addf %160, %166 : vector<128x32xf32>
    %cst_70 = arith.constant 0.797884583 : f32
    %168 = vector.broadcast %cst_70 : f32 to vector<128x32xf32>
    %169 = arith.mulf %168, %167 : vector<128x32xf32>
    %170 = math.tanh %169 : vector<128x32xf32>
    %cst_71 = arith.constant 1.000000e+00 : f32
    %171 = vector.broadcast %cst_71 : f32 to vector<128x32xf32>
    %172 = arith.addf %171, %170 : vector<128x32xf32>
    %173 = arith.mulf %162, %172 : vector<128x32xf32>
    %174 = arith.addf %173, %0 : vector<128x32xf32>
    %c0_72 = arith.constant 0 : index
    %c0_73 = arith.constant 0 : index
    %175 = vector.load %arg18[%c0_72, %c0_73] : memref<128x32xf32, #tpu.memory_space<vmem>>, vector<128x32xf32>
    tpu.vector_store %arg18[%c0_72, %c0_73], %174 {strides = array<i32>} : memref<128x32xf32, #tpu.memory_space<vmem>>, vector<128x32xf32>,
    return
  }
  func.func @transform_0(%arg0: i32) -> (i32, i32) {
    %c0_i32 = arith.constant 0 : i32
    %c0_i32_0 = arith.constant 0 : i32
    return %arg0, %c0_i32 : i32, i32
  }
  func.func @transform_1(%arg0: i32) -> (i32, i32) {
    %c0_i32 = arith.constant 0 : i32
    %c0_i32_0 = arith.constant 0 : i32
    %c0_i32_1 = arith.constant 0 : i32
    return %c0_i32, %c0_i32_0 : i32, i32
  }
  func.func @transform_2(%arg0: i32) -> (i32, i32) {
    %c0_i32 = arith.constant 0 : i32
    %c0_i32_0 = arith.constant 0 : i32
    %c0_i32_1 = arith.constant 0 : i32
    return %c0_i32, %c0_i32_0 : i32, i32
  }
  func.func @transform_3(%arg0: i32) -> (i32, i32) {
    %c0_i32 = arith.constant 0 : i32
    %c0_i32_0 = arith.constant 0 : i32
    %c0_i32_1 = arith.constant 0 : i32
    return %c0_i32, %c0_i32_0 : i32, i32
  }
  func.func @transform_4(%arg0: i32) -> (i32, i32) {
    %c0_i32 = arith.constant 0 : i32
    %c0_i32_0 = arith.constant 0 : i32
    %c0_i32_1 = arith.constant 0 : i32
    return %c0_i32, %c0_i32_0 : i32, i32
  }
  func.func @transform_5(%arg0: i32) -> (i32, i32) {
    %c0_i32 = arith.constant 0 : i32
    %c0_i32_0 = arith.constant 0 : i32
    %c0_i32_1 = arith.constant 0 : i32
    return %c0_i32, %c0_i32_0 : i32, i32
  }
  func.func @transform_6(%arg0: i32) -> (i32, i32) {
    %c0_i32 = arith.constant 0 : i32
    %c0_i32_0 = arith.constant 0 : i32
    %c0_i32_1 = arith.constant 0 : i32
    return %c0_i32, %c0_i32_0 : i32, i32
  }
  func.func @transform_7(%arg0: i32) -> (i32, i32) {
    %c0_i32 = arith.constant 0 : i32
    %c0_i32_0 = arith.constant 0 : i32
    %c0_i32_1 = arith.constant 0 : i32
    return %c0_i32, %c0_i32_0 : i32, i32
  }
  func.func @transform_8(%arg0: i32) -> (i32, i32) {
    %c0_i32 = arith.constant 0 : i32
    %c0_i32_0 = arith.constant 0 : i32
    %c0_i32_1 = arith.constant 0 : i32
    return %c0_i32, %c0_i32_0 : i32, i32
  }
  func.func @transform_9(%arg0: i32) -> (i32, i32) {
    %c0_i32 = arith.constant 0 : i32
    %c0_i32_0 = arith.constant 0 : i32
    %c0_i32_1 = arith.constant 0 : i32
    return %c0_i32, %c0_i32_0 : i32, i32
  }
  func.func @transform_10(%arg0: i32) -> (i32, i32) {
    %c0_i32 = arith.constant 0 : i32
    %c0_i32_0 = arith.constant 0 : i32
    %c0_i32_1 = arith.constant 0 : i32
    return %c0_i32, %c0_i32_0 : i32, i32
  }
  func.func @transform_11(%arg0: i32) -> (i32, i32) {
    %c0_i32 = arith.constant 0 : i32
    %c0_i32_0 = arith.constant 0 : i32
    %c0_i32_1 = arith.constant 0 : i32
    return %c0_i32, %c0_i32_0 : i32, i32
  }
  func.func @transform_12(%arg0: i32) -> (i32, i32) {
    %c0_i32 = arith.constant 0 : i32
    %c0_i32_0 = arith.constant 0 : i32
    %c0_i32_1 = arith.constant 0 : i32
    return %c0_i32, %c0_i32_0 : i32, i32
  }
  func.func @transform_13(%arg0: i32) -> (i32, i32) {
    %c0_i32 = arith.constant 0 : i32
    %c0_i32_0 = arith.constant 0 : i32
    %c0_i32_1 = arith.constant 0 : i32
    return %c0_i32, %c0_i32_0 : i32, i32
  }
  func.func @transform_14(%arg0: i32) -> (i32, i32) {
    %c0_i32 = arith.constant 0 : i32
    %c0_i32_0 = arith.constant 0 : i32
    %c0_i32_1 = arith.constant 0 : i32
    return %c0_i32, %c0_i32_0 : i32, i32
  }
  func.func @transform_15(%arg0: i32) -> (i32, i32) {
    %c0_i32 = arith.constant 0 : i32
    %c0_i32_0 = arith.constant 0 : i32
    %c0_i32_1 = arith.constant 0 : i32
    return %c0_i32, %c0_i32_0 : i32, i32
  }
  func.func @transform_16(%arg0: i32) -> (i32, i32) {
    %c0_i32 = arith.constant 0 : i32
    %c0_i32_0 = arith.constant 0 : i32
    %c0_i32_1 = arith.constant 0 : i32
    return %c0_i32, %c0_i32_0 : i32, i32
  }
  func.func @transform_17(%arg0: i32) -> (i32, i32) {
    %c0_i32 = arith.constant 0 : i32
    %c0_i32_0 = arith.constant 0 : i32
    return %arg0, %c0_i32 : i32, i32
  }
}

</mosaic_0001>

<bundles_post_ra>
// kernel: tpu_custom_call.1
= control target key start
LH: loop header
LB: loop body
LE: loop exit
PB: predicated region body
PF: predicated region fallthrough
CT: control target
= control target key end

     0   :  { %s3976_s24 = smov 0   ;;  %s5915_s0 = inlined_call_operand.vmem [shape: f32[512,32], index: 0, kind: input, shape index: {}]   ;;  %s5916_s1 = inlined_call_operand.vmem [shape: bf16[32,32], index: 1, kind: input, shape index: {}]   ;;  %s5917_s2 = inlined_call_operand.vmem [shape: f32[1,32], index: 2, kind: input, shape index: {}]   ;;  %s5918_s3 = inlined_call_operand.vmem [shape: f32[1,32], index: 3, kind: input, shape index: {}]   ;;  %s5919_s4 = inlined_call_operand.vmem [shape: f32[1,32], index: 4, kind: input, shape index: {}]   ;;  %s5920_s5 = inlined_call_operand.vmem [shape: bf16[32,32], index: 5, kind: input, shape index: {}]   ;;  %s5921_s6 = inlined_call_operand.vmem [shape: f32[1,32], index: 6, kind: input, shape index: {}]   ;;  %s5922_s7 = inlined_call_operand.vmem [shape: f32[1,32], index: 7, kind: input, shape index: {}]   ;;  %s5923_s8 = inlined_call_operand.vmem [shape: f32[1,32], index: 8, kind: input, shape index: {}]   ;;  %s5924_s9 = inlined_call_operand.vmem [shape: bf16[32,32], index: 9, kind: input, shape index: {}]   ;;  %s5925_s10 = inlined_call_operand.vmem [shape: f32[1,32], index: 10, kind: input, shape index: {}]   ;;  %s5926_s11 = inlined_call_operand.vmem [shape: f32[1,32], index: 11, kind: input, shape index: {}]   ;;  %s5927_s12 = inlined_call_operand.vmem [shape: f32[1,32], index: 12, kind: input, shape index: {}]   ;;  %s5928_s13 = inlined_call_operand.vmem [shape: bf16[128,32], index: 13, kind: input, shape index: {}]   ;;  %s5929_s14 = inlined_call_operand.vmem [shape: f32[1,32], index: 14, kind: input, shape index: {}]   ;;  %s5930_s15 = inlined_call_operand.vmem [shape: f32[1,32], index: 15, kind: input, shape index: {}]   ;;  %s5931_s16 = inlined_call_operand.vmem [shape: f32[1,32], index: 16, kind: input, shape index: {}]   ;;  %s5932_s17 = inlined_call_operand.vmem [shape: f32[512,32], index: 17, kind: output, shape index: {}]  }
   0x1   :  { %5935 = sst [smem:[#allocation3_spill]] %s5915_s0 }
   0x2   :  { %5936 = sst [smem:[#allocation4_spill]] %s5916_s1 }
   0x3 LB: > { %s3252_s25 = sadd.s32 4294967295, %s3881_s24   ;;  %p3256_p0 = scmp.ge.s32.totalorder %s3881_s24, 1  ;;  %s3881_s24 = sphi %s3976_s24, %s27_s24  }
   0x4   : > { %p488_p1 = scmp.lt.s32.totalorder %s3881_s24, 5 }
   0x6   : > { %p489_p2 = pnand %p3256_p0, %p488_p1 }
   0x8   : > { %492 = sbr.rel (%p489_p2) target bundleno = 1851 (0x73b), region = 88 }
   0xd   : > { %s5937_s28 = sld [smem:[#allocation4_spill]]  ;;  %s3257_s29 = sshll.u32 %s3252_s25, 4  ;;  %vm602_vm0 = vcmask 261120   ;;  %v4027_v26 = vld [vmem:[%s5917_s2] ss:$0 sm:$0xff]  ;;  %vm2543_vm1 = vcmask 523264  }
   0xe   : > { %p541_p3 = scmp.lt.s32.totalorder %s3257_s29, 63  ;;  %s5938_s20 = sld [smem:[#allocation3_spill]]  ;;  %vm2560_vm2 = vcmask 785408  }
   0xf   : > { %s3883_s25 = smov 32   ;;  %s3884_s26 = smov 64  }
  0x10   : > { %s5950_s29 = smov (!%p541_p3, %s3257_s29), 63  ;;  %s3885_s1 = smov 96  }
  0x11   : > { %s3258_s18 = sshll.u32 %s5950_s29, 3 }
  0x12   : > { %s5741_s19 = scalar_lea.vmem %s5932_s17, %s3258_s18 }
  0x13   : > { %v3582_v0 = vld [vmem:[%s5937_s28 + $0x8] sm:$0xff]   ;;  %v3583_v1 = vld [vmem:[%s5937_s28] sm:$0xff]  }
  0x14   : > { %3359 = vmatprep.subr.bf16.mxu0 %v3582_v0  ;;  %s3998_s21 = scalar_lea.vmem %s5938_s20, %s3258_s18 }
  0x15   : > { %3360 = vmatpush3.bf16.msra.mxu0 %v3582_v0  ;;  %v553_v2 = vld [vmem:[%s3998_s21] sm:$0xff]  ;;  %v554_v3 = vld [vmem:[%s3998_s21 + $0x8] sm:$0xff]  ;;  %v555_v4 = vld [vmem:[%s3998_s21 + $0x10] sm:$0xff] }
  0x16   : > { %3361 = vmatprep.subr.bf16.mxu0 %v3583_v1  ;;  %v569_v5 = vpack.c.bf16 %v554_v3, %v553_v2  ;;  %v556_v6 = vld [vmem:[%s3998_s21 + $0x18] sm:$0xff]  ;;  %v557_v7 = vld [vmem:[%s3998_s21 + $0x20] sm:$0xff]  ;;  %v558_v8 = vld [vmem:[%s3998_s21 + $0x28] sm:$0xff] }
  0x17   : > { %v570_v9 = vpack.c.bf16 %v556_v6, %v555_v4  ;;  %v571_v10 = vpack.c.bf16 %v558_v8, %v557_v7  ;;  %v559_v11 = vld [vmem:[%s3998_s21 + $0x30] sm:$0xff]  ;;  %v560_v12 = vld [vmem:[%s3998_s21 + $0x38] sm:$0xff]  ;;  %v561_v13 = vld [vmem:[%s3998_s21 + $0x40] sm:$0xff] }
  0x18   : > { %3363 = vmatprep.mubr.msk.bf16.mxu0 %vm602_vm0, %v569_v5  ;;  %v562_v14 = vld [vmem:[%s3998_s21 + $0x48] sm:$0xff]  ;;  %v572_v15 = vpack.c.bf16 %v560_v12, %v559_v11  ;;  %v563_v17 = vld [vmem:[%s3998_s21 + $0x50] sm:$0xff]  ;;  %v564_v18 = vld [vmem:[%s3998_s21 + $0x58] sm:$0xff] }
  0x19   : > { %3362 = vmatpush3.bf16.msra.mxu0 %v3583_v1  ;;  %v573_v16 = vpack.c.bf16 %v562_v14, %v561_v13  ;;  %v565_v19 = vld [vmem:[%s3998_s21 + $0x60] sm:$0xff]  ;;  %v566_v20 = vld [vmem:[%s3998_s21 + $0x68] sm:$0xff]  ;;  %v574_v21 = vpack.c.bf16 %v564_v18, %v563_v17  ;;  %v567_v23 = vld [vmem:[%s3998_s21 + $0x70] sm:$0xff] }
  0x1a   : > { %v575_v22 = vpack.c.bf16 %v566_v20, %v565_v19  ;;  %v568_v24 = vld [vmem:[%s3998_s21 + $0x78] sm:$0xff] }
  0x1b   : > { %v576_v25 = vpack.c.bf16 %v568_v24, %v567_v23 }
  0x1c   : > { %3364 = vmatmul.mubr.msk.bf16.vlgmr.msra.gmra.mxu0 %vm602_vm0, %v570_v9 }
  0x1d   : > { %3367 = vmatprep.mubr.msk.bf16.mxu0 %vm602_vm0, %v571_v10 }
  0x24   : > { %3368 = vmatmul.mubr.msk.bf16.gmra.mxu0 %vm602_vm0, %v572_v15 }
  0x25   : > { %3371 = vmatprep.mubr.msk.bf16.mxu0 %vm602_vm0, %v573_v16 }
  0x2c   : > { %3372 = vmatmul.mubr.msk.bf16.gmra.mxu0 %vm602_vm0, %v574_v21 }
  0x2d   : > { %3375 = vmatprep.mubr.msk.bf16.mxu0 %vm602_vm0, %v575_v22 }
  0x34   : > { %3376 = vmatmul.mubr.msk.bf16.gmra.mxu0 %vm602_vm0, %v576_v25 }
  0xdc   : > { %v3365_v27 = vpop.f32.mrf.mxu0 }
  0xdd   : > { %v4030_v28 = vadd.f32 %v3365_v27, %v4027_v26 }
  0xde   : > { %v661_v29 = vpop.f32.mrf.mxu0 }
  0xdf   : > { %v4033_v30 = vadd.f32 %v4027_v26, %v661_v29  ;;  %v730_v31 = vsel %vm602_vm0, %v4030_v28, 0.0  ;;  %v774_v35 = vmul.f32 %v4030_v28, %v4030_v28 }
  0xe0   : > { %731 = vadd.xlane.f32.xlu1 %v730_v31  ;;  %v3366_v32 = vpop.f32.mrf.mxu0 }
  0xe1   : > { %v4038_v33 = vadd.f32 %v3366_v32, %v4027_v26  ;;  %v724_v34 = vsel %vm602_vm0, %v4033_v30, 0.0  ;;  %v794_v41 = vsel %vm602_vm0, %v774_v35, 0.0  ;;  %v772_v42 = vmul.f32 %v4033_v30, %v4033_v30 }
  0xe2   : > { %v664_v36 = vpop.f32.mrf.mxu0  ;;  %725 = vadd.xlane.f32.xlu0 %v724_v34 }
  0xe3   : > { %v4045_v37 = vadd.f32 %v4027_v26, %v664_v36  ;;  %v733_v38 = vsel %vm602_vm0, %v4038_v33, 0.0  ;;  %v775_v39 = vmul.f32 %v4038_v33, %v4038_v33  ;;  %v788_v48 = vsel %vm602_vm0, %v772_v42, 0.0 }
  0xe4   : > { %734 = vadd.xlane.f32.xlu1 %v733_v38  ;;  %v3369_v40 = vpop.f32.mrf.mxu0 }
  0xe5   : > { %v797_v44 = vsel %vm602_vm0, %v775_v39, 0.0  ;;  %v773_v45 = vmul.f32 %v4045_v37, %v4045_v37  ;;  %v4063_v51 = vadd.f32 %v3369_v40, %v4027_v26  ;;  %v727_v52 = vsel %vm602_vm0, %v4045_v37, 0.0 }
  0xe6   : > { %795 = vadd.xlane.f32.xlu0 %v794_v41  ;;  %v677_v43 = vpop.f32.mrf.mxu0 }
  0xe7   : > { %v791_v49 = vsel %vm602_vm0, %v773_v45, 0.0  ;;  %v4073_v56 = vadd.f32 %v4027_v26, %v677_v43  ;;  %v742_v57 = vsel %vm602_vm0, %v4063_v51, 0.0  ;;  %v778_v62 = vmul.f32 %v4063_v51, %v4063_v51 }
  0xe8   : > { %798 = vadd.xlane.f32.xlu1 %v797_v44  ;;  %v3370_v46 = vpop.f32.mrf.mxu0 }
  0xe9   : > { %v4058_v47 = vadd.f32 %v3370_v46, %v4027_v26  ;;  %v736_v61 = vsel %vm602_vm0, %v4073_v56, 0.0  ;;  %v806_v3 = vsel %vm602_vm0, %v778_v62, 0.0  ;;  %v776_v4 = vmul.f32 %v4073_v56, %v4073_v56 }
  0xea   : > { %789 = vadd.xlane.f32.xlu0 %v788_v48  ;;  %v680_v50 = vpop.f32.mrf.mxu0  ;;  %v3584_v48 = vld [vmem:[%s5920_s5 + $0x8] sm:$0xff]  }
  0xeb   : > { %v745_v53 = vsel %vm602_vm0, %v4058_v47, 0.0  ;;  %v4070_v54 = vadd.f32 %v4027_v26, %v680_v50  ;;  %v779_v59 = vmul.f32 %v4058_v47, %v4058_v47  ;;  %v800_v8 = vsel %vm602_vm0, %v776_v4, 0.0  ;;  %3379 = vmatprep.subr.bf16.mxu1 %v3584_v48 }
  0xec   : > { %792 = vadd.xlane.f32.xlu1 %v791_v49  ;;  %v3373_v55 = vpop.f32.mrf.mxu0  ;;  %3380 = vmatpush3.bf16.msra.mxu1 %v3584_v48  ;;  %v3585_v49 = vld [vmem:[%s5920_s5] sm:$0xff]  }
  0xed   : > { %v739_v58 = vsel %vm602_vm0, %v4070_v54, 0.0  ;;  %v809_v63 = vsel %vm602_vm0, %v779_v59, 0.0  ;;  %v777_v0 = vmul.f32 %v4070_v54, %v4070_v54  ;;  %v4096_v7 = vadd.f32 %v3373_v55, %v4027_v26  ;;  %3381 = vmatprep.subr.bf16.mxu1 %v3585_v49 }
  0xee   : > { %728 = vadd.xlane.f32.xlu0 %v727_v52  ;;  %v693_v60 = vpop.f32.mrf.mxu0 }
  0xef   : > { %v803_v5 = vsel %vm602_vm0, %v777_v0, 0.0  ;;  %v4105_v12 = vadd.f32 %v4027_v26, %v693_v60  ;;  %v754_v13 = vsel %vm602_vm0, %v4096_v7, 0.0  ;;  %v782_v18 = vmul.f32 %v4096_v7, %v4096_v7 }
  0xf0   : > { %746 = vadd.xlane.f32.xlu1 %v745_v53  ;;  %v3374_v1 = vpop.f32.mrf.mxu0  ;;  %3382 = vmatpush3.bf16.msra.mxu1 %v3585_v49 }
  0xf1   : > { %v4089_v2 = vadd.f32 %v3374_v1, %v4027_v26  ;;  %v748_v17 = vsel %vm602_vm0, %v4105_v12, 0.0  ;;  %v818_v22 = vsel %vm602_vm0, %v782_v18, 0.0  ;;  %v780_v24 = vmul.f32 %v4105_v12, %v4105_v12 }
  0xf2   : > { %743 = vadd.xlane.f32.xlu0 %v742_v57  ;;  %v696_v6 = vpop.f32.mrf.mxu0 }
  0xf3   : > { %v757_v9 = vsel %vm602_vm0, %v4089_v2, 0.0  ;;  %v4102_v11 = vadd.f32 %v4027_v26, %v696_v6  ;;  %v783_v16 = vmul.f32 %v4089_v2, %v4089_v2  ;;  %v812_v31 = vsel %vm602_vm0, %v780_v24, 0.0 }
  0xf4   : > { %740 = vadd.xlane.f32.xlu1 %v739_v58  ;;  %v3377_v10 = vpop.f32.mrf.mxu0 }
  0xf5   : > { %v751_v15 = vsel %vm602_vm0, %v4102_v11, 0.0  ;;  %v821_v20 = vsel %vm602_vm0, %v783_v16, 0.0  ;;  %v781_v21 = vmul.f32 %v4102_v11, %v4102_v11  ;;  %v4127_v27 = vadd.f32 %v3377_v10, %v4027_v26 }
  0xf6   : > { %737 = vadd.xlane.f32.xlu0 %v736_v61  ;;  %v709_v14 = vpop.f32.mrf.mxu0 }
  0xf7   : > { %v815_v29 = vsel %vm602_vm0, %v781_v21, 0.0  ;;  %v766_v35 = vsel %vm602_vm0, %v4127_v27, 0.0  ;;  %v4139_v36 = vadd.f32 %v4027_v26, %v709_v14  ;;  %v786_v44 = vmul.f32 %v4127_v27, %v4127_v27 }
  0xf8   : > { %810 = vadd.xlane.f32.xlu1 %v809_v63  ;;  %v3378_v19 = vpop.f32.mrf.mxu0 }
  0xf9   : > { %v4122_v23 = vadd.f32 %v3378_v19, %v4027_v26  ;;  %v760_v40 = vsel %vm602_vm0, %v4139_v36, 0.0  ;;  %v784_v41 = vmul.f32 %v4139_v36, %v4139_v36  ;;  %v830_v46 = vsel %vm602_vm0, %v786_v44, 0.0 }
  0xfa   : > { %807 = vadd.xlane.f32.xlu0 %v806_v3  ;;  %v712_v25 = vpop.f32.mrf.mxu0 }
  0xfb   : > { %v4132_v32 = vadd.f32 %v4027_v26, %v712_v25  ;;  %v769_v34 = vsel %vm602_vm0, %v4122_v23, 0.0  ;;  %v787_v26 = vmul.f32 %v4122_v23, %v4122_v23  ;;  %v824_v43 = vsel %vm602_vm0, %v784_v41, 0.0 }
  0xfc   : > { %804 = vadd.xlane.f32.xlu1 %v803_v5 }
  0xfd   : > { %v763_v38 = vsel %vm602_vm0, %v4132_v32, 0.0  ;;  %v785_v39 = vmul.f32 %v4132_v32, %v4132_v32  ;;  %v833_v45 = vsel %vm602_vm0, %v787_v26, 0.0 }
  0xfe   : > { %801 = vadd.xlane.f32.xlu0 %v800_v8 }
  0xff   : > { %v827_v42 = vsel %vm602_vm0, %v785_v39, 0.0 }
 0x100   : > { %758 = vadd.xlane.f32.xlu1 %v757_v9 }
 0x102   : > { %755 = vadd.xlane.f32.xlu0 %v754_v13 }
 0x104   : > { %752 = vadd.xlane.f32.xlu1 %v751_v15 }
 0x106   : > { %749 = vadd.xlane.f32.xlu0 %v748_v17 }
 0x108   : > { %822 = vadd.xlane.f32.xlu1 %v821_v20 }
 0x10a   : > { %819 = vadd.xlane.f32.xlu0 %v818_v22 }
 0x10c   : > { %816 = vadd.xlane.f32.xlu1 %v815_v29 }
 0x10e   : > { %813 = vadd.xlane.f32.xlu0 %v812_v31 }
 0x110   : > { %770 = vadd.xlane.f32.xlu1 %v769_v34 }
 0x112   : > { %767 = vadd.xlane.f32.xlu0 %v766_v35 }
 0x114   : > { %764 = vadd.xlane.f32.xlu1 %v763_v38 }
 0x116   : > { %761 = vadd.xlane.f32.xlu0 %v760_v40 }
 0x118   : > { %828 = vadd.xlane.f32.xlu1 %v827_v42  ;;  %v4178_v42 = vld [vmem:[%s5918_s3] ss:$0 sm:$0xff] }
 0x11a   : > { %825 = vadd.xlane.f32.xlu0 %v824_v43 }
 0x11c   : > { %834 = vadd.xlane.f32.xlu1 %v833_v45 }
 0x11e   : > { %831 = vadd.xlane.f32.xlu0 %v830_v46 }
 0x169   : > { %v732_v50 = vpop.xlane.xlu1 %731 }
 0x16a   : > { %v838_v53 = vmul.f32 0.03125, %v732_v50 }
 0x16b   : > { %v726_v52 = vpop.xlane.xlu0 %725 }
 0x16c   : > { %v870_v59 = vmul.f32 %v838_v53, %v838_v53  ;;  %v836_v60 = vmul.f32 0.03125, %v726_v52  ;;  %v902_v35 = vsub.f32 %v4030_v28, %v838_v53 }
 0x16d   : > { %v735_v55 = vpop.xlane.xlu1 %734 }
 0x16e   : > { %v839_v57 = vmul.f32 0.03125, %v735_v55  ;;  %v868_v4 = vmul.f32 %v836_v60, %v836_v60  ;;  %v900_v49 = vsub.f32 %v4033_v30, %v836_v60 }
 0x16f   : > { %v796_v58 = vpop.xlane.xlu0 %795 }
 0x170   : > { %v854_v61 = vmul.f32 0.03125, %v796_v58  ;;  %v871_v63 = vmul.f32 %v839_v57, %v839_v57  ;;  %v903_v41 = vsub.f32 %v4038_v33, %v839_v57  ;;  %v4188_v33 = vld [vmem:[%s5919_s4] ss:$0 sm:$0xff] }
 0x171   : > { %v799_v62 = vpop.xlane.xlu1 %798 }
 0x172   : > { %v886_v0 = vsub.f32 %v854_v61, %v870_v59  ;;  %v855_v1 = vmul.f32 0.03125, %v799_v62 }
 0x173   : > { %v790_v3 = vpop.xlane.xlu0 %789 }
 0x174   : > { %v918_v5 = vadd.f32 1e-05, %v886_v0  ;;  %v887_v6 = vsub.f32 %v855_v1, %v871_v63  ;;  %v852_v8 = vmul.f32 0.03125, %v790_v3 }
 0x175   : > { %v793_v9 = vpop.xlane.xlu1 %792 }
 0x176   : > { %3596 = vrsqrt.f32 %v918_v5  ;;  %v919_v10 = vadd.f32 1e-05, %v887_v6  ;;  %v884_v13 = vsub.f32 %v852_v8, %v868_v4  ;;  %v853_v18 = vmul.f32 0.03125, %v793_v9 }
 0x177   : > { %v729_v14 = vpop.xlane.xlu0 %728 }
 0x178   : > { %3598 = vrsqrt.f32 %v919_v10  ;;  %v916_v15 = vadd.f32 1e-05, %v884_v13  ;;  %v4163_v16 = vmul.f32 0.03125, %v729_v14 }
 0x179   : > { %v747_v17 = vpop.xlane.xlu1 %746 }
 0x17a   : > { %3600 = vrsqrt.f32 %v916_v15  ;;  %v869_v19 = vmul.f32 %v4163_v16, %v4163_v16  ;;  %v4167_v25 = vmul.f32 0.03125, %v747_v17  ;;  %v901_v17 = vsub.f32 %v4045_v37, %v4163_v16 }
 0x17b   : > { %v744_v20 = vpop.xlane.xlu0 %743 }
 0x17c   : > { %v885_v21 = vsub.f32 %v853_v18, %v869_v19  ;;  %v4169_v31 = vmul.f32 0.03125, %v744_v20  ;;  %v875_v38 = vmul.f32 %v4167_v25, %v4167_v25 }
 0x17d   : > { %v741_v22 = vpop.xlane.xlu1 %740 }
 0x17e   : > { %v917_v24 = vadd.f32 1e-05, %v885_v21  ;;  %v4180_v26 = vmul.f32 0.03125, %v741_v22  ;;  %v874_v45 = vmul.f32 %v4169_v31, %v4169_v31 }
 0x17f   : > { %v738_v29 = vpop.xlane.xlu0 %737 }
 0x180   : > { %3602 = vrsqrt.f32 %v917_v24  ;;  %v4190_v50 = vmul.f32 0.03125, %v738_v29  ;;  %v873_v61 = vmul.f32 %v4180_v26, %v4180_v26 }
 0x181   : > { %v811_v34 = vpop.xlane.xlu1 %810 }
 0x182   : > { %v859_v39 = vmul.f32 0.03125, %v811_v34  ;;  %v872_v1 = vmul.f32 %v4190_v50, %v4190_v50 }
 0x183   : > { %v3597_v40 = vpop.eup %3596  ;;  %v808_v43 = vpop.xlane.xlu0 %807 }
 0x184   : > { %v950_v44 = vmul.f32 %v3597_v40, %v902_v35  ;;  %v891_v28 = vsub.f32 %v859_v39, %v875_v38  ;;  %v858_v46 = vmul.f32 0.03125, %v808_v43  ;;  %v907_v39 = vsub.f32 %v4058_v47, %v4167_v25 }
 0x185   : > { %v3599_v48 = vpop.eup %3598  ;;  %v805_v52 = vpop.xlane.xlu1 %804  ;;  %v906_v40 = vsub.f32 %v4063_v51, %v4169_v31 }
 0x186   : > { %v972_v53 = vmul.f32 %v4178_v42, %v950_v44  ;;  %v951_v55 = vmul.f32 %v3599_v48, %v903_v41  ;;  %v923_v57 = vadd.f32 1e-05, %v891_v28  ;;  %v890_v58 = vsub.f32 %v858_v46, %v874_v45 }
 0x187   : > { %v3601_v59 = vpop.eup %3600  ;;  %v857_v62 = vmul.f32 0.03125, %v805_v52  ;;  %v802_v63 = vpop.xlane.xlu0 %801 }
 0x188   : > { %v4196_v30 = vadd.f32 %v4188_v33, %v972_v53  ;;  %v973_v60 = vmul.f32 %v4178_v42, %v951_v55  ;;  %v948_v0 = vmul.f32 %v3601_v59, %v900_v49  ;;  %v922_v3 = vadd.f32 1e-05, %v890_v58 }
 0x189   : > { %v889_v4 = vsub.f32 %v857_v62, %v873_v61  ;;  %v856_v5 = vmul.f32 0.03125, %v802_v63  ;;  %v759_v6 = vpop.xlane.xlu1 %758  ;;  %3604 = vrsqrt.f32 %v923_v57  ;;  %v905_v59 = vsub.f32 %v4070_v54, %v4180_v26 }
 0x18a   : > { %v4202_v8 = vadd.f32 %v4188_v33, %v973_v60  ;;  %v970_v9 = vmul.f32 %v4178_v42, %v948_v0  ;;  %3606 = vrsqrt.f32 %v922_v3  ;;  %v1026_v15 = vmul.f32 0.044715, %v4196_v30 }
 0x18b   : > { %v921_v10 = vadd.f32 1e-05, %v889_v4  ;;  %v888_v13 = vsub.f32 %v856_v5, %v872_v1  ;;  %v756_v14 = vpop.xlane.xlu0 %755  ;;  %v4212_v29 = vmul.f32 0.03125, %v759_v6  ;;  %v904_v61 = vsub.f32 %v4073_v56, %v4190_v50 }
 0x18c   : > { %v4209_v18 = vadd.f32 %v4188_v33, %v970_v9  ;;  %v1027_v22 = vmul.f32 0.044715, %v4202_v8  ;;  %v4214_v34 = vmul.f32 0.03125, %v756_v14  ;;  %v1042_v37 = vmul.f32 %v1026_v15, %v4196_v30 }
 0x18d   : > { %v3603_v19 = vpop.eup %3602  ;;  %3608 = vrsqrt.f32 %v921_v10  ;;  %v920_v20 = vadd.f32 1e-05, %v888_v13  ;;  %v753_v21 = vpop.xlane.xlu1 %752  ;;  %v879_v46 = vmul.f32 %v4212_v29, %v4212_v29 }
 0x18e   : > { %v949_v24 = vmul.f32 %v3603_v19, %v901_v17  ;;  %v1024_v38 = vmul.f32 0.044715, %v4209_v18  ;;  %v1043_v44 = vmul.f32 %v1027_v22, %v4202_v8  ;;  %v1058_v45 = vmul.f32 %v1042_v37, %v4196_v30 }
 0x18f   : > { %3610 = vrsqrt.f32 %v920_v20  ;;  %v750_v35 = vpop.xlane.xlu0 %749  ;;  %v4231_v48 = vmul.f32 0.03125, %v753_v21  ;;  %v878_v47 = vmul.f32 %v4214_v34, %v4214_v34 }
 0x190   : > { %v971_v16 = vmul.f32 %v4178_v42, %v949_v24  ;;  %v1040_v43 = vmul.f32 %v1024_v38, %v4209_v18  ;;  %v4235_v51 = vmul.f32 0.03125, %v750_v35  ;;  %v1074_v52 = vadd.f32 %v1058_v45, %v4196_v30 }
 0x191   : > { %v823_v41 = vpop.xlane.xlu1 %822  ;;  %v1059_v58 = vmul.f32 %v1043_v44, %v4202_v8  ;;  %v877_v0 = vmul.f32 %v4231_v48, %v4231_v48  ;;  %v4254_v24 = vmul.f32 0.5, %v4196_v30  ;;  %v910_v44 = vsub.f32 %v4096_v7, %v4214_v34 }
 0x192   : > { %v4227_v28 = vadd.f32 %v4188_v33, %v971_v16  ;;  %v863_v49 = vmul.f32 0.03125, %v823_v41  ;;  %v1056_v31 = vmul.f32 %v1040_v43, %v4209_v18  ;;  %v1090_v60 = vmul.f32 0.7978846, %v1074_v52 }
 0x193   : > { %v820_v25 = vpop.xlane.xlu0 %819  ;;  %v876_v6 = vmul.f32 %v4235_v51, %v4235_v51  ;;  %v1075_v13 = vadd.f32 %v1059_v58, %v4202_v8  ;;  %v911_v43 = vsub.f32 %v4089_v2, %v4212_v29  ;;  %v1008_v52 = vmul.f32 0.5, %v4209_v18 }
 0x194   : > { %v895_v53 = vsub.f32 %v863_v49, %v879_v46  ;;  %v862_v55 = vmul.f32 0.03125, %v820_v25  ;;  %v1025_v57 = vmul.f32 0.044715, %v4227_v28  ;;  %v1072_v63 = vadd.f32 %v1056_v31, %v4209_v18 }
 0x195   : > { %v817_v62 = vpop.xlane.xlu1 %816  ;;  %3612 = vtanh.f32 %v1090_v60 }
 0x196   : > { %v927_v1 = vadd.f32 1e-05, %v895_v53  ;;  %v894_v3 = vsub.f32 %v862_v55, %v878_v47  ;;  %v861_v4 = vmul.f32 0.03125, %v817_v62  ;;  %v3605_v5 = vpop.eup %3604  ;;  %v1041_v54 = vmul.f32 %v1025_v57, %v4227_v28 }
 0x197   : > { %v814_v9 = vpop.xlane.xlu0 %813  ;;  %v1088_v26 = vmul.f32 0.7978846, %v1072_v63  ;;  %v3607_v56 = vpop.eup %3606  ;;  %v955_v21 = vmul.f32 %v3605_v5, %v907_v39  ;;  %v4263_v39 = vmul.f32 0.5, %v4202_v8  ;;  %v1091_v47 = vmul.f32 0.7978846, %v1075_v13 }
 0x198   : > { %3614 = vrsqrt.f32 %v927_v1  ;;  %v926_v50 = vadd.f32 1e-05, %v894_v3  ;;  %v893_v10 = vsub.f32 %v861_v4, %v877_v0  ;;  %v954_v14 = vmul.f32 %v3607_v56, %v906_v40 }
 0x199   : > { %v860_v15 = vmul.f32 0.03125, %v814_v9  ;;  %v771_v17 = vpop.xlane.xlu1 %770  ;;  %v1057_v19 = vmul.f32 %v1041_v54, %v4227_v28  ;;  %3616 = vtanh.f32 %v1088_v26  ;;  %v977_v25 = vmul.f32 %v4178_v42, %v955_v21 }
 0x19a   : > { %v3609_v20 = vpop.eup %3608  ;;  %3618 = vrsqrt.f32 %v926_v50  ;;  %v925_v22 = vadd.f32 1e-05, %v893_v10  ;;  %v976_v35 = vmul.f32 %v4178_v42, %v954_v14  ;;  %v909_v53 = vsub.f32 %v4102_v11, %v4231_v48 }
 0x19b   : > { %v953_v38 = vmul.f32 %v3609_v20, %v905_v59  ;;  %v892_v37 = vsub.f32 %v860_v15, %v876_v6  ;;  %v768_v16 = vpop.xlane.xlu0 %767  ;;  %v1073_v41 = vadd.f32 %v1057_v19, %v4227_v28  ;;  %v908_v55 = vsub.f32 %v4105_v12, %v4235_v51 }
 0x19c   : > { %v3611_v40 = vpop.eup %3610  ;;  %3620 = vrsqrt.f32 %v925_v22  ;;  %v4271_v29 = vadd.f32 %v4188_v33, %v976_v35  ;;  %v4286_v58 = vmul.f32 0.03125, %v768_v16  ;;  %v4289_v62 = vmul.f32 0.03125, %v771_v17 }
 0x19d   : > { %v975_v30 = vmul.f32 %v4178_v42, %v953_v38  ;;  %v952_v45 = vmul.f32 %v3611_v40, %v904_v61  ;;  %v924_v46 = vadd.f32 1e-05, %v892_v37  ;;  %v765_v49 = vpop.xlane.xlu1 %764  ;;  %v1089_v2 = vmul.f32 0.7978846, %v1073_v41 }
 0x19e   : > { %v4267_v31 = vmul.f32 0.03125, %v765_v49  ;;  %v4294_v63 = vmul.f32 0.5, %v4227_v28  ;;  %v4297_v60 = vadd.f32 %v4188_v33, %v977_v25  ;;  %v1030_v4 = vmul.f32 0.044715, %v4271_v29 }
 0x19f   : > { %v4274_v7 = vadd.f32 %v4188_v33, %v975_v30  ;;  %v974_v8 = vmul.f32 %v4178_v42, %v952_v45  ;;  %3622 = vrsqrt.f32 %v924_v46  ;;  %v762_v34 = vpop.xlane.xlu0 %761  ;;  %v883_v6 = vmul.f32 %v4289_v62, %v4289_v62 }
 0x1a0   : > { %v4281_v57 = vmul.f32 0.03125, %v762_v34  ;;  %3624 = vtanh.f32 %v1089_v2  ;;  %v881_v11 = vmul.f32 %v4267_v31, %v4267_v31  ;;  %v882_v56 = vmul.f32 %v4286_v58, %v4286_v58 }
 0x1a1   : > { %v4284_v18 = vadd.f32 %v4188_v33, %v974_v8  ;;  %v829_v59 = vpop.xlane.xlu1 %828  ;;  %3626 = vtanh.f32 %v1091_v47  ;;  %v1029_v61 = vmul.f32 0.044715, %v4274_v7  ;;  %v1031_v16 = vmul.f32 0.044715, %v4297_v60 }
 0x1a2   : > { %v865_v48 = vmul.f32 0.03125, %v829_v59  ;;  %v3613_v5 = vpop.eup %3612  ;;  %v880_v9 = vmul.f32 %v4281_v57, %v4281_v57  ;;  %v1046_v41 = vmul.f32 %v1030_v4, %v4271_v29 }
 0x1a3   : > { %v826_v0 = vpop.xlane.xlu0 %825  ;;  %v1028_v1 = vmul.f32 0.044715, %v4284_v18  ;;  %v1045_v3 = vmul.f32 %v1029_v61, %v4274_v7  ;;  %v1122_v10 = vadd.f32 1.0, %v3613_v5 }
 0x1a4   : > { %v897_v54 = vsub.f32 %v865_v48, %v881_v11  ;;  %v864_v28 = vmul.f32 0.03125, %v826_v0 }
 0x1a5   : > { %v3615_v26 = vpop.eup %3614  ;;  %v835_v50 = vpop.xlane.xlu1 %834  ;;  %v1044_v13 = vmul.f32 %v1028_v1, %v4284_v18  ;;  %v1061_v14 = vmul.f32 %v1045_v3, %v4274_v7  ;;  %v4315_v47 = vmul.f32 %v1122_v10, %v4254_v24  ;;  %v1047_v24 = vmul.f32 %v1031_v16, %v4297_v60 }
 0x1a6   : > { %v3617_v15 = vpop.eup %3616  ;;  %v959_v17 = vmul.f32 %v3615_v26, %v911_v43  ;;  %v929_v19 = vadd.f32 1e-05, %v897_v54  ;;  %v896_v20 = vsub.f32 %v864_v28, %v880_v9  ;;  %v867_v21 = vmul.f32 0.03125, %v835_v50 }
 0x1a7   : > { %v3619_v22 = vpop.eup %3618  ;;  %v832_v35 = vpop.xlane.xlu0 %831  ;;  %v1120_v38 = vadd.f32 1.0, %v3617_v15  ;;  %v1060_v37 = vmul.f32 %v1044_v13, %v4284_v18  ;;  %v1077_v45 = vadd.f32 %v1061_v14, %v4274_v7  ;;  %v1062_v3 = vmul.f32 %v1046_v41, %v4271_v29 }
 0x1a8   : > { %v958_v40 = vmul.f32 %v3619_v22, %v910_v44  ;;  %3628 = vrsqrt.f32 %v929_v19  ;;  %v928_v30 = vadd.f32 1e-05, %v896_v20  ;;  %v899_v49 = vsub.f32 %v867_v21, %v883_v6 }
 0x1a9   : > { %v3621_v46 = vpop.eup %3620  ;;  %v866_v43 = vmul.f32 0.03125, %v832_v35  ;;  %v1076_v25 = vadd.f32 %v1060_v37, %v4284_v18  ;;  %v981_v2 = vmul.f32 %v4178_v42, %v959_v17  ;;  %v4320_v61 = vmul.f32 %v1120_v38, %v1008_v52 }
 0x1aa   : > { %v980_v8 = vmul.f32 %v4178_v42, %v958_v40  ;;  %v957_v34 = vmul.f32 %v3621_v46, %v909_v53  ;;  %3630 = vrsqrt.f32 %v928_v30  ;;  %v931_v59 = vadd.f32 1e-05, %v899_v49 }
 0x1ab   : > { %v898_v44 = vsub.f32 %v866_v43, %v882_v56  ;;  %v1092_v11 = vmul.f32 0.7978846, %v1076_v25  ;;  %v1093_v1 = vmul.f32 0.7978846, %v1077_v45  ;;  %v1063_v28 = vmul.f32 %v1047_v24, %v4297_v60 }
 0x1ac   : > { %v3623_v48 = vpop.eup %3622  ;;  %v979_v0 = vmul.f32 %v4178_v42, %v957_v34  ;;  %v4326_v5 = vadd.f32 %v4188_v33, %v980_v8  ;;  %3632 = vrsqrt.f32 %v931_v59  ;;  %v1078_v50 = vadd.f32 %v1062_v3, %v4271_v29 }
 0x1ad   : > { %v3625_v4 = vpop.eup %3624  ;;  %v956_v53 = vmul.f32 %v3623_v48, %v908_v55  ;;  %v930_v52 = vadd.f32 1e-05, %v898_v44  ;;  %3634 = vtanh.f32 %v1092_v11  ;;  %v4338_v10 = vadd.f32 %v4188_v33, %v981_v2 }
 0x1ae   : > { %v3627_v6 = vpop.eup %3626  ;;  %v4332_v9 = vadd.f32 %v4188_v33, %v979_v0  ;;  %v1121_v54 = vadd.f32 1.0, %v3625_v4  ;;  %v1079_v51 = vadd.f32 %v1063_v28, %v4297_v60  ;;  %v1094_v14 = vmul.f32 0.7978846, %v1078_v50 }
 0x1af   : > { %v978_v26 = vmul.f32 %v4178_v42, %v956_v53  ;;  %3636 = vrsqrt.f32 %v930_v52  ;;  %v1123_v56 = vadd.f32 1.0, %v3627_v6  ;;  %v1034_v20 = vmul.f32 0.044715, %v4326_v5 }
 0x1b0   : > { %v4341_v12 = vmul.f32 %v1121_v54, %v4294_v63  ;;  %3638 = vtanh.f32 %v1093_v1  ;;  %v1033_v15 = vmul.f32 0.044715, %v4332_v9  ;;  %v1095_v19 = vmul.f32 0.7978846, %v1079_v51 }
 0x1b1   : > { %v4345_v55 = vadd.f32 %v4188_v33, %v978_v26  ;;  %v4348_v13 = vmul.f32 %v1123_v56, %v4263_v39  ;;  %v913_v63 = vsub.f32 %v4132_v32, %v4267_v31  ;;  %3640 = vtanh.f32 %v1094_v14 }
 0x1b2   : > { %v1152_v17 = vpack.c.bf16 %v4341_v12, %v4320_v61  ;;  %3642 = vtanh.f32 %v1095_v19  ;;  %v1049_v39 = vmul.f32 %v1033_v15, %v4332_v9  ;;  %v1035_v35 = vmul.f32 0.044715, %v4338_v10 }
 0x1b3   : > { %v1153_v21 = vpack.c.bf16 %v4348_v13, %v4315_v47  ;;  %v1032_v22 = vmul.f32 0.044715, %v4345_v55  ;;  %v1050_v38 = vmul.f32 %v1034_v20, %v4326_v5  ;;  %v912_v16 = vsub.f32 %v4139_v36, %v4281_v57 }
 0x1b4   : > { %3383 = vmatprep.mubr.msk.bf16.mxu1 %vm602_vm0, %v1152_v17  ;;  %v1065_v30 = vmul.f32 %v1049_v39, %v4332_v9  ;;  %v1051_v45 = vmul.f32 %v1035_v35, %v4338_v10  ;;  %v915_v8 = vsub.f32 %v4122_v23, %v4289_v62  ;;  %v914_v34 = vsub.f32 %v4127_v27, %v4286_v58 }
 0x1b5   : > { %v3629_v37 = vpop.eup %3628  ;;  %3384 = vmatmul.mubr.msk.bf16.vlgmr.msra.gmra.mxu1 %vm602_vm0, %v1153_v21  ;;  %v1048_v32 = vmul.f32 %v1032_v22, %v4345_v55  ;;  %v1066_v46 = vmul.f32 %v1050_v38, %v4326_v5  ;;  %v1012_v0 = vmul.f32 0.5, %v4284_v18  ;;  %v1013_v26 = vmul.f32 0.5, %v4274_v7 }
 0x1b6   : > { %v961_v40 = vmul.f32 %v3629_v37, %v913_v63  ;;  %v1081_v25 = vadd.f32 %v1065_v30, %v4332_v9  ;;  %v1067_v2 = vmul.f32 %v1051_v45, %v4338_v10  ;;  %v1014_v20 = vmul.f32 0.5, %v4271_v29 }
 0x1b7   : > { %v3631_v49 = vpop.eup %3630  ;;  %v1064_v36 = vmul.f32 %v1048_v32, %v4345_v55  ;;  %v1082_v44 = vadd.f32 %v1066_v46, %v4326_v5  ;;  %v1015_v22 = vmul.f32 0.5, %v4297_v60 }
 0x1b8   : > { %v983_v57 = vmul.f32 %v4178_v42, %v961_v40  ;;  %v960_v43 = vmul.f32 %v3631_v49, %v912_v16  ;;  %v1097_v1 = vmul.f32 0.7978846, %v1081_v25  ;;  %v1083_v24 = vadd.f32 %v1067_v2, %v4338_v10 }
 0x1b9   : > { %v1080_v59 = vadd.f32 %v1064_v36, %v4345_v55  ;;  %v3633_v11 = vpop.eup %3632  ;;  %v1098_v53 = vmul.f32 0.7978846, %v1082_v44 }
 0x1ba   : > { %v982_v48 = vmul.f32 %v4178_v42, %v960_v43  ;;  %v3635_v3 = vpop.eup %3634  ;;  %v4388_v4 = vadd.f32 %v4188_v33, %v983_v57  ;;  %v963_v23 = vmul.f32 %v3633_v11, %v915_v8  ;;  %3644 = vtanh.f32 %v1097_v1 }
 0x1bb   : > { %v1096_v62 = vmul.f32 0.7978846, %v1080_v59  ;;  %v1124_v52 = vadd.f32 1.0, %v3635_v3  ;;  %v1099_v6 = vmul.f32 0.7978846, %v1083_v24  ;;  %v1016_v3 = vmul.f32 0.5, %v4345_v55 }
 0x1bc   : > { %v3637_v27 = vpop.eup %3636  ;;  %v4391_v58 = vadd.f32 %v4188_v33, %v982_v48  ;;  %v985_v18 = vmul.f32 %v4178_v42, %v963_v23  ;;  %v1037_v63 = vmul.f32 0.044715, %v4388_v4  ;;  %v1017_v23 = vmul.f32 0.5, %v4332_v9 }
 0x1bd   : > { %v3639_v54 = vpop.eup %3638  ;;  %v962_v28 = vmul.f32 %v3637_v27, %v914_v34  ;;  %3646 = vtanh.f32 %v1096_v62  ;;  %v4395_v50 = vmul.f32 %v1124_v52, %v1012_v0  ;;  %v1018_v52 = vmul.f32 0.5, %v4326_v5 }
 0x1be   : > { %v1125_v56 = vadd.f32 1.0, %v3639_v54  ;;  %3648 = vtanh.f32 %v1098_v53  ;;  %v4398_v51 = vadd.f32 %v4188_v33, %v985_v18  ;;  %v1036_v15 = vmul.f32 0.044715, %v4391_v58  ;;  %v3641_v17 = vpop.eup %3640 }
 0x1bf   : > { %v984_v14 = vmul.f32 %v4178_v42, %v962_v28  ;;  %3650 = vtanh.f32 %v1099_v6  ;;  %v3643_v7 = vpop.eup %3642  ;;  %v1126_v39 = vadd.f32 1.0, %v3641_v17  ;;  %v1053_v37 = vmul.f32 %v1037_v63, %v4388_v4 }
 0x1c0   : > { %v4402_v19 = vmul.f32 %v1125_v56, %v1013_v26  ;;  %v1052_v35 = vmul.f32 %v1036_v15, %v4391_v58  ;;  %v1127_v38 = vadd.f32 1.0, %v3643_v7  ;;  %v1039_v16 = vmul.f32 0.044715, %v4398_v51 }
 0x1c1   : > { %v4407_v21 = vadd.f32 %v4188_v33, %v984_v14  ;;  %v4415_v29 = vmul.f32 %v1126_v39, %v1014_v20  ;;  %v1069_v40 = vmul.f32 %v1053_v37, %v4388_v4  ;;  %v1019_v6 = vmul.f32 0.5, %v4338_v10 }
 0x1c2   : > { %v1154_v42 = vpack.c.bf16 %v4402_v19, %v4395_v50  ;;  %v1068_v32 = vmul.f32 %v1052_v35, %v4391_v58  ;;  %v4420_v60 = vmul.f32 %v1127_v38, %v1015_v22  ;;  %v1055_v30 = vmul.f32 %v1039_v16, %v4398_v51 }
 0x1c3   : > { %v1038_v33 = vmul.f32 0.044715, %v4407_v21  ;;  %v1085_v57 = vadd.f32 %v1069_v40, %v4388_v4  ;;  %v1020_v20 = vmul.f32 0.5, %v4391_v58  ;;  %v1021_v7 = vmul.f32 0.5, %v4388_v4 }
 0x1c4   : > { %3387 = vmatprep.mubr.msk.bf16.mxu1 %vm602_vm0, %v1154_v42  ;;  %v1084_v46 = vadd.f32 %v1068_v32, %v4391_v58  ;;  %v1155_v36 = vpack.c.bf16 %v4420_v60, %v4415_v29  ;;  %v1071_v43 = vmul.f32 %v1055_v30, %v4398_v51  ;;  %v1022_v16 = vmul.f32 0.5, %v4407_v21 }
 0x1c5   : > { %v1054_v49 = vmul.f32 %v1038_v33, %v4407_v21  ;;  %v1101_v34 = vmul.f32 0.7978846, %v1085_v57  ;;  %v1023_v32 = vmul.f32 0.5, %v4398_v51 }
 0x1c6   : > { %v1100_v2 = vmul.f32 0.7978846, %v1084_v46  ;;  %3388 = vmatmul.mubr.msk.bf16.gmra.mxu1 %vm602_vm0, %v1155_v36  ;;  %v1087_v59 = vadd.f32 %v1071_v43, %v4398_v51  ;;  %v4485_v51 = vld [vmem:[%s5921_s6] ss:$0 sm:$0xff] }
 0x1c7   : > { %v1070_v8 = vmul.f32 %v1054_v49, %v4407_v21  ;;  %v3645_v44 = vpop.eup %3644 }
 0x1c8   : > { %3652 = vtanh.f32 %v1100_v2  ;;  %v1129_v0 = vadd.f32 1.0, %v3645_v44  ;;  %v1103_v1 = vmul.f32 0.7978846, %v1087_v59 }
 0x1c9   : > { %v1086_v11 = vadd.f32 %v1070_v8, %v4407_v21  ;;  %3654 = vtanh.f32 %v1101_v34 }
 0x1ca   : > { %v3647_v48 = vpop.eup %3646  ;;  %3656 = vtanh.f32 %v1103_v1  ;;  %v4444_v28 = vmul.f32 %v1129_v0, %v1017_v23 }
 0x1cb   : > { %v3649_v24 = vpop.eup %3648  ;;  %v1128_v62 = vadd.f32 1.0, %v3647_v48  ;;  %v1102_v53 = vmul.f32 0.7978846, %v1086_v11 }
 0x1cc   : > { %v3651_v27 = vpop.eup %3650  ;;  %v1130_v54 = vadd.f32 1.0, %v3649_v24 }
 0x1cd   : > { %v4442_v18 = vmul.f32 %v1128_v62, %v1016_v3  ;;  %v1131_v26 = vadd.f32 1.0, %v3651_v27  ;;  %3658 = vtanh.f32 %v1102_v53 }
 0x1ce   : > { %v4446_v56 = vmul.f32 %v1130_v54, %v1018_v52 }
 0x1cf   : > { %v1156_v9 = vpack.c.bf16 %v4444_v28, %v4442_v18  ;;  %v4450_v55 = vmul.f32 %v1131_v26, %v1019_v6 }
 0x1d1   : > { %3391 = vmatprep.mubr.msk.bf16.mxu1 %vm602_vm0, %v1156_v9  ;;  %v1157_v10 = vpack.c.bf16 %v4450_v55, %v4446_v56 }
 0x1d3   : > { %3392 = vmatmul.mubr.msk.bf16.gmra.mxu1 %vm602_vm0, %v1157_v10 }
 0x1d5   : > { %v3653_v15 = vpop.eup %3652 }
 0x1d6   : > { %v3655_v17 = vpop.eup %3654  ;;  %v1132_v63 = vadd.f32 1.0, %v3653_v15 }
 0x1d7   : > { %v1133_v22 = vadd.f32 1.0, %v3655_v17  ;;  %v3657_v39 = vpop.eup %3656 }
 0x1d8   : > { %v4462_v35 = vmul.f32 %v1132_v63, %v1020_v20  ;;  %v1135_v37 = vadd.f32 1.0, %v3657_v39 }
 0x1d9   : > { %v4464_v38 = vmul.f32 %v1133_v22, %v1021_v7 }
 0x1da   : > { %5939 = vst [vmem:[#allocation2_spill] sm:$0xff] %v4462_v35  ;;  %v3659_v42 = vpop.eup %3658  ;;  %v4474_v30 = vmul.f32 %v1135_v37, %v1023_v32 }
 0x1db   : > { %v1134_v33 = vadd.f32 1.0, %v3659_v42  ;;  %v1158_v40 = vpack.c.bf16 %v4464_v38, %v4462_v35 }
 0x1dd   : > { %v4472_v4 = vmul.f32 %v1134_v33, %v1022_v16  ;;  %3395 = vmatprep.mubr.msk.bf16.mxu1 %vm602_vm0, %v1158_v40 }
 0x1df   : > { %v1159_v46 = vpack.c.bf16 %v4474_v30, %v4472_v4 }
 0x1e1   : > { %3396 = vmatmul.mubr.msk.bf16.gmra.mxu1 %vm602_vm0, %v1159_v46 }
 0x275   : > { %v3385_v49 = vpop.f32.mrf.mxu1 }
 0x276   : > { %v4488_v36 = vadd.f32 %v3385_v49, %v4485_v51 }
 0x277   : > { %v1243_v57 = vpop.f32.mrf.mxu1 }
 0x278   : > { %v4491_v43 = vadd.f32 %v4485_v51, %v1243_v57  ;;  %v1312_v2 = vsel %vm602_vm0, %v4488_v36, 0.0  ;;  %v1356_v0 = vmul.f32 %v4488_v36, %v4488_v36 }
 0x279   : > { %1313 = vadd.xlane.f32.xlu0 %v1312_v2  ;;  %v3386_v8 = vpop.f32.mrf.mxu1 }
 0x27a   : > { %v4496_v34 = vadd.f32 %v3386_v8, %v4485_v51  ;;  %v1306_v48 = vsel %vm602_vm0, %v4491_v43, 0.0  ;;  %v1376_v24 = vsel %vm602_vm0, %v1356_v0, 0.0  ;;  %v1354_v23 = vmul.f32 %v4491_v43, %v4491_v43 }
 0x27b   : > { %v1246_v59 = vpop.f32.mrf.mxu1 }
 0x27c   : > { %v4499_v44 = vadd.f32 %v4485_v51, %v1246_v59  ;;  %v1315_v11 = vsel %vm602_vm0, %v4496_v34, 0.0  ;;  %v1357_v3 = vmul.f32 %v4496_v34, %v4496_v34  ;;  %v1370_v53 = vsel %vm602_vm0, %v1354_v23, 0.0 }
 0x27d   : > { %1316 = vadd.xlane.f32.xlu1 %v1315_v11  ;;  %1307 = vadd.xlane.f32.xlu0 %v1306_v48 }
 0x27e   : > { %v1309_v1 = vsel %vm602_vm0, %v4499_v44, 0.0  ;;  %v1379_v62 = vsel %vm602_vm0, %v1357_v3, 0.0  ;;  %v1355_v27 = vmul.f32 %v4499_v44, %v4499_v44 }
 0x280   : > { %v1373_v6 = vsel %vm602_vm0, %v1355_v27, 0.0 }
 0x281   : > { %1310 = vadd.xlane.f32.xlu1 %v1309_v1  ;;  %1377 = vadd.xlane.f32.xlu0 %v1376_v24 }
 0x285   : > { %1380 = vadd.xlane.f32.xlu1 %v1379_v62  ;;  %1371 = vadd.xlane.f32.xlu0 %v1370_v53 }
 0x286   : > { %v3389_v52 = vpop.f32.mrf.mxu1 }
 0x287   : > { %v4520_v54 = vadd.f32 %v3389_v52, %v4485_v51 }
 0x288   : > { %v1259_v26 = vpop.f32.mrf.mxu1 }
 0x289   : > { %1374 = vadd.xlane.f32.xlu1 %v1373_v6  ;;  %v4523_v9 = vadd.f32 %v4485_v51, %v1259_v26  ;;  %v1324_v10 = vsel %vm602_vm0, %v4520_v54, 0.0  ;;  %v1360_v39 = vmul.f32 %v4520_v54, %v4520_v54 }
 0x28a   : > { %v3390_v15 = vpop.f32.mrf.mxu1  ;;  %1325 = vadd.xlane.f32.xlu0 %v1324_v10 }
 0x28b   : > { %v4528_v17 = vadd.f32 %v3390_v15, %v4485_v51  ;;  %v1318_v22 = vsel %vm602_vm0, %v4523_v9, 0.0  ;;  %v1388_v37 = vsel %vm602_vm0, %v1360_v39, 0.0  ;;  %v1358_v33 = vmul.f32 %v4523_v9, %v4523_v9 }
 0x28c   : > { %v1262_v20 = vpop.f32.mrf.mxu1 }
 0x28d   : > { %v4531_v63 = vadd.f32 %v4485_v51, %v1262_v20  ;;  %v1327_v7 = vsel %vm602_vm0, %v4528_v17, 0.0  ;;  %v1361_v32 = vmul.f32 %v4528_v17, %v4528_v17  ;;  %v1382_v57 = vsel %vm602_vm0, %v1358_v33, 0.0 }
 0x28e   : > { %1328 = vadd.xlane.f32.xlu1 %v1327_v7  ;;  %1319 = vadd.xlane.f32.xlu0 %v1318_v22 }
 0x28f   : > { %v1321_v42 = vsel %vm602_vm0, %v4531_v63, 0.0  ;;  %v1391_v49 = vsel %vm602_vm0, %v1361_v32, 0.0  ;;  %v1359_v2 = vmul.f32 %v4531_v63, %v4531_v63 }
 0x291   : > { %v1385_v48 = vsel %vm602_vm0, %v1359_v2, 0.0 }
 0x292   : > { %1322 = vadd.xlane.f32.xlu1 %v1321_v42  ;;  %1389 = vadd.xlane.f32.xlu0 %v1388_v37 }
 0x293   : > { %v3393_v16 = vpop.f32.mrf.mxu1 }
 0x294   : > { %v4547_v46 = vadd.f32 %v3393_v16, %v4485_v51 }
 0x295   : > { %v1275_v40 = vpop.f32.mrf.mxu1 }
 0x296   : > { %1392 = vadd.xlane.f32.xlu1 %v1391_v49  ;;  %1383 = vadd.xlane.f32.xlu0 %v1382_v57  ;;  %v4554_v59 = vadd.f32 %v4485_v51, %v1275_v40  ;;  %v1336_v0 = vsel %vm602_vm0, %v4547_v46, 0.0  ;;  %v1364_v62 = vmul.f32 %v4547_v46, %v4547_v46 }
 0x297   : > { %v3394_v8 = vpop.f32.mrf.mxu1 }
 0x298   : > { %v4557_v11 = vadd.f32 %v3394_v8, %v4485_v51  ;;  %v1330_v23 = vsel %vm602_vm0, %v4554_v59, 0.0  ;;  %v1400_v52 = vsel %vm602_vm0, %v1364_v62, 0.0  ;;  %v1362_v26 = vmul.f32 %v4554_v59, %v4554_v59 }
 0x299   : > { %v1278_v1 = vpop.f32.mrf.mxu1 }
 0x29a   : > { %1386 = vadd.xlane.f32.xlu1 %v1385_v48  ;;  %1337 = vadd.xlane.f32.xlu0 %v1336_v0  ;;  %v4563_v24 = vadd.f32 %v4485_v51, %v1278_v1  ;;  %v1339_v3 = vsel %vm602_vm0, %v4557_v11, 0.0  ;;  %v1365_v6 = vmul.f32 %v4557_v11, %v4557_v11  ;;  %v1394_v7 = vsel %vm602_vm0, %v1362_v26, 0.0 }
 0x29c   : > { %v1333_v27 = vsel %vm602_vm0, %v4563_v24, 0.0  ;;  %v1403_v20 = vsel %vm602_vm0, %v1365_v6, 0.0  ;;  %v1363_v22 = vmul.f32 %v4563_v24, %v4563_v24 }
 0x29e   : > { %1340 = vadd.xlane.f32.xlu1 %v1339_v3  ;;  %1331 = vadd.xlane.f32.xlu0 %v1330_v23  ;;  %v1397_v16 = vsel %vm602_vm0, %v1363_v22, 0.0 }
 0x2a1   : > { %v3397_v53 = vpop.f32.mrf.mxu1 }
 0x2a2   : > { %1334 = vadd.xlane.f32.xlu1 %v1333_v27  ;;  %1401 = vadd.xlane.f32.xlu0 %v1400_v52  ;;  %v4579_v15 = vadd.f32 %v3397_v53, %v4485_v51  ;;  %v3586_v53 = vld [vmem:[%s5924_s9 + $0x8] sm:$0xff]   ;;  %v3587_v27 = vld [vmem:[%s5924_s9] sm:$0xff]  }
 0x2a3   : > { %v1291_v10 = vpop.f32.mrf.mxu1  ;;  %3399 = vmatprep.subr.bf16.mxu0 %v3586_v53 }
 0x2a4   : > { %v4586_v42 = vadd.f32 %v4485_v51, %v1291_v10  ;;  %v1348_v32 = vsel %vm602_vm0, %v4579_v15, 0.0  ;;  %v1368_v0 = vmul.f32 %v4579_v15, %v4579_v15  ;;  %3400 = vmatpush3.bf16.msra.mxu0 %v3586_v53 }
 0x2a5   : > { %v3398_v39 = vpop.f32.mrf.mxu1  ;;  %3401 = vmatprep.subr.bf16.mxu0 %v3587_v27 }
 0x2a6   : > { %1404 = vadd.xlane.f32.xlu1 %v1403_v20  ;;  %1395 = vadd.xlane.f32.xlu0 %v1394_v7  ;;  %v4589_v37 = vadd.f32 %v3398_v39, %v4485_v51  ;;  %v1342_v57 = vsel %vm602_vm0, %v4586_v42, 0.0  ;;  %v1366_v2 = vmul.f32 %v4586_v42, %v4586_v42  ;;  %v1412_v3 = vsel %vm602_vm0, %v1368_v0, 0.0 }
 0x2a7   : > { %v1294_v33 = vpop.f32.mrf.mxu1 }
 0x2a8   : > { %v4595_v40 = vadd.f32 %v4485_v51, %v1294_v33  ;;  %v1351_v49 = vsel %vm602_vm0, %v4589_v37, 0.0  ;;  %v1406_v48 = vsel %vm602_vm0, %v1366_v2, 0.0  ;;  %v1369_v23 = vmul.f32 %v4589_v37, %v4589_v37  ;;  %3402 = vmatpush3.bf16.msra.mxu0 %v3587_v27 }
 0x2aa   : > { %1398 = vadd.xlane.f32.xlu1 %v1397_v16  ;;  %1349 = vadd.xlane.f32.xlu0 %v1348_v32  ;;  %v1345_v8 = vsel %vm602_vm0, %v4595_v40, 0.0  ;;  %v1367_v51 = vmul.f32 %v4595_v40, %v4595_v40  ;;  %v1415_v62 = vsel %vm602_vm0, %v1369_v23, 0.0 }
 0x2ac   : > { %v1409_v1 = vsel %vm602_vm0, %v1367_v51, 0.0 }
 0x2ae   : > { %1352 = vadd.xlane.f32.xlu1 %v1351_v49  ;;  %1343 = vadd.xlane.f32.xlu0 %v1342_v57 }
 0x2b2   : > { %1346 = vadd.xlane.f32.xlu1 %v1345_v8  ;;  %1407 = vadd.xlane.f32.xlu0 %v1406_v48 }
 0x2b6   : > { %1410 = vadd.xlane.f32.xlu1 %v1409_v1  ;;  %1413 = vadd.xlane.f32.xlu0 %v1412_v3 }
 0x2ba   : > { %1416 = vadd.xlane.f32.xlu1 %v1415_v62 }
 0x302   : > { %v1314_v52 = vpop.xlane.xlu0 %1313 }
 0x303   : > { %v1420_v10 = vmul.f32 0.03125, %v1314_v52 }
 0x305   : > { %v1452_v16 = vmul.f32 %v1420_v10, %v1420_v10 }
 0x306   : > { %v1317_v6 = vpop.xlane.xlu1 %1316  ;;  %v1308_v26 = vpop.xlane.xlu0 %1307 }
 0x307   : > { %v1421_v20 = vmul.f32 0.03125, %v1317_v6  ;;  %v1418_v7 = vmul.f32 0.03125, %v1308_v26 }
 0x309   : > { %v1453_v49 = vmul.f32 %v1421_v20, %v1421_v20  ;;  %v1450_v57 = vmul.f32 %v1418_v7, %v1418_v7 }
 0x30a   : > { %v1311_v22 = vpop.xlane.xlu1 %1310  ;;  %v1378_v39 = vpop.xlane.xlu0 %1377 }
 0x30b   : > { %v1436_v32 = vmul.f32 0.03125, %v1378_v39  ;;  %v4621_v48 = vmul.f32 0.03125, %v1311_v22 }
 0x30d   : > { %v1468_v33 = vsub.f32 %v1436_v32, %v1452_v16  ;;  %v1451_v53 = vmul.f32 %v4621_v48, %v4621_v48 }
 0x30e   : > { %v1381_v2 = vpop.xlane.xlu1 %1380  ;;  %v1372_v8 = vpop.xlane.xlu0 %1371 }
 0x30f   : > { %v1500_v51 = vadd.f32 1e-05, %v1468_v33  ;;  %v1437_v0 = vmul.f32 0.03125, %v1381_v2  ;;  %v1434_v1 = vmul.f32 0.03125, %v1372_v8 }
 0x311   : > { %3660 = vrsqrt.f32 %v1500_v51  ;;  %v1469_v3 = vsub.f32 %v1437_v0, %v1453_v49  ;;  %v1466_v23 = vsub.f32 %v1434_v1, %v1450_v57  ;;  %v1484_v49 = vsub.f32 %v4488_v36, %v1420_v10  ;;  %v4633_v0 = vld [vmem:[%s5922_s7] ss:$0 sm:$0xff] }
 0x312   : > { %v1375_v62 = vpop.xlane.xlu1 %1374  ;;  %v4643_v36 = vld [vmem:[%s5923_s8] ss:$0 sm:$0xff] }
 0x313   : > { %v1501_v27 = vadd.f32 1e-05, %v1469_v3  ;;  %v1498_v52 = vadd.f32 1e-05, %v1466_v23  ;;  %v1435_v6 = vmul.f32 0.03125, %v1375_v62  ;;  %v1326_v39 = vpop.xlane.xlu0 %1325 }
 0x314   : > { %v4625_v33 = vmul.f32 0.03125, %v1326_v39 }
 0x315   : > { %3662 = vrsqrt.f32 %v1501_v27  ;;  %v1467_v26 = vsub.f32 %v1435_v6, %v1451_v53  ;;  %v1485_v53 = vsub.f32 %v4496_v34, %v1421_v20  ;;  %v1482_v27 = vsub.f32 %v4491_v43, %v1418_v7 }
 0x316   : > { %3664 = vrsqrt.f32 %v1498_v52  ;;  %v1456_v1 = vmul.f32 %v4625_v33, %v4625_v33 }
 0x317   : > { %v1499_v16 = vadd.f32 1e-05, %v1467_v26  ;;  %v1329_v22 = vpop.xlane.xlu1 %1328  ;;  %v1320_v32 = vpop.xlane.xlu0 %1319 }
 0x318   : > { %v4628_v57 = vmul.f32 0.03125, %v1329_v22  ;;  %v4637_v3 = vmul.f32 0.03125, %v1320_v32 }
 0x319   : > { %3666 = vrsqrt.f32 %v1499_v16 }
 0x31a   : > { %v1457_v6 = vmul.f32 %v4628_v57, %v4628_v57  ;;  %v1454_v34 = vmul.f32 %v4637_v3, %v4637_v3 }
 0x31b   : > { %v1323_v2 = vpop.xlane.xlu1 %1322  ;;  %v1390_v8 = vpop.xlane.xlu0 %1389 }
 0x31c   : > { %v1440_v23 = vmul.f32 0.03125, %v1390_v8  ;;  %v4649_v26 = vmul.f32 0.03125, %v1323_v2  ;;  %v1483_v2 = vsub.f32 %v4499_v44, %v4621_v48 }
 0x31e   : > { %v3661_v51 = vpop.eup %3660  ;;  %v1472_v10 = vsub.f32 %v1440_v23, %v1456_v1  ;;  %v1455_v58 = vmul.f32 %v4649_v26, %v4649_v26 }
 0x31f   : > { %v1532_v62 = vmul.f32 %v3661_v51, %v1484_v49  ;;  %v1393_v39 = vpop.xlane.xlu1 %1392  ;;  %v1384_v16 = vpop.xlane.xlu0 %1383 }
 0x320   : > { %v1504_v20 = vadd.f32 1e-05, %v1472_v10  ;;  %v1441_v32 = vmul.f32 0.03125, %v1393_v39  ;;  %v1438_v49 = vmul.f32 0.03125, %v1384_v16 }
 0x321   : > { %v1554_v52 = vmul.f32 %v4633_v0, %v1532_v62 }
 0x322   : > { %v3663_v22 = vpop.eup %3662  ;;  %3668 = vrsqrt.f32 %v1504_v20  ;;  %v1473_v1 = vsub.f32 %v1441_v32, %v1457_v6  ;;  %v1470_v23 = vsub.f32 %v1438_v49, %v1454_v34 }
 0x323   : > { %v3665_v8 = vpop.eup %3664  ;;  %v4654_v51 = vadd.f32 %v4643_v36, %v1554_v52  ;;  %v1533_v43 = vmul.f32 %v3663_v22, %v1485_v53  ;;  %v1387_v10 = vpop.xlane.xlu1 %1386 }
 0x324   : > { %v1530_v7 = vmul.f32 %v3665_v8, %v1482_v27  ;;  %v1338_v39 = vpop.xlane.xlu0 %1337  ;;  %v1505_v52 = vadd.f32 1e-05, %v1473_v1  ;;  %v1502_v14 = vadd.f32 1e-05, %v1470_v23  ;;  %v1439_v53 = vmul.f32 0.03125, %v1387_v10 }
 0x325   : > { %v1555_v62 = vmul.f32 %v4633_v0, %v1533_v43  ;;  %v1608_v22 = vmul.f32 0.044715, %v4654_v51  ;;  %v4670_v8 = vmul.f32 0.03125, %v1338_v39 }
 0x326   : > { %v3667_v16 = vpop.eup %3666  ;;  %v1552_v21 = vmul.f32 %v4633_v0, %v1530_v7  ;;  %3670 = vrsqrt.f32 %v1505_v52  ;;  %v1471_v48 = vsub.f32 %v1439_v53, %v1455_v58 }
 0x327   : > { %v4663_v27 = vadd.f32 %v4643_v36, %v1555_v62  ;;  %v1531_v6 = vmul.f32 %v3667_v16, %v1483_v2  ;;  %3672 = vrsqrt.f32 %v1502_v14  ;;  %v1341_v20 = vpop.xlane.xlu1 %1340  ;;  %v1488_v14 = vsub.f32 %v4520_v54, %v4625_v33 }
 0x328   : > { %v4667_v44 = vadd.f32 %v4643_v36, %v1552_v21  ;;  %v1332_v32 = vpop.xlane.xlu0 %1331  ;;  %v1503_v49 = vadd.f32 1e-05, %v1471_v48  ;;  %v1624_v21 = vmul.f32 %v1608_v22, %v4654_v51  ;;  %v4678_v23 = vmul.f32 0.03125, %v1341_v20 }
 0x329   : > { %v1553_v34 = vmul.f32 %v4633_v0, %v1531_v6  ;;  %v1609_v1 = vmul.f32 0.044715, %v4663_v27  ;;  %v4682_v58 = vmul.f32 0.03125, %v1332_v32  ;;  %v1489_v16 = vsub.f32 %v4528_v17, %v4628_v57 }
 0x32a   : > { %v1606_v7 = vmul.f32 0.044715, %v4667_v44  ;;  %3674 = vrsqrt.f32 %v1503_v49  ;;  %v1460_v52 = vmul.f32 %v4670_v8, %v4670_v8  ;;  %v1486_v54 = vsub.f32 %v4523_v9, %v4637_v3 }
 0x32b   : > { %v4673_v43 = vadd.f32 %v4643_v36, %v1553_v34  ;;  %v1335_v2 = vpop.xlane.xlu1 %1334  ;;  %v1625_v6 = vmul.f32 %v1609_v1, %v4663_v27  ;;  %v1640_v48 = vmul.f32 %v1624_v21, %v4654_v51  ;;  %v1487_v34 = vsub.f32 %v4531_v63, %v4649_v26 }
 0x32c   : > { %v1402_v62 = vpop.xlane.xlu0 %1401  ;;  %v1622_v39 = vmul.f32 %v1606_v7, %v4667_v44  ;;  %v1461_v17 = vmul.f32 %v4678_v23, %v4678_v23  ;;  %v1458_v49 = vmul.f32 %v4682_v58, %v4682_v58  ;;  %v4703_v9 = vmul.f32 0.03125, %v1335_v2 }
 0x32d   : > { %v1607_v10 = vmul.f32 0.044715, %v4673_v43  ;;  %v1444_v53 = vmul.f32 0.03125, %v1402_v62  ;;  %v1641_v20 = vmul.f32 %v1625_v6, %v4663_v27 }
 0x32e   : > { %v1638_v22 = vmul.f32 %v1622_v39, %v4667_v44 }
 0x32f   : > { %v1623_v33 = vmul.f32 %v1607_v10, %v4673_v43  ;;  %v1476_v57 = vsub.f32 %v1444_v53, %v1460_v52  ;;  %v3669_v32 = vpop.eup %3668  ;;  %v1405_v3 = vpop.xlane.xlu1 %1404  ;;  %v1656_v53 = vadd.f32 %v1640_v48, %v4654_v51  ;;  %v1657_v6 = vadd.f32 %v1641_v20, %v4663_v27 }
 0x330   : > { %v1396_v7 = vpop.xlane.xlu0 %1395  ;;  %v1654_v21 = vadd.f32 %v1638_v22, %v4667_v44  ;;  %v1536_v62 = vmul.f32 %v3669_v32, %v1488_v14  ;;  %v1445_v26 = vmul.f32 0.03125, %v1405_v3  ;;  %v4714_v32 = vmul.f32 0.5, %v4654_v51 }
 0x331   : > { %v1639_v1 = vmul.f32 %v1623_v33, %v4673_v43  ;;  %v1508_v63 = vadd.f32 1e-05, %v1476_v57  ;;  %v1442_v10 = vmul.f32 0.03125, %v1396_v7  ;;  %v1459_v33 = vmul.f32 %v4703_v9, %v4703_v9 }
 0x332   : > { %v1670_v52 = vmul.f32 0.7978846, %v1654_v21  ;;  %v1558_v2 = vmul.f32 %v4633_v0, %v1536_v62  ;;  %v1477_v5 = vsub.f32 %v1445_v26, %v1461_v17  ;;  %v1672_v21 = vmul.f32 0.7978846, %v1656_v53 }
 0x333   : > { %v1655_v39 = vadd.f32 %v1639_v1, %v4673_v43  ;;  %3676 = vrsqrt.f32 %v1508_v63  ;;  %v1474_v25 = vsub.f32 %v1442_v10, %v1458_v49  ;;  %v3671_v45 = vpop.eup %3670  ;;  %v1399_v14 = vpop.xlane.xlu1 %1398  ;;  %v1492_v63 = vsub.f32 %v4547_v46, %v4670_v8 }
 0x334   : > { %v1350_v22 = vpop.xlane.xlu0 %1349  ;;  %3678 = vtanh.f32 %v1670_v52  ;;  %v3673_v3 = vpop.eup %3672  ;;  %v4717_v48 = vadd.f32 %v4643_v36, %v1558_v2  ;;  %v1537_v20 = vmul.f32 %v3671_v45, %v1489_v16  ;;  %v1509_v7 = vadd.f32 1e-05, %v1477_v5 }
 0x335   : > { %v1671_v57 = vmul.f32 0.7978846, %v1655_v39  ;;  %v1506_v1 = vadd.f32 1e-05, %v1474_v25  ;;  %v1534_v17 = vmul.f32 %v3673_v3, %v1486_v54  ;;  %v1443_v49 = vmul.f32 0.03125, %v1399_v14 }
 0x336   : > { %v1559_v62 = vmul.f32 %v4633_v0, %v1537_v20  ;;  %v1673_v26 = vmul.f32 0.7978846, %v1657_v6  ;;  %v1590_v25 = vmul.f32 0.5, %v4667_v44  ;;  %v4728_v54 = vmul.f32 0.5, %v4663_v27 }
 0x337   : > { %3680 = vtanh.f32 %v1671_v57  ;;  %v3675_v51 = vpop.eup %3674  ;;  %v1556_v10 = vmul.f32 %v4633_v0, %v1534_v17  ;;  %v1475_v39 = vsub.f32 %v1443_v49, %v1459_v33  ;;  %v1353_v52 = vpop.xlane.xlu1 %1352  ;;  %v1612_v46 = vmul.f32 0.044715, %v4717_v48 }
 0x338   : > { %3682 = vrsqrt.f32 %v1509_v7  ;;  %v1344_v45 = vpop.xlane.xlu0 %1343  ;;  %v4725_v5 = vadd.f32 %v4643_v36, %v1559_v62  ;;  %v1535_v16 = vmul.f32 %v3675_v51, %v1487_v34  ;;  %v4737_v33 = vmul.f32 0.03125, %v1350_v22 }
 0x339   : > { %3684 = vrsqrt.f32 %v1506_v1  ;;  %v4732_v8 = vadd.f32 %v4643_v36, %v1556_v10  ;;  %v1507_v53 = vadd.f32 1e-05, %v1475_v39  ;;  %v4734_v6 = vmul.f32 0.03125, %v1344_v45 }
 0x33a   : > { %3686 = vtanh.f32 %v1672_v21  ;;  %v1557_v2 = vmul.f32 %v4633_v0, %v1535_v16  ;;  %v4739_v44 = vmul.f32 0.03125, %v1353_v52  ;;  %v1493_v27 = vsub.f32 %v4557_v11, %v4678_v23 }
 0x33b   : > { %3688 = vtanh.f32 %v1673_v26  ;;  %v1490_v34 = vsub.f32 %v4554_v59, %v4682_v58  ;;  %v1462_v14 = vmul.f32 %v4734_v6, %v4734_v6  ;;  %v1347_v57 = vpop.xlane.xlu1 %1346  ;;  %v1610_v1 = vmul.f32 0.044715, %v4732_v8 }
 0x33c   : > { %3690 = vrsqrt.f32 %v1507_v53  ;;  %v1408_v3 = vpop.xlane.xlu0 %1407  ;;  %v4748_v20 = vadd.f32 %v4643_v36, %v1557_v2  ;;  %v4750_v22 = vmul.f32 0.03125, %v1347_v57  ;;  %v1491_v11 = vsub.f32 %v4563_v24, %v4703_v9 }
 0x33d   : > { %v1446_v7 = vmul.f32 0.03125, %v1408_v3  ;;  %v1591_v23 = vmul.f32 0.5, %v4673_v43  ;;  %v1613_v59 = vmul.f32 0.044715, %v4725_v5  ;;  %v1628_v58 = vmul.f32 %v1612_v46, %v4717_v48 }
 0x33e   : > { %v1464_v17 = vmul.f32 %v4737_v33, %v4737_v33  ;;  %v1465_v49 = vmul.f32 %v4739_v44, %v4739_v44  ;;  %v1463_v21 = vmul.f32 %v4750_v22, %v4750_v22  ;;  %v1611_v24 = vmul.f32 0.044715, %v4748_v20 }
 0x33f   : > { %v1478_v62 = vsub.f32 %v1446_v7, %v1462_v14  ;;  %v1411_v51 = vpop.xlane.xlu1 %1410  ;;  %v1626_v43 = vmul.f32 %v1610_v1, %v4732_v8  ;;  %v1629_v9 = vmul.f32 %v1613_v59, %v4725_v5  ;;  %v1644_v39 = vmul.f32 %v1628_v58, %v4717_v48 }
 0x340   : > { %v3677_v26 = vpop.eup %3676  ;;  %v1414_v10 = vpop.xlane.xlu0 %1413  ;;  %v1447_v46 = vmul.f32 0.03125, %v1411_v51  ;;  %v1627_v57 = vmul.f32 %v1611_v24, %v4748_v20 }
 0x341   : > { %v3679_v52 = vpop.eup %3678  ;;  %v1540_v45 = vmul.f32 %v3677_v26, %v1492_v63  ;;  %v1510_v16 = vadd.f32 1e-05, %v1478_v62  ;;  %v1448_v53 = vmul.f32 0.03125, %v1414_v10  ;;  %v1642_v14 = vmul.f32 %v1626_v43, %v4732_v8 }
 0x342   : > { %v1702_v2 = vadd.f32 1.0, %v3679_v52  ;;  %v1645_v3 = vmul.f32 %v1629_v9, %v4725_v5  ;;  %v1479_v1 = vsub.f32 %v1447_v46, %v1463_v21  ;;  %v1643_v62 = vmul.f32 %v1627_v57, %v4748_v20 }
 0x343   : > { %v1562_v41 = vmul.f32 %v4633_v0, %v1540_v45  ;;  %3692 = vrsqrt.f32 %v1510_v16  ;;  %v1480_v59 = vsub.f32 %v1448_v53, %v1464_v17  ;;  %v1417_v58 = vpop.xlane.xlu1 %1416  ;;  %v1658_v26 = vadd.f32 %v1642_v14, %v4732_v8 }
 0x344   : > { %v3681_v7 = vpop.eup %3680  ;;  %v4772_v63 = vmul.f32 %v1702_v2, %v1590_v25  ;;  %v1511_v43 = vadd.f32 1e-05, %v1479_v1  ;;  %v1449_v45 = vmul.f32 0.03125, %v1417_v58  ;;  %v1659_v17 = vadd.f32 %v1643_v62, %v4748_v20 }
 0x345   : > { %v3683_v31 = vpop.eup %3682  ;;  %v1703_v35 = vadd.f32 1.0, %v3681_v7  ;;  %v4777_v10 = vadd.f32 %v4643_v36, %v1562_v41  ;;  %v1512_v9 = vadd.f32 1e-05, %v1480_v59  ;;  %v1674_v46 = vmul.f32 0.7978846, %v1658_v26 }
 0x346   : > { %v3685_v51 = vpop.eup %3684  ;;  %v1541_v24 = vmul.f32 %v3683_v31, %v1493_v27  ;;  %3694 = vrsqrt.f32 %v1511_v43  ;;  %v1660_v53 = vadd.f32 %v1644_v39, %v4717_v48  ;;  %v1481_v31 = vsub.f32 %v1449_v45, %v1465_v49 }
 0x347   : > { %v1538_v52 = vmul.f32 %v3685_v51, %v1490_v34  ;;  %v4779_v21 = vmul.f32 %v1703_v35, %v1591_v23  ;;  %v3687_v16 = vpop.eup %3686  ;;  %3696 = vrsqrt.f32 %v1512_v9  ;;  %v1675_v14 = vmul.f32 0.7978846, %v1659_v17 }
 0x348   : > { %v1563_v25 = vmul.f32 %v4633_v0, %v1541_v24  ;;  %v3689_v2 = vpop.eup %3688  ;;  %v1704_v23 = vadd.f32 1.0, %v3687_v16  ;;  %v1513_v39 = vadd.f32 1e-05, %v1481_v31  ;;  %3698 = vtanh.f32 %v1674_v46 }
 0x349   : > { %v1560_v41 = vmul.f32 %v4633_v0, %v1538_v52  ;;  %v1734_v27 = vpack.c.bf16 %v4779_v21, %v4772_v63  ;;  %v3691_v34 = vpop.eup %3690  ;;  %v1705_v57 = vadd.f32 1.0, %v3689_v2  ;;  %3700 = vtanh.f32 %v1675_v14 }
 0x34a   : > { %v4788_v35 = vadd.f32 %v4643_v36, %v1563_v25  ;;  %v1539_v1 = vmul.f32 %v3691_v34, %v1491_v11  ;;  %v4795_v49 = vmul.f32 %v1704_v23, %v4714_v32  ;;  %v1661_v58 = vadd.f32 %v1645_v3, %v4725_v5 }
 0x34b   : > { %v4791_v7 = vadd.f32 %v4643_v36, %v1560_v41  ;;  %3403 = vmatprep.mubr.msk.bf16.mxu0 %vm602_vm0, %v1734_v27  ;;  %v4798_v59 = vmul.f32 %v1705_v57, %v4728_v54  ;;  %3702 = vrsqrt.f32 %v1513_v39  ;;  %v1676_v26 = vmul.f32 0.7978846, %v1660_v53 }
 0x34c   : > { %v1561_v62 = vmul.f32 %v4633_v0, %v1539_v1  ;;  %v1677_v51 = vmul.f32 0.7978846, %v1661_v58  ;;  %v1494_v32 = vsub.f32 %v4586_v42, %v4734_v6  ;;  %v1616_v54 = vmul.f32 0.044715, %v4777_v10 }
 0x34d   : > { %v1735_v11 = vpack.c.bf16 %v4798_v59, %v4795_v49  ;;  %v1614_v24 = vmul.f32 0.044715, %v4791_v7  ;;  %3704 = vtanh.f32 %v1676_v26  ;;  %v1617_v9 = vmul.f32 0.044715, %v4788_v35 }
 0x34e   : > { %v4806_v43 = vadd.f32 %v4643_v36, %v1561_v62  ;;  %3706 = vtanh.f32 %v1677_v51  ;;  %v3472_v52 = vpack.i.bf16 %v4779_v21, %v4772_v63  ;;  %v1632_v16 = vmul.f32 %v1616_v54, %v4777_v10  ;;  %v3590_v21 = vld [vmem:[%s5928_s13 + $0x28] sm:$0xff]  }
 0x34f   : > { %3404 = vmatmul.mubr.msk.bf16.vlgmr.msra.gmra.mxu0 %vm602_vm0, %v1735_v11  ;;  %v1630_v3 = vmul.f32 %v1614_v24, %v4791_v7  ;;  %v3477_v42 = vpack.i.bf16 %v4798_v59, %v4795_v49  ;;  %v1633_v46 = vmul.f32 %v1617_v9, %v4788_v35  ;;  %v1495_v41 = vsub.f32 %v4595_v40, %v4750_v22 }
 0x350   : > { %v3693_v45 = vpop.eup %3692  ;;  %v1615_v17 = vmul.f32 0.044715, %v4806_v43  ;;  %v1648_v2 = vmul.f32 %v1632_v16, %v4777_v10  ;;  %v1496_v57 = vsub.f32 %v4579_v15, %v4737_v33  ;;  %v1497_v14 = vsub.f32 %v4589_v37, %v4739_v44 }
 0x351   : > { %v1542_v6 = vmul.f32 %v3693_v45, %v1494_v32  ;;  %v1646_v25 = vmul.f32 %v1630_v3, %v4791_v7  ;;  %v1649_v34 = vmul.f32 %v1633_v46, %v4788_v35  ;;  %v1594_v51 = vmul.f32 0.5, %v4732_v8 }
 0x352   : > { %v1631_v53 = vmul.f32 %v1615_v17, %v4806_v43  ;;  %v1664_v39 = vadd.f32 %v1648_v2, %v4777_v10  ;;  %v1595_v44 = vmul.f32 0.5, %v4748_v20  ;;  %v1596_v46 = vmul.f32 0.5, %v4717_v48 }
 0x353   : > { %v1564_v31 = vmul.f32 %v4633_v0, %v1542_v6  ;;  %v1662_v27 = vadd.f32 %v1646_v25, %v4791_v7  ;;  %v3695_v23 = vpop.eup %3694  ;;  %v1665_v26 = vadd.f32 %v1649_v34, %v4788_v35 }
 0x354   : > { %v1647_v1 = vmul.f32 %v1631_v53, %v4806_v43  ;;  %v3697_v58 = vpop.eup %3696  ;;  %v1543_v22 = vmul.f32 %v3695_v23, %v1495_v41  ;;  %v1680_v33 = vmul.f32 0.7978846, %v1664_v39 }
 0x355   : > { %v4836_v40 = vadd.f32 %v4643_v36, %v1564_v31  ;;  %v1678_v62 = vmul.f32 0.7978846, %v1662_v27  ;;  %v1544_v11 = vmul.f32 %v3697_v58, %v1496_v57  ;;  %v3699_v24 = vpop.eup %3698  ;;  %v1681_v32 = vmul.f32 0.7978846, %v1665_v26 }
 0x356   : > { %v1663_v15 = vadd.f32 %v1647_v1, %v4806_v43  ;;  %v1565_v37 = vmul.f32 %v4633_v0, %v1543_v22  ;;  %v3701_v54 = vpop.eup %3700  ;;  %v1706_v9 = vadd.f32 1.0, %v3699_v24  ;;  %v1597_v57 = vmul.f32 0.5, %v4725_v5 }
 0x357   : > { %3708 = vtanh.f32 %v1678_v62  ;;  %v1566_v3 = vmul.f32 %v4633_v0, %v1544_v11  ;;  %v1707_v8 = vadd.f32 1.0, %v3701_v54  ;;  %v1618_v6 = vmul.f32 0.044715, %v4836_v40 }
 0x358   : > { %v1679_v45 = vmul.f32 0.7978846, %v1663_v15  ;;  %3710 = vtanh.f32 %v1680_v33  ;;  %v3703_v17 = vpop.eup %3702  ;;  %v4845_v16 = vadd.f32 %v4643_v36, %v1565_v37  ;;  %v4852_v2 = vmul.f32 %v1706_v9, %v1594_v51 }
 0x359   : > { %3712 = vtanh.f32 %v1681_v32  ;;  %v4849_v25 = vadd.f32 %v4643_v36, %v1566_v3  ;;  %v1545_v20 = vmul.f32 %v3703_v17, %v1497_v14  ;;  %v4854_v41 = vmul.f32 %v1707_v8, %v1595_v44 }
 0x35a   : > { %3714 = vtanh.f32 %v1679_v45  ;;  %v3705_v53 = vpop.eup %3704  ;;  %v1619_v31 = vmul.f32 0.044715, %v4845_v16  ;;  %v1634_v27 = vmul.f32 %v1618_v6, %v4836_v40 }
 0x35b   : > { %v3707_v34 = vpop.eup %3706  ;;  %v1567_v23 = vmul.f32 %v4633_v0, %v1545_v20  ;;  %v1708_v1 = vadd.f32 1.0, %v3705_v53  ;;  %v1620_v14 = vmul.f32 0.044715, %v4849_v25  ;;  %v1736_v48 = vpack.c.bf16 %v4854_v41, %v4852_v2 }
 0x35c   : > { %v1709_v39 = vadd.f32 1.0, %v3707_v34  ;;  %v1635_v58 = vmul.f32 %v1619_v31, %v4845_v16  ;;  %v1650_v22 = vmul.f32 %v1634_v27, %v4836_v40  ;;  %v3492_v0 = vpack.i.bf16 %v4854_v41, %v4852_v2 }
 0x35d   : > { %v1589_v62 = vadd.f32 %v4643_v36, %v1567_v23  ;;  %v1636_v26 = vmul.f32 %v1620_v14, %v4849_v25  ;;  %3407 = vmatprep.mubr.msk.bf16.mxu0 %vm602_vm0, %v1736_v48  ;;  %v4870_v5 = vmul.f32 %v1708_v1, %v1596_v46  ;;  %v1600_v34 = vmul.f32 0.5, %v4777_v10 }
 0x35e   : > { %v4872_v11 = vmul.f32 %v1709_v39, %v1597_v57  ;;  %v1651_v51 = vmul.f32 %v1635_v58, %v4845_v16  ;;  %v1666_v15 = vadd.f32 %v1650_v22, %v4836_v40  ;;  %v1601_v23 = vmul.f32 0.5, %v4788_v35 }
 0x35f   : > { %v1621_v33 = vmul.f32 0.044715, %v1589_v62  ;;  %v1652_v24 = vmul.f32 %v1636_v26, %v4849_v25  ;;  %v1598_v1 = vmul.f32 0.5, %v4791_v7  ;;  %v1599_v14 = vmul.f32 0.5, %v4806_v43 }
 0x360   : > { %v1737_v36 = vpack.c.bf16 %v4872_v11, %v4870_v5  ;;  %v1667_v37 = vadd.f32 %v1651_v51, %v4845_v16  ;;  %v1682_v44 = vmul.f32 0.7978846, %v1666_v15  ;;  %v3497_v32 = vpack.i.bf16 %v4872_v11, %v4870_v5  ;;  %v3591_v5 = vld [vmem:[%s5928_s13 + $0x20] sm:$0xff]  }
 0x361   : > { %v1637_v54 = vmul.f32 %v1621_v33, %v1589_v62  ;;  %v1668_v3 = vadd.f32 %v1652_v24, %v4849_v25 }
 0x362   : > { %3408 = vmatmul.mubr.msk.bf16.gmra.mxu0 %vm602_vm0, %v1737_v36  ;;  %v1683_v9 = vmul.f32 0.7978846, %v1667_v37  ;;  %3716 = vtanh.f32 %v1682_v44  ;;  %v1602_v37 = vmul.f32 0.5, %v4836_v40  ;;  %v1603_v44 = vmul.f32 0.5, %v4845_v16 }
 0x363   : > { %v1653_v17 = vmul.f32 %v1637_v54, %v1589_v62  ;;  %v1684_v8 = vmul.f32 0.7978846, %v1668_v3 }
 0x364   : > { %v3709_v45 = vpop.eup %3708  ;;  %3718 = vtanh.f32 %v1683_v9 }
 0x365   : > { %v3711_v6 = vpop.eup %3710  ;;  %v1710_v46 = vadd.f32 1.0, %v3709_v45  ;;  %v1669_v31 = vadd.f32 %v1653_v17, %v1589_v62  ;;  %3720 = vtanh.f32 %v1684_v8 }
 0x366   : > { %v3713_v20 = vpop.eup %3712  ;;  %v1712_v53 = vadd.f32 1.0, %v3711_v6 }
 0x367   : > { %v3715_v27 = vpop.eup %3714  ;;  %v1713_v57 = vadd.f32 1.0, %v3713_v20  ;;  %v1685_v39 = vmul.f32 0.7978846, %v1669_v31  ;;  %v4892_v26 = vmul.f32 %v1710_v46, %v1598_v1  ;;  %v1604_v20 = vmul.f32 0.5, %v4849_v25  ;;  %v4930_v25 = vld [vmem:[%s5925_s10] ss:$0 sm:$0xff] }
 0x368   : > { %v1711_v48 = vadd.f32 1.0, %v3715_v27  ;;  %v4888_v58 = vmul.f32 %v1712_v53, %v1600_v34  ;;  %v1605_v46 = vmul.f32 0.5, %v1589_v62 }
 0x369   : > { %v4890_v22 = vmul.f32 %v1713_v57, %v1601_v23  ;;  %3722 = vtanh.f32 %v1685_v39 }
 0x36a   : > { %v4894_v51 = vmul.f32 %v1711_v48, %v1599_v14 }
 0x36b   : > { %v3527_v10 = vpack.i.bf16 %v4890_v22, %v4888_v58  ;;  %v1739_v43 = vpack.c.bf16 %v4890_v22, %v4888_v58 }
 0x36c   : > { %v1738_v35 = vpack.c.bf16 %v4894_v51, %v4892_v26  ;;  %v3522_v7 = vpack.i.bf16 %v4894_v51, %v4892_v26 }
 0x36e   : > { %3411 = vmatprep.mubr.msk.bf16.mxu0 %vm602_vm0, %v1738_v35 }
 0x36f   : > { %3412 = vmatmul.mubr.msk.bf16.gmra.mxu0 %vm602_vm0, %v1739_v43  ;;  %v3717_v15 = vpop.eup %3716 }
 0x370   : > { %v1714_v33 = vadd.f32 1.0, %v3717_v15 }
 0x371   : > { %v3719_v24 = vpop.eup %3718 }
 0x372   : > { %v3721_v36 = vpop.eup %3720  ;;  %v1715_v54 = vadd.f32 1.0, %v3719_v24  ;;  %v4908_v3 = vmul.f32 %v1714_v33, %v1602_v37 }
 0x373   : > { %v1716_v45 = vadd.f32 1.0, %v3721_v36 }
 0x374   : > { %v4910_v9 = vmul.f32 %v1715_v54, %v1603_v44 }
 0x375   : > { %v4918_v40 = vmul.f32 %v1716_v45, %v1604_v20 }
 0x376   : > { %v3723_v17 = vpop.eup %3722  ;;  %v1740_v8 = vpack.c.bf16 %v4910_v9, %v4908_v3  ;;  %v3562_v6 = vpack.i.bf16 %v4910_v9, %v4908_v3 }
 0x377   : > { %v1717_v53 = vadd.f32 1.0, %v3723_v17 }
 0x378   : > { %3415 = vmatprep.mubr.msk.bf16.mxu0 %vm602_vm0, %v1740_v8 }
 0x379   : > { %v4920_v16 = vmul.f32 %v1717_v53, %v1605_v46 }
 0x37b   : > { %v1741_v31 = vpack.c.bf16 %v4920_v16, %v4918_v40  ;;  %v3567_v27 = vpack.i.bf16 %v4920_v16, %v4918_v40 }
 0x37d   : > { %3416 = vmatmul.mubr.msk.bf16.gmra.mxu0 %vm602_vm0, %v1741_v31 }
 0x40f   : > { %v3405_v62 = vpop.f32.mrf.mxu0 }
 0x410   : > { %v4933_v34 = vadd.f32 %v3405_v62, %v4930_v25 }
 0x411   : > { %v1825_v23 = vpop.f32.mrf.mxu0 }
 0x412   : > { %v4936_v57 = vadd.f32 %v4930_v25, %v1825_v23  ;;  %v1894_v1 = vsel %vm602_vm0, %v4933_v34, 0.0  ;;  %v1938_v33 = vmul.f32 %v4933_v34, %v4933_v34 }
 0x413   : > { %1895 = vadd.xlane.f32.xlu0 %v1894_v1  ;;  %v3406_v14 = vpop.f32.mrf.mxu0 }
 0x414   : > { %v4941_v48 = vadd.f32 %v3406_v14, %v4930_v25  ;;  %v1888_v15 = vsel %vm602_vm0, %v4936_v57, 0.0  ;;  %v1958_v36 = vsel %vm602_vm0, %v1938_v33, 0.0  ;;  %v1936_v44 = vmul.f32 %v4936_v57, %v4936_v57 }
 0x415   : > { %v1828_v39 = vpop.f32.mrf.mxu0 }
 0x416   : > { %v4944_v35 = vadd.f32 %v4930_v25, %v1828_v39  ;;  %v1897_v43 = vsel %vm602_vm0, %v4941_v48, 0.0  ;;  %v1939_v37 = vmul.f32 %v4941_v48, %v4941_v48  ;;  %v1952_v45 = vsel %vm602_vm0, %v1936_v44, 0.0 }
 0x417   : > { %1898 = vadd.xlane.f32.xlu1 %v1897_v43  ;;  %1889 = vadd.xlane.f32.xlu0 %v1888_v15 }
 0x418   : > { %v1891_v24 = vsel %vm602_vm0, %v4944_v35, 0.0  ;;  %v1961_v54 = vsel %vm602_vm0, %v1939_v37, 0.0  ;;  %v1937_v17 = vmul.f32 %v4944_v35, %v4944_v35 }
 0x41a   : > { %v1955_v8 = vsel %vm602_vm0, %v1937_v17, 0.0 }
 0x41b   : > { %1892 = vadd.xlane.f32.xlu1 %v1891_v24  ;;  %1959 = vadd.xlane.f32.xlu0 %v1958_v36 }
 0x41f   : > { %1962 = vadd.xlane.f32.xlu1 %v1961_v54  ;;  %1953 = vadd.xlane.f32.xlu0 %v1952_v45 }
 0x422   : > { %v3409_v20 = vpop.f32.mrf.mxu0 }
 0x423   : > { %1956 = vadd.xlane.f32.xlu1 %v1955_v8  ;;  %v4965_v46 = vadd.f32 %v3409_v20, %v4930_v25 }
 0x424   : > { %v1841_v53 = vpop.f32.mrf.mxu0 }
 0x425   : > { %v4968_v31 = vadd.f32 %v4930_v25, %v1841_v53  ;;  %v1906_v62 = vsel %vm602_vm0, %v4965_v46, 0.0  ;;  %v1942_v33 = vmul.f32 %v4965_v46, %v4965_v46 }
 0x426   : > { %1907 = vadd.xlane.f32.xlu0 %v1906_v62  ;;  %v3410_v23 = vpop.f32.mrf.mxu0 }
 0x427   : > { %v4973_v1 = vadd.f32 %v3410_v23, %v4930_v25  ;;  %v1900_v15 = vsel %vm602_vm0, %v4968_v31, 0.0  ;;  %v1970_v36 = vsel %vm602_vm0, %v1942_v33, 0.0  ;;  %v1940_v44 = vmul.f32 %v4968_v31, %v4968_v31 }
 0x428   : > { %v1844_v14 = vpop.f32.mrf.mxu0 }
 0x429   : > { %v4976_v39 = vadd.f32 %v4930_v25, %v1844_v14  ;;  %v1909_v43 = vsel %vm602_vm0, %v4973_v1, 0.0  ;;  %v1943_v37 = vmul.f32 %v4973_v1, %v4973_v1  ;;  %v1964_v20 = vsel %vm602_vm0, %v1940_v44, 0.0 }
 0x42a   : > { %1910 = vadd.xlane.f32.xlu1 %v1909_v43  ;;  %1901 = vadd.xlane.f32.xlu0 %v1900_v15 }
 0x42b   : > { %v1903_v24 = vsel %vm602_vm0, %v4976_v39, 0.0  ;;  %v1973_v8 = vsel %vm602_vm0, %v1943_v37, 0.0  ;;  %v1941_v53 = vmul.f32 %v4976_v39, %v4976_v39 }
 0x42d   : > { %v1967_v15 = vsel %vm602_vm0, %v1941_v53, 0.0 }
 0x42e   : > { %1904 = vadd.xlane.f32.xlu1 %v1903_v24  ;;  %1971 = vadd.xlane.f32.xlu0 %v1970_v36 }
 0x42f   : > { %v3413_v54 = vpop.f32.mrf.mxu0 }
 0x430   : > { %v4992_v45 = vadd.f32 %v3413_v54, %v4930_v25 }
 0x431   : > { %v1857_v17 = vpop.f32.mrf.mxu0 }
 0x432   : > { %1974 = vadd.xlane.f32.xlu1 %v1973_v8  ;;  %1965 = vadd.xlane.f32.xlu0 %v1964_v20  ;;  %v1918_v23 = vsel %vm602_vm0, %v4992_v45, 0.0  ;;  %v5004_v43 = vadd.f32 %v4930_v25, %v1857_v17  ;;  %v1946_v44 = vmul.f32 %v4992_v45, %v4992_v45 }
 0x433   : > { %v3414_v62 = vpop.f32.mrf.mxu0 }
 0x434   : > { %v5001_v14 = vadd.f32 %v3414_v62, %v4930_v25  ;;  %v1912_v37 = vsel %vm602_vm0, %v5004_v43, 0.0  ;;  %v1982_v17 = vsel %vm602_vm0, %v1946_v44, 0.0  ;;  %v1944_v53 = vmul.f32 %v5004_v43, %v5004_v43 }
 0x435   : > { %v1860_v33 = vpop.f32.mrf.mxu0 }
 0x436   : > { %1968 = vadd.xlane.f32.xlu1 %v1967_v15  ;;  %1919 = vadd.xlane.f32.xlu0 %v1918_v23  ;;  %v1921_v24 = vsel %vm602_vm0, %v5001_v14, 0.0  ;;  %v5010_v36 = vadd.f32 %v4930_v25, %v1860_v33  ;;  %v1947_v20 = vmul.f32 %v5001_v14, %v5001_v14  ;;  %v1976_v33 = vsel %vm602_vm0, %v1944_v53, 0.0 }
 0x438   : > { %v1915_v54 = vsel %vm602_vm0, %v5010_v36, 0.0  ;;  %v1985_v15 = vsel %vm602_vm0, %v1947_v20, 0.0 }
 0x43a   : > { %1922 = vadd.xlane.f32.xlu1 %v1921_v24  ;;  %1913 = vadd.xlane.f32.xlu0 %v1912_v37  ;;  %v1945_v37 = vmul.f32 %v5010_v36, %v5010_v36 }
 0x43d   : > { %v3417_v8 = vpop.f32.mrf.mxu0 }
 0x43e   : > { %1916 = vadd.xlane.f32.xlu1 %v1915_v54  ;;  %1983 = vadd.xlane.f32.xlu0 %v1982_v17  ;;  %v5024_v62 = vadd.f32 %v3417_v8, %v4930_v25  ;;  %v1979_v8 = vsel %vm602_vm0, %v1945_v37, 0.0 }
 0x43f   : > { %v1873_v23 = vpop.f32.mrf.mxu0 }
 0x440   : > { %v1930_v54 = vsel %vm602_vm0, %v5024_v62, 0.0  ;;  %v5036_v17 = vadd.f32 %v4930_v25, %v1873_v23 }
 0x441   : > { %v3418_v24 = vpop.f32.mrf.mxu0 }
 0x442   : > { %1986 = vadd.xlane.f32.xlu1 %v1985_v15  ;;  %1977 = vadd.xlane.f32.xlu0 %v1976_v33  ;;  %v5031_v44 = vadd.f32 %v3418_v24, %v4930_v25  ;;  %v1924_v33 = vsel %vm602_vm0, %v5036_v17, 0.0  ;;  %v1948_v24 = vmul.f32 %v5036_v17, %v5036_v17 }
 0x443   : > { %v1876_v20 = vpop.f32.mrf.mxu0 }
 0x444   : > { %v1933_v53 = vsel %vm602_vm0, %v5031_v44, 0.0  ;;  %v5042_v15 = vadd.f32 %v4930_v25, %v1876_v20  ;;  %v1988_v37 = vsel %vm602_vm0, %v1948_v24, 0.0  ;;  %v1950_v25 = vmul.f32 %v5024_v62, %v5024_v62 }
 0x445   : > { %v5940_v24 = vpack.i.bf16 %v4348_v13, %v4315_v47  ;;  %v5943_v47 = vpack.i.bf16 %v4420_v60, %v4415_v29  ;;  %v3588_v29 = vld [vmem:[%s5928_s13 + $0x38] sm:$0xff]   ;;  %v3589_v60 = vld [vmem:[%s5928_s13 + $0x30] sm:$0xff]  }
 0x446   : > { %1980 = vadd.xlane.f32.xlu1 %v1979_v8  ;;  %1931 = vadd.xlane.f32.xlu0 %v1930_v54  ;;  %v1927_v23 = vsel %vm602_vm0, %v5042_v15, 0.0  ;;  %v1949_v54 = vmul.f32 %v5042_v15, %v5042_v15  ;;  %v1994_v20 = vsel %vm602_vm0, %v1950_v25, 0.0 }
 0x447   : > { %3419 = vmatprep.subr.bf16.mxu1 %v3588_v29 }
 0x448   : > { %v1991_v8 = vsel %vm602_vm0, %v1949_v54, 0.0  ;;  %3420 = vmatpush3.bf16.msra.mxu1 %v3588_v29 }
 0x449   : > { %3421 = vmatprep.subr.bf16.mxu1 %v3589_v60 }
 0x44a   : > { %1934 = vadd.xlane.f32.xlu1 %v1933_v53  ;;  %1925 = vadd.xlane.f32.xlu0 %v1924_v33  ;;  %v1951_v53 = vmul.f32 %v5031_v44, %v5031_v44 }
 0x44c   : > { %v1997_v33 = vsel %vm602_vm0, %v1951_v53, 0.0  ;;  %3422 = vmatpush3.bf16.msra.mxu1 %v3589_v60 }
 0x44d   : > { %3423 = vmatprep.subr.bf16.mxu1 %v3590_v21 }
 0x44e   : > { %1928 = vadd.xlane.f32.xlu1 %v1927_v23  ;;  %1989 = vadd.xlane.f32.xlu0 %v1988_v37  ;;  %v5941_v23 = vpack.i.bf16 %v4341_v12, %v4320_v61  ;;  %v5942_v37 = vpack.i.bf16 %v4402_v19, %v4395_v50  ;;  %v5944_v61 = vpack.i.bf16 %v4444_v28, %v4442_v18 }
 0x44f   : > { %v5945_v12 = vpack.i.bf16 %v4450_v55, %v4446_v56 }
 0x450   : > { %3424 = vmatpush3.bf16.msra.mxu1 %v3590_v21  ;;  %v5136_v21 = vld [vmem:[%s5926_s11] ss:$0 sm:$0xff] }
 0x451   : > { %3425 = vmatprep.subr.bf16.mxu1 %v3591_v5 }
 0x452   : > { %1992 = vadd.xlane.f32.xlu1 %v1991_v8  ;;  %1995 = vadd.xlane.f32.xlu0 %v1994_v20 }
 0x454   : > { %3426 = vmatpush3.bf16.msra.mxu1 %v3591_v5 }
 0x456   : > { %1998 = vadd.xlane.f32.xlu1 %v1997_v33  ;;  %v3592_v33 = vld [vmem:[%s5928_s13 + $0x18] sm:$0xff]  }
 0x457   : > { %3427 = vmatprep.subr.bf16.mxu1 %v3592_v33 }
 0x458   : > { %3428 = vmatpush3.bf16.msra.mxu1 %v3592_v33 }
 0x467   : > { %3468 = vrot.lane.b32.xlu1 %v5940_v24, %s3883_s25 }
 0x468   : > { %3463 = vrot.lane.b32.xlu0 %v5941_v23, %s3883_s25 }
 0x46b   : > { %3473 = vrot.lane.b32.xlu1 %v3472_v52, %s3884_s26 }
 0x46c   : > { %3483 = vrot.lane.b32.xlu0 %v5942_v37, %s3883_s25 }
 0x46f   : > { %3478 = vrot.lane.b32.xlu1 %v3477_v42, %s3884_s26 }
 0x470   : > { %3493 = vrot.lane.b32.xlu0 %v3492_v0, %s3884_s26 }
 0x473   : > { %3488 = vrot.lane.b32.xlu1 %v5943_v47, %s3883_s25 }
 0x474   : > { %3503 = vrot.lane.b32.xlu0 %v5944_v61, %s3883_s25 }
 0x477   : > { %3498 = vrot.lane.b32.xlu1 %v3497_v32, %s3884_s26 }
 0x47b   : > { %3508 = vrot.lane.b32.xlu1 %v5945_v12, %s3883_s25 }
 0x49c   : > { %v1896_v13 = vpop.xlane.xlu0 %1895 }
 0x49d   : > { %v2002_v18 = vmul.f32 0.03125, %v1896_v13  ;;  %v3593_v13 = vld [vmem:[%s5928_s13 + $0x10] sm:$0xff]  }
 0x49e   : > { %3429 = vmatprep.subr.bf16.mxu1 %v3593_v13 }
 0x49f   : > { %v2034_v49 = vmul.f32 %v2002_v18, %v2002_v18  ;;  %3430 = vmatpush3.bf16.msra.mxu1 %v3593_v13 }
 0x4a0   : > { %v1899_v50 = vpop.xlane.xlu1 %1898  ;;  %v1890_v19 = vpop.xlane.xlu0 %1889 }
 0x4a1   : > { %v5106_v28 = vmul.f32 0.03125, %v1899_v50  ;;  %v5108_v63 = vmul.f32 0.03125, %v1890_v19 }
 0x4a3   : > { %v2035_v42 = vmul.f32 %v5106_v28, %v5106_v28  ;;  %v2032_v2 = vmul.f32 %v5108_v63, %v5108_v63 }
 0x4a4   : > { %v1893_v56 = vpop.xlane.xlu1 %1892  ;;  %v1960_v55 = vpop.xlane.xlu0 %1959 }
 0x4a5   : > { %v2018_v59 = vmul.f32 0.03125, %v1960_v55  ;;  %v5120_v11 = vmul.f32 0.03125, %v1893_v56  ;;  %v2066_v56 = vsub.f32 %v4933_v34, %v2002_v18  ;;  %v5145_v34 = vld [vmem:[%s5927_s12] ss:$0 sm:$0xff] }
 0x4a7   : > { %v2050_v52 = vsub.f32 %v2018_v59, %v2034_v49  ;;  %v2033_v24 = vmul.f32 %v5120_v11, %v5120_v11 }
 0x4a8   : > { %v1963_v41 = vpop.xlane.xlu1 %1962  ;;  %v1954_v0 = vpop.xlane.xlu0 %1953 }
 0x4a9   : > { %v2082_v32 = vadd.f32 1e-05, %v2050_v52  ;;  %v2019_v54 = vmul.f32 0.03125, %v1963_v41  ;;  %v2016_v25 = vmul.f32 0.03125, %v1954_v0  ;;  %v2067_v0 = vsub.f32 %v4941_v48, %v5106_v28 }
 0x4ab   : > { %3724 = vrsqrt.f32 %v2082_v32  ;;  %v2051_v8 = vsub.f32 %v2019_v54, %v2035_v42  ;;  %v2048_v20 = vsub.f32 %v2016_v25, %v2032_v2  ;;  %v2064_v25 = vsub.f32 %v4936_v57, %v5108_v63 }
 0x4ac   : > { %v1957_v53 = vpop.xlane.xlu1 %1956  ;;  %v2065_v57 = vsub.f32 %v4944_v35, %v5120_v11 }
 0x4ad   : > { %v2083_v23 = vadd.f32 1e-05, %v2051_v8  ;;  %v2080_v37 = vadd.f32 1e-05, %v2048_v20  ;;  %v2017_v47 = vmul.f32 0.03125, %v1957_v53 }
 0x4af   : > { %3726 = vrsqrt.f32 %v2083_v23  ;;  %v2049_v61 = vsub.f32 %v2017_v47, %v2033_v24  ;;  %v1908_v12 = vpop.xlane.xlu0 %1907 }
 0x4b0   : > { %3728 = vrsqrt.f32 %v2080_v37  ;;  %v5130_v60 = vmul.f32 0.03125, %v1908_v12 }
 0x4b1   : > { %v2081_v50 = vadd.f32 1e-05, %v2049_v61 }
 0x4b2   : > { %v2038_v2 = vmul.f32 %v5130_v60, %v5130_v60 }
 0x4b3   : > { %3730 = vrsqrt.f32 %v2081_v50  ;;  %v1911_v19 = vpop.xlane.xlu1 %1910  ;;  %v1902_v29 = vpop.xlane.xlu0 %1901 }
 0x4b4   : > { %v5138_v49 = vmul.f32 0.03125, %v1911_v19  ;;  %v5147_v18 = vmul.f32 0.03125, %v1902_v29 }
 0x4b6   : > { %v2039_v8 = vmul.f32 %v5138_v49, %v5138_v49  ;;  %v2036_v61 = vmul.f32 %v5147_v18, %v5147_v18 }
 0x4b7   : > { %v1905_v59 = vpop.xlane.xlu1 %1904  ;;  %v1972_v52 = vpop.xlane.xlu0 %1971 }
 0x4b8   : > { %v3725_v55 = vpop.eup %3724  ;;  %v2022_v41 = vmul.f32 0.03125, %v1972_v52  ;;  %v5156_v20 = vmul.f32 0.03125, %v1905_v59 }
 0x4b9   : > { %v2114_v42 = vmul.f32 %v3725_v55, %v2066_v56 }
 0x4ba   : > { %v2054_v32 = vsub.f32 %v2022_v41, %v2038_v2  ;;  %v2037_v29 = vmul.f32 %v5156_v20, %v5156_v20 }
 0x4bb   : > { %v2136_v5 = vmul.f32 %v5136_v21, %v2114_v42  ;;  %v1975_v53 = vpop.xlane.xlu1 %1974  ;;  %v1966_v33 = vpop.xlane.xlu0 %1965 }
 0x4bc   : > { %v3727_v54 = vpop.eup %3726  ;;  %v2086_v48 = vadd.f32 1e-05, %v2054_v32  ;;  %v2023_v28 = vmul.f32 0.03125, %v1975_v53  ;;  %v2020_v12 = vmul.f32 0.03125, %v1966_v33 }
 0x4bd   : > { %v3729_v24 = vpop.eup %3728  ;;  %v5159_v23 = vadd.f32 %v5145_v34, %v2136_v5  ;;  %v2115_v37 = vmul.f32 %v3727_v54, %v2067_v0 }
 0x4be   : > { %v2112_v47 = vmul.f32 %v3729_v24, %v2064_v25  ;;  %3732 = vrsqrt.f32 %v2086_v48  ;;  %v2055_v13 = vsub.f32 %v2023_v28, %v2039_v8  ;;  %v2052_v56 = vsub.f32 %v2020_v12, %v2036_v61 }
 0x4bf   : > { %v2137_v63 = vmul.f32 %v5136_v21, %v2115_v37  ;;  %v1969_v55 = vpop.xlane.xlu1 %1968  ;;  %v1920_v59 = vpop.xlane.xlu0 %1919  ;;  %v2190_v52 = vmul.f32 0.044715, %v5159_v23 }
 0x4c0   : > { %v3731_v50 = vpop.eup %3730  ;;  %v2134_v19 = vmul.f32 %v5136_v21, %v2112_v47  ;;  %v2087_v35 = vadd.f32 1e-05, %v2055_v13  ;;  %v2021_v11 = vmul.f32 0.03125, %v1969_v55  ;;  %v2084_v32 = vadd.f32 1e-05, %v2052_v56 }
 0x4c1   : > { %v5171_v42 = vadd.f32 %v5145_v34, %v2137_v63  ;;  %v2113_v2 = vmul.f32 %v3731_v50, %v2065_v57  ;;  %v2206_v0 = vmul.f32 %v2190_v52, %v5159_v23  ;;  %v5185_v47 = vmul.f32 0.03125, %v1920_v59 }
 0x4c2   : > { %v5174_v41 = vadd.f32 %v5145_v34, %v2134_v19  ;;  %3734 = vrsqrt.f32 %v2087_v35  ;;  %v2053_v54 = vsub.f32 %v2021_v11, %v2037_v29  ;;  %v2070_v59 = vsub.f32 %v4965_v46, %v5130_v60 }
 0x4c3   : > { %v2135_v5 = vmul.f32 %v5136_v21, %v2113_v2  ;;  %v1923_v25 = vpop.xlane.xlu1 %1922  ;;  %v1914_v8 = vpop.xlane.xlu0 %1913  ;;  %v2191_v53 = vmul.f32 0.044715, %v5171_v42  ;;  %v2222_v48 = vmul.f32 %v2206_v0, %v5159_v23  ;;  %3736 = vrsqrt.f32 %v2084_v32 }
 0x4c4   : > { %v2085_v24 = vadd.f32 1e-05, %v2053_v54  ;;  %v2188_v28 = vmul.f32 0.044715, %v5174_v41  ;;  %v5189_v13 = vmul.f32 0.03125, %v1923_v25  ;;  %v2042_v52 = vmul.f32 %v5185_v47, %v5185_v47 }
 0x4c5   : > { %v5180_v33 = vadd.f32 %v5145_v34, %v2135_v5  ;;  %v2207_v37 = vmul.f32 %v2191_v53, %v5171_v42  ;;  %v2238_v63 = vadd.f32 %v2222_v48, %v5159_v23  ;;  %v5199_v11 = vmul.f32 0.03125, %v1914_v8 }
 0x4c6   : > { %v2204_v29 = vmul.f32 %v2188_v28, %v5174_v41  ;;  %3738 = vrsqrt.f32 %v2085_v24  ;;  %v2043_v53 = vmul.f32 %v5189_v13, %v5189_v13  ;;  %v2071_v60 = vsub.f32 %v4973_v1, %v5138_v49 }
 0x4c7   : > { %v1917_v61 = vpop.xlane.xlu1 %1916  ;;  %v1984_v12 = vpop.xlane.xlu0 %1983  ;;  %v2223_v57 = vmul.f32 %v2207_v37, %v5171_v42  ;;  %v2189_v19 = vmul.f32 0.044715, %v5180_v33  ;;  %v2254_v55 = vmul.f32 0.7978846, %v2238_v63  ;;  %v2040_v1 = vmul.f32 %v5199_v11, %v5199_v11 }
 0x4c8   : > { %v2026_v50 = vmul.f32 0.03125, %v1984_v12  ;;  %v2220_v54 = vmul.f32 %v2204_v29, %v5174_v41  ;;  %v5206_v37 = vmul.f32 0.03125, %v1917_v61  ;;  %v2072_v58 = vsub.f32 %v5004_v43, %v5199_v11 }
 0x4c9   : > { %v2239_v56 = vadd.f32 %v2223_v57, %v5171_v42  ;;  %v2205_v2 = vmul.f32 %v2189_v19, %v5180_v33  ;;  %3740 = vtanh.f32 %v2254_v55 }
 0x4ca   : > { %v2058_v24 = vsub.f32 %v2026_v50, %v2042_v52  ;;  %v2236_v57 = vadd.f32 %v2220_v54, %v5174_v41  ;;  %v2041_v61 = vmul.f32 %v5206_v37, %v5206_v37  ;;  %v2073_v22 = vsub.f32 %v5010_v36, %v5206_v37 }
 0x4cb   : > { %v3733_v35 = vpop.eup %3732  ;;  %v1987_v0 = vpop.xlane.xlu1 %1986  ;;  %v2255_v32 = vmul.f32 0.7978846, %v2239_v56  ;;  %v2221_v8 = vmul.f32 %v2205_v2, %v5180_v33 }
 0x4cc   : > { %v1978_v5 = vpop.xlane.xlu0 %1977  ;;  %v2118_v25 = vmul.f32 %v3733_v35, %v2070_v59  ;;  %v2027_v46 = vmul.f32 0.03125, %v1987_v0  ;;  %v2090_v49 = vadd.f32 1e-05, %v2058_v24  ;;  %v2252_v0 = vmul.f32 0.7978846, %v2236_v57 }
 0x4cd   : > { %3742 = vtanh.f32 %v2255_v32  ;;  %v2024_v12 = vmul.f32 0.03125, %v1978_v5  ;;  %v2237_v50 = vadd.f32 %v2221_v8, %v5180_v33  ;;  %v2068_v24 = vsub.f32 %v4968_v31, %v5147_v18 }
 0x4ce   : > { %v2140_v48 = vmul.f32 %v5136_v21, %v2118_v25  ;;  %v2059_v28 = vsub.f32 %v2027_v46, %v2043_v53  ;;  %3744 = vrsqrt.f32 %v2090_v49  ;;  %v2069_v57 = vsub.f32 %v4976_v39, %v5156_v20 }
 0x4cf   : > { %v3735_v63 = vpop.eup %3734  ;;  %v1981_v19 = vpop.xlane.xlu1 %1980  ;;  %v2056_v35 = vsub.f32 %v2024_v12, %v2040_v1  ;;  %v2253_v53 = vmul.f32 0.7978846, %v2237_v50  ;;  %v3594_v50 = vld [vmem:[%s5928_s13 + $0x8] sm:$0xff]   ;;  %v2174_v20 = vmul.f32 0.5, %v5159_v23 }
 0x4d0   : > { %v1932_v29 = vpop.xlane.xlu0 %1931  ;;  %v2119_v56 = vmul.f32 %v3735_v63, %v2071_v60  ;;  %v2091_v55 = vadd.f32 1e-05, %v2059_v28  ;;  %v2025_v59 = vmul.f32 0.03125, %v1981_v19  ;;  %v5217_v52 = vadd.f32 %v5145_v34, %v2140_v48  ;;  %v3737_v5 = vpop.eup %3736  ;;  %3431 = vmatprep.subr.bf16.mxu1 %v3594_v50 }
 0x4d1   : > { %v2116_v48 = vmul.f32 %v3737_v5, %v2068_v24  ;;  %v2088_v28 = vadd.f32 1e-05, %v2056_v35  ;;  %v5230_v19 = vmul.f32 0.03125, %v1932_v29  ;;  %v2175_v29 = vmul.f32 0.5, %v5171_v42  ;;  %3432 = vmatpush3.bf16.msra.mxu1 %v3594_v50 }
 0x4d2   : > { %v2141_v2 = vmul.f32 %v5136_v21, %v2119_v56  ;;  %v2057_v32 = vsub.f32 %v2025_v59, %v2041_v61  ;;  %3746 = vrsqrt.f32 %v2091_v55  ;;  %v2194_v12 = vmul.f32 0.044715, %v5217_v52 }
 0x4d3   : > { %v1935_v54 = vpop.xlane.xlu1 %1934  ;;  %v3739_v8 = vpop.eup %3738  ;;  %3748 = vtanh.f32 %v2252_v0  ;;  %v2138_v35 = vmul.f32 %v5136_v21, %v2116_v48 }
 0x4d4   : > { %v1926_v25 = vpop.xlane.xlu0 %1925  ;;  %v5223_v46 = vadd.f32 %v5145_v34, %v2141_v2  ;;  %v2089_v63 = vadd.f32 1e-05, %v2057_v32  ;;  %3750 = vtanh.f32 %v2253_v53  ;;  %v2117_v39 = vmul.f32 %v3739_v8, %v2069_v57 }
 0x4d5   : > { %v5225_v60 = vmul.f32 0.03125, %v1926_v25  ;;  %3752 = vrsqrt.f32 %v2088_v28  ;;  %v2210_v5 = vmul.f32 %v2194_v12, %v5217_v52  ;;  %v2046_v32 = vmul.f32 %v5230_v19, %v5230_v19 }
 0x4d6   : > { %v3741_v56 = vpop.eup %3740  ;;  %v2195_v55 = vmul.f32 0.044715, %v5223_v46  ;;  %3754 = vrsqrt.f32 %v2089_v63  ;;  %v2139_v28 = vmul.f32 %v5136_v21, %v2117_v39 }
 0x4d7   : > { %v1929_v31 = vpop.xlane.xlu1 %1928  ;;  %v2044_v1 = vmul.f32 %v5225_v60, %v5225_v60  ;;  %v2286_v59 = vadd.f32 1.0, %v3741_v56  ;;  %v2226_v56 = vmul.f32 %v2210_v5, %v5217_v52  ;;  %v2074_v5 = vsub.f32 %v4992_v45, %v5185_v47 }
 0x4d8   : > { %v1990_v18 = vpop.xlane.xlu0 %1989  ;;  %v5237_v49 = vmul.f32 0.03125, %v1929_v31  ;;  %v2211_v23 = vmul.f32 %v2195_v55, %v5223_v46  ;;  %v5250_v31 = vmul.f32 0.03125, %v1935_v54  ;;  %v3595_v54 = vld [vmem:[%s5928_s13] sm:$0xff]   ;;  %v2172_v45 = vmul.f32 0.5, %v5174_v41 }
 0x4d9   : > { %v2028_v61 = vmul.f32 0.03125, %v1990_v18  ;;  %v2302_v12 = vmul.f32 %v2286_v59, %v2174_v20  ;;  %v5261_v20 = vadd.f32 %v5145_v34, %v2139_v28  ;;  %3433 = vmatprep.subr.bf16.mxu1 %v3595_v54 }
 0x4da   : > { %v3743_v2 = vpop.eup %3742  ;;  %v2045_v42 = vmul.f32 %v5237_v49, %v5237_v49  ;;  %3434 = vmatpush3.bf16.msra.mxu1 %v3595_v54 }
 0x4db   : > { %v2060_v0 = vsub.f32 %v2028_v61, %v2044_v1  ;;  %v1993_v25 = vpop.xlane.xlu1 %1992  ;;  %v2287_v24 = vadd.f32 1.0, %v3743_v2  ;;  %v5254_v1 = vadd.f32 %v5145_v34, %v2138_v35  ;;  %v2227_v2 = vmul.f32 %v2211_v23, %v5223_v46  ;;  %v3745_v39 = vpop.eup %3744 }
 0x4dc   : > { %v1996_v53 = vpop.xlane.xlu0 %1995  ;;  %v2029_v57 = vmul.f32 0.03125, %v1993_v25  ;;  %v2193_v47 = vmul.f32 0.044715, %v5261_v20 }
 0x4dd   : > { %v2092_v8 = vadd.f32 1e-05, %v2060_v0  ;;  %v2030_v48 = vmul.f32 0.03125, %v1996_v53  ;;  %v2303_v63 = vmul.f32 %v2287_v24, %v2175_v29  ;;  %v2047_v29 = vmul.f32 %v5250_v31, %v5250_v31 }
 0x4de   : > { %v2061_v18 = vsub.f32 %v2029_v57, %v2045_v42  ;;  %v2243_v23 = vadd.f32 %v2227_v2, %v5223_v46  ;;  %v2192_v42 = vmul.f32 0.044715, %v5254_v1  ;;  %v2075_v57 = vsub.f32 %v5001_v14, %v5189_v13 }
 0x4df   : > { %v2062_v50 = vsub.f32 %v2030_v48, %v2046_v32  ;;  %v1999_v61 = vpop.xlane.xlu1 %1998  ;;  %v3512_v55 = vpack.i.bf16 %v2303_v63, %v2302_v12  ;;  %3756 = vrsqrt.f32 %v2092_v8  ;;  %v3747_v35 = vpop.eup %3746  ;;  %v2242_v32 = vadd.f32 %v2226_v56, %v5217_v52 }
 0x4e0   : > { %v2093_v0 = vadd.f32 1e-05, %v2061_v18  ;;  %v2031_v59 = vmul.f32 0.03125, %v1999_v61  ;;  %v3749_v53 = vpop.eup %3748  ;;  %v2122_v48 = vmul.f32 %v3745_v39, %v2074_v5  ;;  %v2123_v12 = vmul.f32 %v3747_v35, %v2075_v57 }
 0x4e1   : > { %v2094_v25 = vadd.f32 1e-05, %v2062_v50  ;;  %3513 = vrot.lane.b32.xlu1 %v3512_v55, %s3885_s1  ;;  %v3751_v8 = vpop.eup %3750  ;;  %v2173_v63 = vmul.f32 0.5, %v5180_v33  ;;  %v2284_v18 = vadd.f32 1.0, %v3749_v53  ;;  %v2258_v50 = vmul.f32 0.7978846, %v2242_v32 }
 0x4e2   : > { %3758 = vrsqrt.f32 %v2093_v0  ;;  %v2063_v24 = vsub.f32 %v2031_v59, %v2047_v29  ;;  %v3753_v56 = vpop.eup %3752  ;;  %v2285_v61 = vadd.f32 1.0, %v3751_v8  ;;  %v2259_v14 = vmul.f32 0.7978846, %v2243_v23 }
 0x4e3   : > { %3760 = vrsqrt.f32 %v2094_v25  ;;  %v2208_v13 = vmul.f32 %v2192_v42, %v5254_v1  ;;  %v3755_v55 = vpop.eup %3754  ;;  %v2300_v41 = vmul.f32 %v2284_v18, %v2172_v45  ;;  %v2209_v33 = vmul.f32 %v2193_v47, %v5261_v20 }
 0x4e4   : > { %v2095_v28 = vadd.f32 1e-05, %v2063_v24  ;;  %v2301_v2 = vmul.f32 %v2285_v61, %v2173_v63  ;;  %v2145_v0 = vmul.f32 %v5136_v21, %v2123_v12  ;;  %v2120_v25 = vmul.f32 %v3753_v56, %v2072_v58 }
 0x4e5   : > { %3528 = vrot.lane.b32.xlu1 %v3527_v10, %s3884_s26  ;;  %v2144_v10 = vmul.f32 %v5136_v21, %v2122_v48  ;;  %v2121_v54 = vmul.f32 %v3755_v55, %v2073_v22  ;;  %v2224_v29 = vmul.f32 %v2208_v13, %v5254_v1  ;;  %v2225_v36 = vmul.f32 %v2209_v33, %v5261_v20 }
 0x4e6   : > { %3762 = vrsqrt.f32 %v2095_v28  ;;  %v3517_v39 = vpack.i.bf16 %v2301_v2, %v2300_v41  ;;  %v5296_v37 = vadd.f32 %v5145_v34, %v2145_v0  ;;  %v2142_v35 = vmul.f32 %v5136_v21, %v2120_v25 }
 0x4e7   : > { %3764 = vtanh.f32 %v2258_v50  ;;  %v5290_v43 = vadd.f32 %v5145_v34, %v2144_v10  ;;  %v2240_v11 = vadd.f32 %v2224_v29, %v5254_v1  ;;  %v2076_v5 = vsub.f32 %v5036_v17, %v5225_v60 }
 0x4e8   : > { %3766 = vtanh.f32 %v2259_v14  ;;  %3518 = vrot.lane.b32.xlu0 %v3517_v39, %s3885_s1  ;;  %v2077_v32 = vsub.f32 %v5042_v15, %v5237_v49  ;;  %v2143_v24 = vmul.f32 %v5136_v21, %v2121_v54  ;;  %v2241_v23 = vadd.f32 %v2225_v36, %v5261_v20 }
 0x4e9   : > { %v2256_v42 = vmul.f32 0.7978846, %v2240_v11  ;;  %v2078_v57 = vsub.f32 %v5024_v62, %v5230_v19  ;;  %v2198_v15 = vmul.f32 0.044715, %v5290_v43  ;;  %v5313_v60 = vadd.f32 %v5145_v34, %v2142_v35 }
 0x4ea   : > { %v2257_v17 = vmul.f32 0.7978846, %v2241_v23  ;;  %v2199_v45 = vmul.f32 0.044715, %v5296_v37  ;;  %v5317_v47 = vadd.f32 %v5145_v34, %v2143_v24  ;;  %v2079_v62 = vsub.f32 %v5031_v44, %v5250_v31 }
 0x4eb   : > { %3768 = vtanh.f32 %v2256_v42  ;;  %v2214_v26 = vmul.f32 %v2198_v15, %v5290_v43  ;;  %v2196_v61 = vmul.f32 0.044715, %v5313_v60  ;;  %v2178_v14 = vmul.f32 0.5, %v5217_v52 }
 0x4ec   : > { %v3757_v59 = vpop.eup %3756  ;;  %3523 = vrot.lane.b32.xlu0 %v3522_v7, %s3884_s26  ;;  %3770 = vtanh.f32 %v2257_v17  ;;  %v2215_v12 = vmul.f32 %v2199_v45, %v5296_v37  ;;  %v2197_v55 = vmul.f32 0.044715, %v5317_v47  ;;  %v2179_v33 = vmul.f32 0.5, %v5223_v46 }
 0x4ed   : > { %v2124_v48 = vmul.f32 %v3757_v59, %v2076_v5  ;;  %v2230_v18 = vmul.f32 %v2214_v26, %v5290_v43  ;;  %v2212_v52 = vmul.f32 %v2196_v61, %v5313_v60  ;;  %v2176_v15 = vmul.f32 0.5, %v5254_v1 }
 0x4ee   : > { %v2231_v56 = vmul.f32 %v2215_v12, %v5296_v37  ;;  %v2213_v36 = vmul.f32 %v2197_v55, %v5317_v47  ;;  %v2177_v26 = vmul.f32 0.5, %v5261_v20  ;;  %v5946_v1 = vpack.i.bf16 %v4474_v30, %v4472_v4 }
 0x4ef   : > { %v3759_v53 = vpop.eup %3758  ;;  %v2146_v7 = vmul.f32 %v5136_v21, %v2124_v48  ;;  %v2246_v13 = vadd.f32 %v2230_v18, %v5290_v43  ;;  %v2228_v11 = vmul.f32 %v2212_v52, %v5313_v60 }
 0x4f0   : > { %v3761_v8 = vpop.eup %3760  ;;  %v2125_v28 = vmul.f32 %v3759_v53, %v2077_v32  ;;  %v2247_v2 = vadd.f32 %v2231_v56, %v5296_v37  ;;  %v2229_v32 = vmul.f32 %v2213_v36, %v5317_v47 }
 0x4f1   : > { %v2126_v49 = vmul.f32 %v3761_v8, %v2078_v57  ;;  %v5334_v22 = vadd.f32 %v5145_v34, %v2146_v7  ;;  %v2244_v53 = vadd.f32 %v2228_v11, %v5313_v60 }
 0x4f2   : > { %v2147_v19 = vmul.f32 %v5136_v21, %v2125_v28  ;;  %v2263_v29 = vmul.f32 0.7978846, %v2247_v2  ;;  %v2245_v57 = vadd.f32 %v2229_v32, %v5317_v47  ;;  %v2182_v2 = vmul.f32 0.5, %v5290_v43 }
 0x4f3   : > { %v3763_v51 = vpop.eup %3762  ;;  %v2148_v50 = vmul.f32 %v5136_v21, %v2126_v49  ;;  %v2200_v46 = vmul.f32 0.044715, %v5334_v22  ;;  %v2260_v48 = vmul.f32 0.7978846, %v2244_v53  ;;  %v2181_v43 = vmul.f32 0.5, %v5317_v47 }
 0x4f4   : > { %v2127_v63 = vmul.f32 %v3763_v51, %v2079_v62  ;;  %v3765_v44 = vpop.eup %3764  ;;  %v5337_v10 = vadd.f32 %v5145_v34, %v2147_v19  ;;  %v2261_v7 = vmul.f32 0.7978846, %v2245_v57  ;;  %v2184_v47 = vmul.f32 0.5, %v5334_v22 }
 0x4f5   : > { %v3767_v58 = vpop.eup %3766  ;;  %v2290_v41 = vadd.f32 1.0, %v3765_v44  ;;  %v5343_v25 = vadd.f32 %v5145_v34, %v2148_v50  ;;  %v2216_v24 = vmul.f32 %v2200_v46, %v5334_v22 }
 0x4f6   : > { %v2149_v31 = vmul.f32 %v5136_v21, %v2127_v63  ;;  %v2291_v0 = vadd.f32 1.0, %v3767_v58  ;;  %v2262_v21 = vmul.f32 0.7978846, %v2246_v13  ;;  %v2201_v35 = vmul.f32 0.044715, %v5337_v10 }
 0x4f7   : > { %v2306_v39 = vmul.f32 %v2290_v41, %v2178_v14  ;;  %v2202_v42 = vmul.f32 0.044715, %v5343_v25  ;;  %v2232_v49 = vmul.f32 %v2216_v24, %v5334_v22 }
 0x4f8   : > { %v5346_v54 = vadd.f32 %v5145_v34, %v2149_v31  ;;  %v2307_v59 = vmul.f32 %v2291_v0, %v2179_v33  ;;  %3772 = vtanh.f32 %v2262_v21  ;;  %v3769_v34 = vpop.eup %3768  ;;  %v2217_v23 = vmul.f32 %v2201_v35, %v5337_v10  ;;  %v5947_v21 = vld [vmem:[#allocation2_spill] sm:$0xff] }
 0x4f9   : > { %3774 = vtanh.f32 %v2263_v29  ;;  %v2288_v8 = vadd.f32 1.0, %v3769_v34  ;;  %v3771_v17 = vpop.eup %3770  ;;  %v2218_v62 = vmul.f32 %v2202_v42, %v5343_v25  ;;  %v2248_v19 = vadd.f32 %v2232_v49, %v5334_v22  ;;  %v3469_v22 = vpop.permute.xlu1 %3468 }
 0x4fa   : > { %v3532_v5 = vpack.i.bf16 %v2307_v59, %v2306_v39  ;;  %v2203_v28 = vmul.f32 0.044715, %v5346_v54  ;;  %v2233_v45 = vmul.f32 %v2217_v23, %v5337_v10  ;;  %v2289_v51 = vadd.f32 1.0, %v3771_v17 }
 0x4fb   : > { %3776 = vtanh.f32 %v2260_v48  ;;  %v2234_v18 = vmul.f32 %v2218_v62, %v5343_v25  ;;  %v2304_v50 = vmul.f32 %v2288_v8, %v2176_v15  ;;  %v2264_v20 = vmul.f32 0.7978846, %v2248_v19  ;;  %v3464_v62 = vpop.permute.xlu0 %3463 }
 0x4fc   : > { %3533 = vrot.lane.b32.xlu1 %v3532_v5, %s3885_s1  ;;  %v2249_v12 = vadd.f32 %v2233_v45, %v5337_v10  ;;  %v2219_v63 = vmul.f32 %v2203_v28, %v5346_v54  ;;  %v2305_v56 = vmul.f32 %v2289_v51, %v2177_v26  ;;  %3778 = vtanh.f32 %v2261_v7 }
 0x4fd   : > { %v2250_v31 = vadd.f32 %v2234_v18, %v5343_v25  ;;  %3780 = vtanh.f32 %v2264_v20  ;;  %v2183_v33 = vmul.f32 0.5, %v5296_v37  ;;  %v5948_v52 = vpack.i.bf16 %v4464_v38, %v5947_v21  ;;  %v3474_v45 = vpop.permute.xlu1 %3473 }
 0x4fe   : > { %v2265_v61 = vmul.f32 0.7978846, %v2249_v12  ;;  %v2235_v44 = vmul.f32 %v2219_v63, %v5346_v54  ;;  %v3537_v14 = vpack.i.bf16 %v2305_v56, %v2304_v50  ;;  %v2180_v35 = vmul.f32 0.5, %v5313_v60 }
 0x4ff   : > { %v2266_v55 = vmul.f32 0.7978846, %v2250_v31  ;;  %v2185_v23 = vmul.f32 0.5, %v5337_v10  ;;  %v2186_v28 = vmul.f32 0.5, %v5343_v25  ;;  %v2187_v17 = vmul.f32 0.5, %v5346_v54  ;;  %v3484_v26 = vpop.permute.xlu0 %3483  ;;  %v5412_v31 = vld [vmem:[%s3998_s21 + $0x8] sm:$0xff] }
 0x500   : > { %3548 = vrot.lane.b32.xlu1 %v5946_v1, %s3883_s25  ;;  %v2251_v13 = vadd.f32 %v2235_v44, %v5346_v54  ;;  %3538 = vrot.lane.b32.xlu0 %v3537_v14, %s3885_s1  ;;  %3782 = vtanh.f32 %v2265_v61  ;;  %v3465_v19 = vunpack.i.l.bf16 %v3464_v62  ;;  %v3471_v12 = vunpack.i.h.bf16 %v3469_v22 }
 0x501   : > { %3784 = vtanh.f32 %v2266_v55  ;;  %v3479_v25 = vpop.permute.xlu1 %3478  ;;  %v3470_v63 = vunpack.i.l.bf16 %v3469_v22  ;;  %v3476_v56 = vunpack.i.h.bf16 %v3474_v45  ;;  %v3475_v20 = vunpack.i.l.bf16 %v3474_v45 }
 0x502   : > { %v2267_v4 = vmul.f32 0.7978846, %v2251_v13  ;;  %v3481_v1 = vunpack.i.h.bf16 %v3479_v25  ;;  %v3480_v50 = vunpack.i.l.bf16 %v3479_v25  ;;  %v5417_v13 = vld [vmem:[%s3998_s21] sm:$0xff] }
 0x503   : > { %v5405_v7 = vpop.permute.xlu0 %3493  ;;  %v2527_v55 = vsel %vm602_vm0, %v5417_v13, %v3465_v19 }
 0x504   : > { %3786 = vtanh.f32 %v2267_v4  ;;  %3543 = vrot.lane.b32.xlu0 %v5948_v52, %s3883_s25 }
 0x505   : > { %v3773_v58 = vpop.eup %3772  ;;  %v5401_v54 = vpop.permute.xlu1 %3488 }
 0x506   : > { %v3775_v30 = vpop.eup %3774  ;;  %v2294_v41 = vadd.f32 1.0, %v3773_v58  ;;  %v5422_v58 = vld [vmem:[%s3998_s21 + $0x18] sm:$0xff] }
 0x507   : > { %v2295_v0 = vadd.f32 1.0, %v3775_v30  ;;  %v5409_v18 = vpop.permute.xlu0 %3503  ;;  %v2530_v4 = vsel %vm602_vm0, %v5422_v58, %v3471_v12  ;;  %v5427_v30 = vld [vmem:[%s3998_s21 + $0x10] sm:$0xff] }
 0x508   : > { %v2310_v39 = vmul.f32 %v2294_v41, %v2182_v2  ;;  %v3777_v59 = vpop.eup %3776  ;;  %v2529_v41 = vsel %vm602_vm0, %v5427_v30, %v3470_v63 }
 0x509   : > { %v2311_v29 = vmul.f32 %v2295_v0, %v2183_v33  ;;  %v2292_v11 = vadd.f32 1.0, %v3777_v59  ;;  %v3779_v46 = vpop.eup %3778  ;;  %v5403_v51 = vpop.permute.xlu1 %3498  ;;  %v2546_v33 = vsel %vm2543_vm1, %v2529_v41, %v3480_v50  ;;  %v2547_v0 = vsel %vm2543_vm1, %v2530_v4, %v3481_v1 }
 0x50a   : > { %v2293_v37 = vadd.f32 1.0, %v3779_v46  ;;  %v3781_v5 = vpop.eup %3780  ;;  %v3506_v50 = vunpack.i.h.bf16 %v5409_v18 }
 0x50b   : > { %v3552_v36 = vpack.i.bf16 %v2311_v29, %v2310_v39  ;;  %v2308_v32 = vmul.f32 %v2292_v11, %v2180_v35  ;;  %v2296_v42 = vadd.f32 1.0, %v3781_v5  ;;  %v2544_v39 = vsel %vm2543_vm1, %v2527_v55, %v3475_v20 }
 0x50c   : > { %v2309_v53 = vmul.f32 %v2293_v37, %v2181_v43 }
 0x50d   : > { %3553 = vrot.lane.b32.xlu1 %v3552_v36, %s3885_s1  ;;  %v3783_v34 = vpop.eup %3782  ;;  %v2312_v40 = vmul.f32 %v2296_v42, %v2184_v47  ;;  %v5407_v3 = vpop.permute.xlu1 %3508  ;;  %v3500_v42 = vunpack.i.l.bf16 %v5403_v51 }
 0x50e   : > { %v3785_v38 = vpop.eup %3784  ;;  %v3557_v24 = vpack.i.bf16 %v2309_v53, %v2308_v32  ;;  %v2297_v8 = vadd.f32 1.0, %v3783_v34  ;;  %v3486_v32 = vunpack.i.h.bf16 %v3484_v26  ;;  %v3485_v53 = vunpack.i.l.bf16 %v3484_v26 }
 0x50f   : > { %v2298_v57 = vadd.f32 1.0, %v3785_v38  ;;  %v3491_v34 = vunpack.i.h.bf16 %v5401_v54  ;;  %v3490_v38 = vunpack.i.l.bf16 %v5401_v54  ;;  %v3511_v20 = vunpack.i.h.bf16 %v5407_v3 }
 0x510   : > { %3558 = vrot.lane.b32.xlu0 %v3557_v24, %s3885_s1  ;;  %v2313_v48 = vmul.f32 %v2297_v8, %v2185_v23  ;;  %v3501_v23 = vunpack.i.h.bf16 %v5403_v51  ;;  %v3496_v8 = vunpack.i.h.bf16 %v5405_v7 }
 0x511   : > { %3568 = vrot.lane.b32.xlu1 %v3567_v27, %s3884_s26  ;;  %v3787_v60 = vpop.eup %3786  ;;  %v2314_v16 = vmul.f32 %v2298_v57, %v2186_v28  ;;  %v3495_v57 = vunpack.i.l.bf16 %v5405_v7 }
 0x512   : > { %v2299_v15 = vadd.f32 1.0, %v3787_v60  ;;  %v3572_v10 = vpack.i.bf16 %v2313_v48, %v2312_v40  ;;  %v5446_v48 = vld [vmem:[%s3998_s21 + $0x28] sm:$0xff]  ;;  %v5456_v40 = vld [vmem:[%s3998_s21 + $0x38] sm:$0xff] }
 0x513   : > { %v2532_v28 = vsel %vm602_vm0, %v5446_v48, %v3486_v32 }
 0x514   : > { %v2315_v27 = vmul.f32 %v2299_v15, %v2187_v17  ;;  %3563 = vrot.lane.b32.xlu0 %v3562_v6, %s3884_s26  ;;  %v3466_v6 = vunpack.i.h.bf16 %v3464_v62  ;;  %v5451_v17 = vld [vmem:[%s3998_s21 + $0x20] sm:$0xff]  ;;  %v2549_v26 = vsel %vm2543_vm1, %v2532_v28, %v3496_v8 }
 0x515   : > { %v2531_v15 = vsel %vm602_vm0, %v5451_v17, %v3485_v53 }
 0x516   : > { %v3577_v49 = vpack.i.bf16 %v2315_v27, %v2314_v16  ;;  %v2528_v14 = vsel %vm602_vm0, %v5412_v31, %v3466_v6  ;;  %v2534_v16 = vsel %vm602_vm0, %v5456_v40, %v3491_v34  ;;  %v5461_v27 = vld [vmem:[%s3998_s21 + $0x30] sm:$0xff]  ;;  %v2548_v54 = vsel %vm2543_vm1, %v2531_v15, %v3495_v57 }
 0x517   : > { %v2545_v29 = vsel %vm2543_vm1, %v2528_v14, %v3476_v56  ;;  %v2551_v45 = vsel %vm2543_vm1, %v2534_v16, %v3501_v23  ;;  %v3505_v56 = vunpack.i.l.bf16 %v5409_v18 }
 0x518   : > { %3578 = vrot.lane.b32.xlu1 %v3577_v49, %s3885_s1  ;;  %3573 = vrot.lane.b32.xlu0 %v3572_v10, %s3885_s1  ;;  %v2533_v10 = vsel %vm602_vm0, %v5461_v27, %v3490_v38 }
 0x519   : > { %v2550_v22 = vsel %vm2543_vm1, %v2533_v10, %v3500_v42 }
 0x553   : > { %v3514_v9 = vpop.permute.xlu1 %3513 }
 0x554   : > { %v3516_v61 = vunpack.i.h.bf16 %v3514_v9  ;;  %v3515_v44 = vunpack.i.l.bf16 %v3514_v9 }
 0x556   : > { %v2564_v59 = vsel %vm2560_vm2, %v2547_v0, %v3516_v61  ;;  %v2563_v36 = vsel %vm2560_vm2, %v2546_v33, %v3515_v44  ;;  %v3510_v61 = vunpack.i.l.bf16 %v5407_v3  ;;  %v3860_v0 = vld [vmem:[%s3998_s21 + $0x48] sm:$0xff] }
 0x557   : > { %v2578_v43 = vpack.c.bf16 %v2564_v59, %v2563_v36  ;;  %v3529_v37 = vpop.permute.xlu1 %3528  ;;  %v5484_v59 = vld [vmem:[%s3998_s21 + $0x50] sm:$0xff] }
 0x558   : > { %v3531_v14 = vunpack.i.h.bf16 %v3529_v37  ;;  %v3530_v55 = vunpack.i.l.bf16 %v3529_v37  ;;  %v2537_v3 = vsel %vm602_vm0, %v5484_v59, %v3510_v61 }
 0x55a   : > { %v3519_v2 = vpop.permute.xlu0 %3518 }
 0x55b   : > { %v3521_v21 = vunpack.i.h.bf16 %v3519_v2  ;;  %v3520_v52 = vunpack.i.l.bf16 %v3519_v2 }
 0x55d   : > { %v2561_v11 = vsel %vm2560_vm2, %v2544_v39, %v3520_v52  ;;  %v2562_v46 = vsel %vm2560_vm2, %v2545_v29, %v3521_v21  ;;  %v2536_v21 = vsel %vm602_vm0, %v3860_v0, %v3506_v50  ;;  %v3861_v52 = vld [vmem:[%s3998_s21 + $0x40] sm:$0xff]  ;;  %v3862_v29 = vld [vmem:[%s3998_s21 + $0x58] sm:$0xff] }
 0x55e   : > { %v2577_v35 = vpack.c.bf16 %v2562_v46, %v2561_v11  ;;  %v3524_v24 = vpop.permute.xlu0 %3523  ;;  %v2535_v39 = vsel %vm602_vm0, %v3861_v52, %v3505_v56  ;;  %v2538_v18 = vsel %vm602_vm0, %v3862_v29, %v3511_v20  ;;  %v2554_v46 = vsel %vm2543_vm1, %v2537_v3, %v3530_v55 }
 0x55f   : > { %v3526_v4 = vunpack.i.h.bf16 %v3524_v24  ;;  %v3525_v41 = vunpack.i.l.bf16 %v3524_v24  ;;  %v2555_v11 = vsel %vm2543_vm1, %v2538_v18, %v3531_v14 }
 0x560   : > { %3435 = vmatprep.mubr.bf16.mxu1 %v2577_v35 }
 0x561   : > { %3436 = vmatmul.mubr.bf16.vlgmr.msra.gmra.mxu1 %v2578_v43  ;;  %v2552_v37 = vsel %vm2543_vm1, %v2535_v39, %v3525_v41 }
 0x56e   : > { %v3534_v5 = vpop.permute.xlu1 %3533 }
 0x56f   : > { %v3536_v60 = vunpack.i.h.bf16 %v3534_v5  ;;  %v3535_v47 = vunpack.i.l.bf16 %v3534_v5  ;;  %v2553_v5 = vsel %vm2543_vm1, %v2536_v21, %v3526_v4 }
 0x571   : > { %v2567_v51 = vsel %vm2560_vm2, %v2550_v22, %v3535_v47  ;;  %v2568_v7 = vsel %vm2560_vm2, %v2551_v45, %v3536_v60  ;;  %v3864_v22 = vld [vmem:[%s3998_s21 + $0x78] sm:$0xff] }
 0x572   : > { %v3539_v49 = vpop.permute.xlu0 %3538  ;;  %v2580_v12 = vpack.c.bf16 %v2568_v7, %v2567_v51  ;;  %v3549_v63 = vpop.permute.xlu1 %3548  ;;  %v3867_v7 = vld [vmem:[%s3998_s21 + $0x60] sm:$0xff] }
 0x573   : > { %v3541_v25 = vunpack.i.h.bf16 %v3539_v49  ;;  %v3540_v62 = vunpack.i.l.bf16 %v3539_v49  ;;  %v3551_v38 = vunpack.i.h.bf16 %v3549_v63  ;;  %v3550_v24 = vunpack.i.l.bf16 %v3549_v63 }
 0x575   : > { %v2565_v9 = vsel %vm2560_vm2, %v2548_v54, %v3540_v62  ;;  %v2566_v6 = vsel %vm2560_vm2, %v2549_v26, %v3541_v25  ;;  %v2542_v45 = vsel %vm602_vm0, %v3864_v22, %v3551_v38  ;;  %v3865_v25 = vld [vmem:[%s3998_s21 + $0x70] sm:$0xff]  ;;  %v3866_v26 = vld [vmem:[%s3998_s21 + $0x68] sm:$0xff] }
 0x576   : > { %v2579_v19 = vpack.c.bf16 %v2566_v6, %v2565_v9  ;;  %v3544_v44 = vpop.permute.xlu0 %3543  ;;  %v2541_v62 = vsel %vm602_vm0, %v3865_v25, %v3550_v24 }
 0x577   : > { %v3546_v8 = vunpack.i.h.bf16 %v3544_v44  ;;  %v3545_v57 = vunpack.i.l.bf16 %v3544_v44 }
 0x578   : > { %3439 = vmatprep.mubr.bf16.mxu1 %v2579_v19 }
 0x579   : > { %3440 = vmatmul.mubr.bf16.gmra.mxu1 %v2580_v12  ;;  %v2540_v51 = vsel %vm602_vm0, %v3866_v26, %v3546_v8  ;;  %v2539_v9 = vsel %vm602_vm0, %v3867_v7, %v3545_v57 }
 0x57f   : > { %v3554_v1 = vpop.permute.xlu1 %3553 }
 0x580   : > { %v3556_v2 = vunpack.i.h.bf16 %v3554_v1  ;;  %v3555_v33 = vunpack.i.l.bf16 %v3554_v1 }
 0x582   : > { %v3559_v36 = vpop.permute.xlu0 %3558  ;;  %v2571_v53 = vsel %vm2560_vm2, %v2554_v46, %v3555_v33  ;;  %v2572_v34 = vsel %vm2560_vm2, %v2555_v11, %v3556_v2  ;;  %v5515_v33 = vld [vmem:[%s5929_s14] ss:$0 sm:$0xff] }
 0x583   : > { %v3561_v35 = vunpack.i.h.bf16 %v3559_v36  ;;  %v3560_v43 = vunpack.i.l.bf16 %v3559_v36  ;;  %v3569_v32 = vpop.permute.xlu1 %3568  ;;  %v2582_v16 = vpack.c.bf16 %v2572_v34, %v2571_v53 }
 0x584   : > { %v3571_v28 = vunpack.i.h.bf16 %v3569_v32  ;;  %v3570_v15 = vunpack.i.l.bf16 %v3569_v32 }
 0x585   : > { %v2569_v23 = vsel %vm2560_vm2, %v2552_v37, %v3560_v43  ;;  %v2570_v42 = vsel %vm2560_vm2, %v2553_v5, %v3561_v35 }
 0x586   : > { %v3564_v60 = vpop.permute.xlu0 %3563  ;;  %v2581_v47 = vpack.c.bf16 %v2570_v42, %v2569_v23  ;;  %v2559_v63 = vsel %vm2543_vm1, %v2542_v45, %v3571_v28  ;;  %v2558_v1 = vsel %vm2543_vm1, %v2541_v62, %v3570_v15 }
 0x587   : > { %v3566_v10 = vunpack.i.h.bf16 %v3564_v60  ;;  %v3565_v49 = vunpack.i.l.bf16 %v3564_v60 }
 0x588   : > { %3443 = vmatprep.mubr.bf16.mxu1 %v2581_v47 }
 0x589   : > { %3444 = vmatmul.mubr.bf16.gmra.mxu1 %v2582_v16  ;;  %v2556_v20 = vsel %vm2543_vm1, %v2539_v9, %v3565_v49  ;;  %v2557_v61 = vsel %vm2543_vm1, %v2540_v51, %v3566_v10 }
 0x58a   : > { %v3579_v54 = vpop.permute.xlu1 %3578  ;;  %v3574_v6 = vpop.permute.xlu0 %3573 }
 0x58b   : > { %v3581_v19 = vunpack.i.h.bf16 %v3579_v54  ;;  %v3580_v12 = vunpack.i.l.bf16 %v3579_v54  ;;  %v3576_v50 = vunpack.i.h.bf16 %v3574_v6  ;;  %v3575_v56 = vunpack.i.l.bf16 %v3574_v6 }
 0x58d   : > { %v2575_v44 = vsel %vm2560_vm2, %v2558_v1, %v3580_v12  ;;  %v2576_v14 = vsel %vm2560_vm2, %v2559_v63, %v3581_v19  ;;  %v2573_v55 = vsel %vm2560_vm2, %v2556_v20, %v3575_v56  ;;  %v2574_v4 = vsel %vm2560_vm2, %v2557_v61, %v3576_v50 }
 0x58e   : > { %v2584_v41 = vpack.c.bf16 %v2576_v14, %v2575_v44  ;;  %v2583_v2 = vpack.c.bf16 %v2574_v4, %v2573_v55 }
 0x590   : > { %3447 = vmatprep.mubr.bf16.mxu1 %v2583_v2 }
 0x591   : > { %3448 = vmatmul.mubr.bf16.gmra.mxu1 %v2584_v41 }
 0x621   : > { %v3437_v0 = vpop.f32.mrf.mxu1 }
 0x622   : > { %v5518_v21 = vadd.f32 %v3437_v0, %v5515_v33 }
 0x623   : > { %v2673_v52 = vpop.f32.mrf.mxu1 }
 0x624   : > { %v5521_v39 = vadd.f32 %v5515_v33, %v2673_v52  ;;  %v2742_v29 = vsel %vm602_vm0, %v5518_v21, 0.0  ;;  %v2786_v35 = vmul.f32 %v5518_v21, %v5518_v21 }
 0x625   : > { %2743 = vadd.xlane.f32.xlu0 %v2742_v29  ;;  %v3438_v18 = vpop.f32.mrf.mxu1 }
 0x626   : > { %v5526_v3 = vadd.f32 %v3438_v18, %v5515_v33  ;;  %v2736_v46 = vsel %vm602_vm0, %v5521_v39, 0.0  ;;  %v2806_v5 = vsel %vm602_vm0, %v2786_v35, 0.0  ;;  %v2784_v38 = vmul.f32 %v5521_v39, %v5521_v39 }
 0x627   : > { %v2676_v36 = vpop.f32.mrf.mxu1 }
 0x628   : > { %v5529_v11 = vadd.f32 %v5515_v33, %v2676_v36  ;;  %v2787_v37 = vmul.f32 %v5526_v3, %v5526_v3  ;;  %v2745_v34 = vsel %vm602_vm0, %v5526_v3, 0.0  ;;  %v2800_v23 = vsel %vm602_vm0, %v2784_v38, 0.0 }
 0x629   : > { %2737 = vadd.xlane.f32.xlu0 %v2736_v46 }
 0x62a   : > { %v2739_v43 = vsel %vm602_vm0, %v5529_v11, 0.0  ;;  %v2809_v32 = vsel %vm602_vm0, %v2787_v37, 0.0  ;;  %v2785_v53 = vmul.f32 %v5529_v11, %v5529_v11 }
 0x62b   : > { %2740 = vadd.xlane.f32.xlu1 %v2739_v43 }
 0x62c   : > { %v2803_v24 = vsel %vm602_vm0, %v2785_v53, 0.0 }
 0x62d   : > { %2807 = vadd.xlane.f32.xlu0 %v2806_v5 }
 0x62f   : > { %2810 = vadd.xlane.f32.xlu1 %v2809_v32 }
 0x631   : > { %2746 = vadd.xlane.f32.xlu0 %v2745_v34 }
 0x633   : > { %2804 = vadd.xlane.f32.xlu1 %v2803_v24 }
 0x635   : > { %2801 = vadd.xlane.f32.xlu0 %v2800_v23 }
 0x639   : > { %v3441_v42 = vpop.f32.mrf.mxu1 }
 0x63a   : > { %v5550_v8 = vadd.f32 %v3441_v42, %v5515_v33 }
 0x63b   : > { %v2689_v57 = vpop.f32.mrf.mxu1 }
 0x63c   : > { %v5553_v60 = vadd.f32 %v5515_v33, %v2689_v57  ;;  %v2754_v47 = vsel %vm602_vm0, %v5550_v8, 0.0  ;;  %v2790_v45 = vmul.f32 %v5550_v8, %v5550_v8 }
 0x63d   : > { %v3442_v28 = vpop.f32.mrf.mxu1  ;;  %2755 = vadd.xlane.f32.xlu0 %v2754_v47 }
 0x63e   : > { %v5558_v15 = vadd.f32 %v3442_v28, %v5515_v33  ;;  %v2748_v22 = vsel %vm602_vm0, %v5553_v60, 0.0  ;;  %v2818_v54 = vsel %vm602_vm0, %v2790_v45, 0.0  ;;  %v2788_v26 = vmul.f32 %v5553_v60, %v5553_v60 }
 0x63f   : > { %v2692_v16 = vpop.f32.mrf.mxu1 }
 0x640   : > { %v5561_v10 = vadd.f32 %v5515_v33, %v2692_v16  ;;  %v2757_v49 = vsel %vm602_vm0, %v5558_v15, 0.0  ;;  %v2791_v62 = vmul.f32 %v5558_v15, %v5558_v15  ;;  %v2812_v9 = vsel %vm602_vm0, %v2788_v26, 0.0 }
 0x641   : > { %2758 = vadd.xlane.f32.xlu1 %v2757_v49  ;;  %2749 = vadd.xlane.f32.xlu0 %v2748_v22 }
 0x642   : > { %v2751_v25 = vsel %vm602_vm0, %v5561_v10, 0.0  ;;  %v2821_v51 = vsel %vm602_vm0, %v2791_v62, 0.0  ;;  %v2789_v7 = vmul.f32 %v5561_v10, %v5561_v10 }
 0x644   : > { %v2815_v1 = vsel %vm602_vm0, %v2789_v7, 0.0 }
 0x645   : > { %2752 = vadd.xlane.f32.xlu1 %v2751_v25  ;;  %2819 = vadd.xlane.f32.xlu0 %v2818_v54 }
 0x649   : > { %v3445_v6 = vpop.f32.mrf.mxu1  ;;  %2822 = vadd.xlane.f32.xlu1 %v2821_v51  ;;  %2813 = vadd.xlane.f32.xlu0 %v2812_v9 }
 0x64a   : > { %v5581_v19 = vadd.f32 %v3445_v6, %v5515_v33 }
 0x64b   : > { %v2705_v12 = vpop.f32.mrf.mxu1 }
 0x64c   : > { %v5584_v63 = vadd.f32 %v5515_v33, %v2705_v12  ;;  %v2766_v50 = vsel %vm602_vm0, %v5581_v19, 0.0  ;;  %v2794_v4 = vmul.f32 %v5581_v19, %v5581_v19 }
 0x64d   : > { %v3446_v56 = vpop.f32.mrf.mxu1  ;;  %2816 = vadd.xlane.f32.xlu1 %v2815_v1  ;;  %2767 = vadd.xlane.f32.xlu0 %v2766_v50 }
 0x64e   : > { %v5590_v20 = vadd.f32 %v3446_v56, %v5515_v33  ;;  %v2760_v55 = vsel %vm602_vm0, %v5584_v63, 0.0  ;;  %v2830_v29 = vsel %vm602_vm0, %v2794_v4, 0.0  ;;  %v2792_v18 = vmul.f32 %v5584_v63, %v5584_v63 }
 0x64f   : > { %v2708_v61 = vpop.f32.mrf.mxu1 }
 0x650   : > { %v5593_v44 = vadd.f32 %v5515_v33, %v2708_v61  ;;  %v2769_v14 = vsel %vm602_vm0, %v5590_v20, 0.0  ;;  %v2795_v52 = vmul.f32 %v5590_v20, %v5590_v20  ;;  %v2824_v37 = vsel %vm602_vm0, %v2792_v18, 0.0 }
 0x651   : > { %2770 = vadd.xlane.f32.xlu1 %v2769_v14  ;;  %2761 = vadd.xlane.f32.xlu0 %v2760_v55  ;;  %v3449_v41 = vpop.f32.mrf.mxu1 }
 0x652   : > { %v2763_v0 = vsel %vm602_vm0, %v5593_v44, 0.0  ;;  %v5609_v46 = vadd.f32 %v3449_v41, %v5515_v33  ;;  %v2833_v35 = vsel %vm602_vm0, %v2795_v52, 0.0  ;;  %v2793_v43 = vmul.f32 %v5593_v44, %v5593_v44 }
 0x653   : > { %v2721_v2 = vpop.f32.mrf.mxu1 }
 0x654   : > { %v5619_v32 = vadd.f32 %v5515_v33, %v2721_v2  ;;  %v2827_v53 = vsel %vm602_vm0, %v2793_v43, 0.0  ;;  %v2778_v34 = vsel %vm602_vm0, %v5609_v46, 0.0 }
 0x655   : > { %2764 = vadd.xlane.f32.xlu1 %v2763_v0  ;;  %2831 = vadd.xlane.f32.xlu0 %v2830_v29  ;;  %v3450_v36 = vpop.f32.mrf.mxu1 }
 0x656   : > { %v5616_v5 = vadd.f32 %v3450_v36, %v5515_v33  ;;  %v2772_v42 = vsel %vm602_vm0, %v5619_v32, 0.0  ;;  %v2796_v57 = vmul.f32 %v5619_v32, %v5619_v32 }
 0x657   : > { %v2724_v38 = vpop.f32.mrf.mxu1 }
 0x658   : > { %v2781_v24 = vsel %vm602_vm0, %v5616_v5, 0.0  ;;  %v5627_v23 = vadd.f32 %v5515_v33, %v2724_v38  ;;  %v2836_v16 = vsel %vm602_vm0, %v2796_v57, 0.0  ;;  %v2798_v33 = vmul.f32 %v5609_v46, %v5609_v46 }
 0x659   : > { %2834 = vadd.xlane.f32.xlu1 %v2833_v35  ;;  %2825 = vadd.xlane.f32.xlu0 %v2824_v37  ;;  %v2799_v22 = vmul.f32 %v5616_v5, %v5616_v5 }
 0x65a   : > { %v2775_v47 = vsel %vm602_vm0, %v5627_v23, 0.0  ;;  %v2797_v28 = vmul.f32 %v5627_v23, %v5627_v23  ;;  %v2842_v45 = vsel %vm602_vm0, %v2798_v33, 0.0 }
 0x65b   : > { %v2845_v25 = vsel %vm602_vm0, %v2799_v22, 0.0 }
 0x65c   : > { %v2839_v49 = vsel %vm602_vm0, %v2797_v28, 0.0 }
 0x65d   : > { %2828 = vadd.xlane.f32.xlu1 %v2827_v53  ;;  %2779 = vadd.xlane.f32.xlu0 %v2778_v34 }
 0x661   : > { %2782 = vadd.xlane.f32.xlu1 %v2781_v24  ;;  %2773 = vadd.xlane.f32.xlu0 %v2772_v42 }
 0x665   : > { %2776 = vadd.xlane.f32.xlu1 %v2775_v47  ;;  %2837 = vadd.xlane.f32.xlu0 %v2836_v16  ;;  %v5649_v47 = vld [vmem:[%s5930_s15] ss:$0 sm:$0xff] }
 0x666   : > { %v5654_v16 = vld [vmem:[%s5931_s16] ss:$0 sm:$0xff] }
 0x669   : > { %2840 = vadd.xlane.f32.xlu1 %v2839_v49  ;;  %2843 = vadd.xlane.f32.xlu0 %v2842_v45 }
 0x66d   : > { %2846 = vadd.xlane.f32.xlu1 %v2845_v25 }
 0x6ae   : > { %v2744_v62 = vpop.xlane.xlu0 %2743 }
 0x6af   : > { %v2850_v26 = vmul.f32 0.03125, %v2744_v62 }
 0x6b1   : > { %v2882_v9 = vmul.f32 %v2850_v26, %v2850_v26  ;;  %v2914_v42 = vsub.f32 %v5518_v21, %v2850_v26 }
 0x6b2   : > { %v2738_v54 = vpop.xlane.xlu0 %2737 }
 0x6b3   : > { %v2848_v61 = vmul.f32 0.03125, %v2738_v54 }
 0x6b4   : > { %v2741_v51 = vpop.xlane.xlu1 %2740 }
 0x6b5   : > { %v2849_v12 = vmul.f32 0.03125, %v2741_v51  ;;  %v2880_v18 = vmul.f32 %v2848_v61, %v2848_v61 }
 0x6b6   : > { %v2808_v7 = vpop.xlane.xlu0 %2807 }
 0x6b7   : > { %v2866_v6 = vmul.f32 0.03125, %v2808_v7  ;;  %v2881_v4 = vmul.f32 %v2849_v12, %v2849_v12  ;;  %v2913_v54 = vsub.f32 %v5529_v11, %v2849_v12 }
 0x6b8   : > { %v2811_v1 = vpop.xlane.xlu1 %2810 }
 0x6b9   : > { %v2898_v50 = vsub.f32 %v2866_v6, %v2882_v9  ;;  %v2867_v2 = vmul.f32 0.03125, %v2811_v1  ;;  %v2912_v9 = vsub.f32 %v5521_v39, %v2848_v61 }
 0x6ba   : > { %v2747_v56 = vpop.xlane.xlu0 %2746 }
 0x6bb   : > { %v2930_v14 = vadd.f32 1e-05, %v2898_v50  ;;  %v2851_v55 = vmul.f32 0.03125, %v2747_v56 }
 0x6bc   : > { %v2805_v41 = vpop.xlane.xlu1 %2804 }
 0x6bd   : > { %3788 = vrsqrt.f32 %v2930_v14  ;;  %v2883_v0 = vmul.f32 %v2851_v55, %v2851_v55  ;;  %v2865_v52 = vmul.f32 0.03125, %v2805_v41  ;;  %v2915_v25 = vsub.f32 %v5526_v3, %v2851_v55 }
 0x6be   : > { %v2802_v29 = vpop.xlane.xlu0 %2801 }
 0x6bf   : > { %v2899_v36 = vsub.f32 %v2867_v2, %v2883_v0  ;;  %v2897_v35 = vsub.f32 %v2865_v52, %v2881_v4  ;;  %v2864_v43 = vmul.f32 0.03125, %v2802_v29 }
 0x6c1   : > { %v2931_v37 = vadd.f32 1e-05, %v2899_v36  ;;  %v2929_v53 = vadd.f32 1e-05, %v2897_v35  ;;  %v2896_v34 = vsub.f32 %v2864_v43, %v2880_v18 }
 0x6c3   : > { %3790 = vrsqrt.f32 %v2931_v37  ;;  %v2928_v38 = vadd.f32 1e-05, %v2896_v34 }
 0x6c4   : > { %3792 = vrsqrt.f32 %v2929_v53 }
 0x6c5   : > { %3794 = vrsqrt.f32 %v2928_v38 }
 0x6c6   : > { %v2756_v24 = vpop.xlane.xlu0 %2755 }
 0x6c7   : > { %v5657_v45 = vmul.f32 0.03125, %v2756_v24 }
 0x6c9   : > { %v2886_v4 = vmul.f32 %v5657_v45, %v5657_v45 }
 0x6ca   : > { %v3789_v57 = vpop.eup %3788  ;;  %v2759_v33 = vpop.xlane.xlu1 %2758 }
 0x6cb   : > { %v2962_v28 = vmul.f32 %v3789_v57, %v2914_v42  ;;  %v2750_v49 = vpop.xlane.xlu0 %2749  ;;  %v5666_v14 = vmul.f32 0.03125, %v2759_v33 }
 0x6cc   : > { %v5675_v39 = vmul.f32 0.03125, %v2750_v49 }
 0x6cd   : > { %v2984_v22 = vmul.f32 %v5649_v47, %v2962_v28  ;;  %v2887_v37 = vmul.f32 %v5666_v14, %v5666_v14 }
 0x6ce   : > { %v2753_v26 = vpop.xlane.xlu1 %2752  ;;  %v2884_v28 = vmul.f32 %v5675_v39, %v5675_v39 }
 0x6cf   : > { %v5660_v21 = vadd.f32 %v5654_v16, %v2984_v22  ;;  %v2820_v51 = vpop.xlane.xlu0 %2819  ;;  %v5673_v2 = vmul.f32 0.03125, %v2753_v26 }
 0x6d0   : > { %v3791_v62 = vpop.eup %3790  ;;  %v2870_v41 = vmul.f32 0.03125, %v2820_v51 }
 0x6d1   : > { %v3793_v7 = vpop.eup %3792  ;;  %v3038_v6 = vmul.f32 0.044715, %v5660_v21  ;;  %v2963_v1 = vmul.f32 %v3791_v62, %v2915_v25  ;;  %v2885_v26 = vmul.f32 %v5673_v2, %v5673_v2 }
 0x6d2   : > { %v3795_v50 = vpop.eup %3794  ;;  %v2961_v56 = vmul.f32 %v3793_v7, %v2913_v54  ;;  %v2823_v61 = vpop.xlane.xlu1 %2822  ;;  %v2902_v0 = vsub.f32 %v2870_v41, %v2886_v4 }
 0x6d3   : > { %v3054_v3 = vmul.f32 %v3038_v6, %v5660_v21  ;;  %v2985_v11 = vmul.f32 %v5649_v47, %v2963_v1  ;;  %v2960_v12 = vmul.f32 %v3795_v50, %v2912_v9  ;;  %v2814_v52 = vpop.xlane.xlu0 %2813  ;;  %v2871_v35 = vmul.f32 0.03125, %v2823_v61 }
 0x6d4   : > { %v2983_v55 = vmul.f32 %v5649_v47, %v2961_v56  ;;  %v2934_v53 = vadd.f32 1e-05, %v2902_v0  ;;  %v2868_v34 = vmul.f32 0.03125, %v2814_v52 }
 0x6d5   : > { %v3070_v29 = vmul.f32 %v3054_v3, %v5660_v21  ;;  %v5679_v18 = vadd.f32 %v5654_v16, %v2985_v11  ;;  %v2982_v36 = vmul.f32 %v5649_v47, %v2960_v12  ;;  %v2903_v33 = vsub.f32 %v2871_v35, %v2887_v37 }
 0x6d6   : > { %v5683_v43 = vadd.f32 %v5654_v16, %v2983_v55  ;;  %3796 = vrsqrt.f32 %v2934_v53  ;;  %v2817_v49 = vpop.xlane.xlu1 %2816  ;;  %v2900_v6 = vsub.f32 %v2868_v34, %v2884_v28 }
 0x6d7   : > { %v3086_v38 = vadd.f32 %v3070_v29, %v5660_v21  ;;  %v3039_v24 = vmul.f32 0.044715, %v5679_v18  ;;  %v5690_v42 = vadd.f32 %v5654_v16, %v2982_v36  ;;  %v2768_v22 = vpop.xlane.xlu0 %2767  ;;  %v2935_v7 = vadd.f32 1e-05, %v2903_v33 }
 0x6d8   : > { %v3037_v57 = vmul.f32 0.044715, %v5683_v43  ;;  %v2869_v9 = vmul.f32 0.03125, %v2817_v49  ;;  %v5702_v56 = vmul.f32 0.03125, %v2768_v22  ;;  %v2932_v3 = vadd.f32 1e-05, %v2900_v6 }
 0x6d9   : > { %v3102_v25 = vmul.f32 0.7978846, %v3086_v38  ;;  %v3055_v62 = vmul.f32 %v3039_v24, %v5679_v18  ;;  %v3036_v54 = vmul.f32 0.044715, %v5690_v42  ;;  %v2918_v49 = vsub.f32 %v5550_v8, %v5657_v45 }
 0x6da   : > { %v3053_v51 = vmul.f32 %v3037_v57, %v5683_v43  ;;  %v2901_v41 = vsub.f32 %v2869_v9, %v2885_v26  ;;  %v2771_v11 = vpop.xlane.xlu1 %2770  ;;  %v2890_v53 = vmul.f32 %v5702_v56, %v5702_v56  ;;  %v3022_v8 = vmul.f32 0.5, %v5660_v21 }
 0x6db   : > { %3798 = vtanh.f32 %v3102_v25  ;;  %v3071_v1 = vmul.f32 %v3055_v62, %v5679_v18  ;;  %v3052_v50 = vmul.f32 %v3036_v54, %v5690_v42  ;;  %v2762_v12 = vpop.xlane.xlu0 %2761  ;;  %v5709_v37 = vmul.f32 0.03125, %v2771_v11 }
 0x6dc   : > { %v3069_v4 = vmul.f32 %v3053_v51, %v5683_v43  ;;  %3800 = vrsqrt.f32 %v2935_v7  ;;  %v2933_v52 = vadd.f32 1e-05, %v2901_v41  ;;  %v5713_v57 = vmul.f32 0.03125, %v2762_v12 }
 0x6dd   : > { %v3087_v55 = vadd.f32 %v3071_v1, %v5679_v18  ;;  %v3068_v61 = vmul.f32 %v3052_v50, %v5690_v42  ;;  %3802 = vrsqrt.f32 %v2932_v3  ;;  %v2891_v22 = vmul.f32 %v5709_v37, %v5709_v37 }
 0x6de   : > { %v3085_v0 = vadd.f32 %v3069_v4, %v5683_v43  ;;  %3804 = vrsqrt.f32 %v2933_v52  ;;  %v2765_v34 = vpop.xlane.xlu1 %2764  ;;  %v2888_v51 = vmul.f32 %v5713_v57, %v5713_v57  ;;  %v2919_v45 = vsub.f32 %v5558_v15, %v5666_v14 }
 0x6df   : > { %v3103_v29 = vmul.f32 0.7978846, %v3087_v55  ;;  %v3084_v36 = vadd.f32 %v3068_v61, %v5690_v42  ;;  %v2832_v38 = vpop.xlane.xlu0 %2831  ;;  %v5719_v25 = vmul.f32 0.03125, %v2765_v34 }
 0x6e0   : > { %v3101_v35 = vmul.f32 0.7978846, %v3085_v0  ;;  %v2874_v28 = vmul.f32 0.03125, %v2832_v38 }
 0x6e1   : > { %3806 = vtanh.f32 %v3103_v29  ;;  %v3100_v24 = vmul.f32 0.7978846, %v3084_v36  ;;  %v2889_v11 = vmul.f32 %v5719_v25, %v5719_v25  ;;  %v2916_v36 = vsub.f32 %v5553_v60, %v5675_v39 }
 0x6e2   : > { %3808 = vtanh.f32 %v3101_v35  ;;  %v2906_v33 = vsub.f32 %v2874_v28, %v2890_v53  ;;  %v2835_v62 = vpop.xlane.xlu1 %2834  ;;  %v2917_v60 = vsub.f32 %v5561_v10, %v5673_v2 }
 0x6e3   : > { %3810 = vtanh.f32 %v3100_v24  ;;  %v2826_v54 = vpop.xlane.xlu0 %2825  ;;  %v3797_v26 = vpop.eup %3796  ;;  %v2875_v7 = vmul.f32 0.03125, %v2835_v62 }
 0x6e4   : > { %v2938_v9 = vadd.f32 1e-05, %v2906_v33  ;;  %v2872_v6 = vmul.f32 0.03125, %v2826_v54  ;;  %v2966_v1 = vmul.f32 %v3797_v26, %v2918_v49 }
 0x6e5   : > { %v2907_v50 = vsub.f32 %v2875_v7, %v2891_v22  ;;  %v3023_v7 = vmul.f32 0.5, %v5679_v18 }
 0x6e6   : > { %3812 = vrsqrt.f32 %v2938_v9  ;;  %v2904_v4 = vsub.f32 %v2872_v6, %v2888_v51  ;;  %v2988_v3 = vmul.f32 %v5649_v47, %v2966_v1  ;;  %v2829_v12 = vpop.xlane.xlu1 %2828  ;;  %v3021_v6 = vmul.f32 0.5, %v5683_v43 }
 0x6e7   : > { %v2939_v0 = vadd.f32 1e-05, %v2907_v50  ;;  %v2873_v52 = vmul.f32 0.03125, %v2829_v12  ;;  %v5734_v34 = vpop.xlane.xlu0 %2779  ;;  %v3020_v50 = vmul.f32 0.5, %v5690_v42  ;;  %v2922_v42 = vsub.f32 %v5581_v19, %v5702_v56 }
 0x6e8   : > { %v3799_v41 = vpop.eup %3798  ;;  %v2936_v29 = vadd.f32 1e-05, %v2904_v4  ;;  %v5732_v21 = vadd.f32 %v5654_v16, %v2988_v3  ;;  %v2920_v56 = vsub.f32 %v5584_v63, %v5713_v57 }
 0x6e9   : > { %v3801_v55 = vpop.eup %3800  ;;  %v3134_v61 = vadd.f32 1.0, %v3799_v41  ;;  %3814 = vrsqrt.f32 %v2939_v0  ;;  %v2905_v53 = vsub.f32 %v2873_v52, %v2889_v11 }
 0x6ea   : > { %v2967_v35 = vmul.f32 %v3801_v55, %v2919_v45  ;;  %v3803_v15 = vpop.eup %3802  ;;  %v3042_v38 = vmul.f32 0.044715, %v5732_v21  ;;  %v2783_v28 = vpop.xlane.xlu1 %2782  ;;  %3816 = vrsqrt.f32 %v2936_v29 }
 0x6eb   : > { %v3150_v14 = vmul.f32 %v3134_v61, %v3022_v8  ;;  %v2964_v24 = vmul.f32 %v3803_v15, %v2916_v36  ;;  %v3805_v33 = vpop.eup %3804  ;;  %v2937_v22 = vadd.f32 1e-05, %v2905_v53  ;;  %v2774_v12 = vpop.xlane.xlu0 %2773  ;;  %v2923_v36 = vsub.f32 %v5590_v20, %v5709_v37 }
 0x6ec   : > { %v2989_v39 = vmul.f32 %v5649_v47, %v2967_v35  ;;  %v3058_v26 = vmul.f32 %v3042_v38, %v5732_v21  ;;  %v2965_v51 = vmul.f32 %v3805_v33, %v2917_v60  ;;  %v2921_v38 = vsub.f32 %v5593_v44, %v5719_v25 }
 0x6ed   : > { %v3166_v49 = vadd.f32 %v5427_v30, %v3150_v14  ;;  %v2986_v10 = vmul.f32 %v5649_v47, %v2964_v24  ;;  %3818 = vrsqrt.f32 %v2937_v22  ;;  %v5793_v33 = vmul.f32 0.03125, %v2783_v28 }
 0x6ee   : > { %v3807_v62 = vpop.eup %3806  ;;  %v5749_v54 = vadd.f32 %v5654_v16, %v2989_v39  ;;  %v3074_v41 = vmul.f32 %v3058_v26, %v5732_v21  ;;  %v2777_v8 = vpop.xlane.xlu1 %2776  ;;  %v2987_v11 = vmul.f32 %v5649_v47, %v2965_v51  ;;  %v5798_v26 = vmul.f32 0.03125, %v2774_v12 }
 0x6ef   : > { %v3809_v2 = vpop.eup %3808  ;;  %3182 = vst.msk [vmem:[%s5741_s19 + $0x10] sm:$0xff] %vm602_vm0, %v3166_v49  ;;  %v3135_v9 = vadd.f32 1.0, %v3807_v62  ;;  %v5762_v18 = vadd.f32 %v5654_v16, %v2986_v10  ;;  %v5795_v63 = vmul.f32 0.03125, %v2777_v8  ;;  %v2838_v57 = vpop.xlane.xlu0 %2837 }
 0x6f0   : > { %v3811_v30 = vpop.eup %3810  ;;  %v3133_v1 = vadd.f32 1.0, %v3809_v2  ;;  %v3043_v4 = vmul.f32 0.044715, %v5749_v54  ;;  %v3090_v61 = vadd.f32 %v3074_v41, %v5732_v21  ;;  %v5770_v29 = vadd.f32 %v5654_v16, %v2987_v11 }
 0x6f1   : > { %v3151_v45 = vmul.f32 %v3135_v9, %v3023_v7  ;;  %v3132_v3 = vadd.f32 1.0, %v3811_v30  ;;  %v3040_v60 = vmul.f32 0.044715, %v5762_v18  ;;  %v5805_v2 = vmul.f32 0.03125, %v5734_v34 }
 0x6f2   : > { %v3149_v43 = vmul.f32 %v3133_v1, %v3021_v6  ;;  %v3059_v55 = vmul.f32 %v3043_v4, %v5749_v54  ;;  %v3106_v53 = vmul.f32 0.7978846, %v3090_v61  ;;  %v3041_v19 = vmul.f32 0.044715, %v5770_v29  ;;  %v2841_v20 = vpop.xlane.xlu1 %2840 }
 0x6f3   : > { %v3167_v0 = vadd.f32 %v5422_v58, %v3151_v45  ;;  %v3148_v52 = vmul.f32 %v3132_v3, %v3020_v50  ;;  %v3813_v35 = vpop.eup %3812  ;;  %v3056_v37 = vmul.f32 %v3040_v60, %v5762_v18  ;;  %v2877_v51 = vmul.f32 0.03125, %v2841_v20 }
 0x6f4   : > { %v3165_v15 = vadd.f32 %v5412_v31, %v3149_v43  ;;  %v3075_v14 = vmul.f32 %v3059_v55, %v5749_v54  ;;  %v2970_v39 = vmul.f32 %v3813_v35, %v2922_v42  ;;  %3820 = vtanh.f32 %v3106_v53 }
 0x6f5   : > { %3183 = vst.msk [vmem:[%s5741_s19 + $0x18] sm:$0xff] %vm602_vm0, %v3167_v0  ;;  %v3164_v58 = vadd.f32 %v5417_v13, %v3148_v52  ;;  %v3057_v13 = vmul.f32 %v3041_v19, %v5770_v29  ;;  %v3072_v62 = vmul.f32 %v3056_v37, %v5762_v18  ;;  %v2893_v9 = vmul.f32 %v5795_v63, %v5795_v63 }
 0x6f6   : > { %3181 = vst.msk [vmem:[%s5741_s19 + $0x8] sm:$0xff] %vm602_vm0, %v3165_v15  ;;  %v3091_v31 = vadd.f32 %v3075_v14, %v5749_v54  ;;  %v2992_v24 = vmul.f32 %v5649_v47, %v2970_v39  ;;  %v3815_v49 = vpop.eup %3814  ;;  %v2876_v6 = vmul.f32 0.03125, %v2838_v57  ;;  %v2895_v4 = vmul.f32 %v5793_v33, %v5793_v33  ;;  %v2847_v52 = vpop.xlane.xlu1 %2846 }
 0x6f7   : > { %3180 = vst.msk [vmem:[%s5741_s19] sm:$0xff] %vm602_vm0, %v3164_v58  ;;  %v3073_v44 = vmul.f32 %v3057_v13, %v5770_v29  ;;  %v2971_v25 = vmul.f32 %v3815_v49, %v2923_v36  ;;  %v3817_v28 = vpop.eup %3816  ;;  %v3088_v7 = vadd.f32 %v3072_v62, %v5762_v18  ;;  %v2892_v45 = vmul.f32 %v5798_v26, %v5798_v26  ;;  %v2844_v36 = vpop.xlane.xlu0 %2843 }
 0x6f8   : > { %v3107_v22 = vmul.f32 0.7978846, %v3091_v31  ;;  %v5802_v10 = vadd.f32 %v5654_v16, %v2992_v24  ;;  %v2968_v8 = vmul.f32 %v3817_v28, %v2920_v56  ;;  %v2909_v3 = vsub.f32 %v2877_v51, %v2893_v9 }
 0x6f9   : > { %v3089_v30 = vadd.f32 %v3073_v44, %v5770_v29  ;;  %v2993_v1 = vmul.f32 %v5649_v47, %v2971_v25  ;;  %v3104_v34 = vmul.f32 0.7978846, %v3088_v7  ;;  %v2908_v0 = vsub.f32 %v2876_v6, %v2892_v45 }
 0x6fa   : > { %3822 = vtanh.f32 %v3107_v22  ;;  %v3046_v50 = vmul.f32 0.044715, %v5802_v10  ;;  %v3819_v41 = vpop.eup %3818  ;;  %v2990_v61 = vmul.f32 %v5649_v47, %v2968_v8  ;;  %v2941_v42 = vadd.f32 1e-05, %v2909_v3 }
 0x6fb   : > { %v3105_v11 = vmul.f32 0.7978846, %v3089_v30  ;;  %v5818_v12 = vadd.f32 %v5654_v16, %v2993_v1  ;;  %v2969_v55 = vmul.f32 %v3819_v41, %v2921_v38  ;;  %3824 = vtanh.f32 %v3104_v34 }
 0x6fc   : > { %v3062_v43 = vmul.f32 %v3046_v50, %v5802_v10  ;;  %v2894_v14 = vmul.f32 %v5805_v2, %v5805_v2  ;;  %v5828_v60 = vadd.f32 %v5654_v16, %v2990_v61  ;;  %v2940_v58 = vadd.f32 1e-05, %v2908_v0 }
 0x6fd   : > { %3826 = vtanh.f32 %v3105_v11  ;;  %v3047_v35 = vmul.f32 0.044715, %v5818_v12  ;;  %v2991_v53 = vmul.f32 %v5649_v47, %v2969_v55  ;;  %v2879_v39 = vmul.f32 0.03125, %v2847_v52 }
 0x6fe   : > { %v3078_v15 = vmul.f32 %v3062_v43, %v5802_v10  ;;  %3828 = vrsqrt.f32 %v2941_v42  ;;  %v2878_v20 = vmul.f32 0.03125, %v2844_v36  ;;  %v3044_v37 = vmul.f32 0.044715, %v5828_v60 }
 0x6ff   : > { %v3063_v19 = vmul.f32 %v3047_v35, %v5818_v12  ;;  %v5833_v31 = vadd.f32 %v5654_v16, %v2991_v53  ;;  %3830 = vrsqrt.f32 %v2940_v58  ;;  %v2911_v57 = vsub.f32 %v2879_v39, %v2895_v4 }
 0x700   : > { %v3094_v56 = vadd.f32 %v3078_v15, %v5802_v10  ;;  %v2910_v49 = vsub.f32 %v2878_v20, %v2894_v14  ;;  %v3026_v22 = vmul.f32 0.5, %v5732_v21  ;;  %v3060_v44 = vmul.f32 %v3044_v37, %v5828_v60 }
 0x701   : > { %v3821_v38 = vpop.eup %3820  ;;  %v3079_v13 = vmul.f32 %v3063_v19, %v5818_v12  ;;  %v3045_v51 = vmul.f32 0.044715, %v5833_v31  ;;  %v2943_v28 = vadd.f32 1e-05, %v2911_v57  ;;  %v3027_v50 = vmul.f32 0.5, %v5749_v54 }
 0x702   : > { %v3110_v24 = vmul.f32 0.7978846, %v3094_v56  ;;  %v3138_v62 = vadd.f32 1.0, %v3821_v38  ;;  %v3076_v6 = vmul.f32 %v3060_v44, %v5828_v60  ;;  %v2942_v30 = vadd.f32 1e-05, %v2910_v49 }
 0x703   : > { %v3095_v25 = vadd.f32 %v3079_v13, %v5818_v12  ;;  %v3061_v9 = vmul.f32 %v3045_v51, %v5833_v31  ;;  %v3024_v54 = vmul.f32 0.5, %v5762_v18  ;;  %v2925_v55 = vsub.f32 %v5627_v23, %v5795_v63 }
 0x704   : > { %3832 = vtanh.f32 %v3110_v24  ;;  %v3154_v7 = vmul.f32 %v3138_v62, %v3026_v22  ;;  %v3092_v8 = vadd.f32 %v3076_v6, %v5828_v60  ;;  %v3025_v36 = vmul.f32 0.5, %v5770_v29 }
 0x705   : > { %v3111_v21 = vmul.f32 0.7978846, %v3095_v25  ;;  %3834 = vrsqrt.f32 %v2943_v28  ;;  %v3077_v34 = vmul.f32 %v3061_v9, %v5833_v31  ;;  %v2924_v18 = vsub.f32 %v5619_v32, %v5798_v26 }
 0x706   : > { %v3170_v41 = vadd.f32 %v5461_v27, %v3154_v7  ;;  %v3108_v11 = vmul.f32 0.7978846, %v3092_v8  ;;  %v3030_v32 = vmul.f32 0.5, %v5802_v10  ;;  %v2926_v57 = vsub.f32 %v5609_v46, %v5805_v2 }
 0x707   : > { %v3823_v1 = vpop.eup %3822  ;;  %3836 = vtanh.f32 %v3111_v21  ;;  %v3093_v3 = vadd.f32 %v3077_v34, %v5833_v31  ;;  %v3031_v62 = vmul.f32 0.5, %v5818_v12  ;;  %v3028_v46 = vmul.f32 0.5, %v5828_v60 }
 0x708   : > { %v3139_v4 = vadd.f32 1.0, %v3823_v1  ;;  %3186 = vst.msk [vmem:[%s5741_s19 + $0x30] sm:$0xff] %vm602_vm0, %v3170_v41  ;;  %3838 = vrsqrt.f32 %v2942_v30  ;;  %v3825_v43 = vpop.eup %3824 }
 0x709   : > { %v3136_v42 = vadd.f32 1.0, %v3825_v43  ;;  %v3109_v0 = vmul.f32 0.7978846, %v3093_v3  ;;  %3840 = vtanh.f32 %v3108_v11 }
 0x70a   : > { %v3155_v45 = vmul.f32 %v3139_v4, %v3027_v50  ;;  %v3827_v27 = vpop.eup %3826  ;;  %v3868_v50 = vld [vmem:[%s3998_s21 + $0x58] sm:$0xff]  ;;  %v3029_v4 = vmul.f32 0.5, %v5833_v31 }
 0x70b   : > { %v3829_v52 = vpop.eup %3828  ;;  %v3137_v35 = vadd.f32 1.0, %v3827_v27  ;;  %v3152_v15 = vmul.f32 %v3136_v42, %v3024_v54  ;;  %3842 = vtanh.f32 %v3109_v0 }
 0x70c   : > { %v3171_v61 = vadd.f32 %v5456_v40, %v3155_v45  ;;  %v2973_v23 = vmul.f32 %v3829_v52, %v2925_v55  ;;  %v3831_v63 = vpop.eup %3830 }
 0x70d   : > { %v3153_v14 = vmul.f32 %v3137_v35, %v3025_v36  ;;  %v3168_v40 = vadd.f32 %v5451_v17, %v3152_v15  ;;  %v2972_v58 = vmul.f32 %v3831_v63, %v2924_v18  ;;  %v2927_v17 = vsub.f32 %v5616_v5, %v5793_v33 }
 0x70e   : > { %3187 = vst.msk [vmem:[%s5741_s19 + $0x38] sm:$0xff] %vm602_vm0, %v3171_v61  ;;  %v2995_v53 = vmul.f32 %v5649_v47, %v2973_v23  ;;  %v3870_v61 = vld [vmem:[%s3998_s21 + $0x48] sm:$0xff] }
 0x70f   : > { %v3169_v19 = vadd.f32 %v5446_v48, %v3153_v14  ;;  %3184 = vst.msk [vmem:[%s5741_s19 + $0x20] sm:$0xff] %vm602_vm0, %v3168_v40  ;;  %v2994_v39 = vmul.f32 %v5649_v47, %v2972_v58 }
 0x710   : > { %v5865_v56 = vadd.f32 %v5654_v16, %v2995_v53 }
 0x711   : > { %v3833_v29 = vpop.eup %3832  ;;  %3185 = vst.msk [vmem:[%s5741_s19 + $0x28] sm:$0xff] %vm602_vm0, %v3169_v19  ;;  %v3016_v48 = vadd.f32 %v5654_v16, %v2994_v39  ;;  %v3871_v19 = vld [vmem:[%s3998_s21 + $0x68] sm:$0xff] }
 0x712   : > { %v3142_v26 = vadd.f32 1.0, %v3833_v29  ;;  %v3835_v20 = vpop.eup %3834  ;;  %v3049_v37 = vmul.f32 0.044715, %v5865_v56  ;;  %v3033_v23 = vmul.f32 0.5, %v5865_v56 }
 0x713   : > { %v2975_v13 = vmul.f32 %v3835_v20, %v2927_v17  ;;  %v3048_v22 = vmul.f32 0.044715, %v3016_v48  ;;  %v3032_v53 = vmul.f32 0.5, %v3016_v48 }
 0x714   : > { %v3158_v38 = vmul.f32 %v3142_v26, %v3030_v32  ;;  %v3837_v24 = vpop.eup %3836  ;;  %v3065_v49 = vmul.f32 %v3049_v37, %v5865_v56  ;;  %v3872_v26 = vld [vmem:[%s3998_s21 + $0x60] sm:$0xff] }
 0x715   : > { %v3839_v10 = vpop.eup %3838  ;;  %v3143_v51 = vadd.f32 1.0, %v3837_v24  ;;  %v2997_v33 = vmul.f32 %v5649_v47, %v2975_v13  ;;  %v3064_v25 = vmul.f32 %v3048_v22, %v3016_v48  ;;  %v3873_v13 = vld [vmem:[%s3998_s21 + $0x78] sm:$0xff]  ;;  %v3874_v22 = vld [vmem:[%s3998_s21 + $0x70] sm:$0xff] }
 0x716   : > { %v3174_v5 = vadd.f32 %v5484_v59, %v3158_v38  ;;  %v3081_v44 = vmul.f32 %v3065_v49, %v5865_v56  ;;  %v2974_v28 = vmul.f32 %v3839_v10, %v2926_v57  ;;  %v3841_v7 = vpop.eup %3840 }
 0x717   : > { %v3159_v9 = vmul.f32 %v3143_v51, %v3031_v62  ;;  %v3019_v2 = vadd.f32 %v5654_v16, %v2997_v33  ;;  %v3140_v12 = vadd.f32 1.0, %v3841_v7  ;;  %v3080_v59 = vmul.f32 %v3064_v25, %v3016_v48 }
 0x718   : > { %3190 = vst.msk [vmem:[%s5741_s19 + $0x50] sm:$0xff] %vm602_vm0, %v3174_v5  ;;  %v3097_v6 = vadd.f32 %v3081_v44, %v5865_v56  ;;  %v2996_v30 = vmul.f32 %v5649_v47, %v2974_v28  ;;  %v3843_v1 = vpop.eup %3842  ;;  %v3869_v47 = vld [vmem:[%s3998_s21 + $0x40] sm:$0xff] }
 0x719   : > { %v3175_v21 = vadd.f32 %v3868_v50, %v3159_v9  ;;  %v3051_v41 = vmul.f32 0.044715, %v3019_v2  ;;  %v3141_v34 = vadd.f32 1.0, %v3843_v1  ;;  %v3156_v8 = vmul.f32 %v3140_v12, %v3028_v46 }
 0x71a   : > { %v3113_v60 = vmul.f32 0.7978846, %v3097_v6  ;;  %v3096_v45 = vadd.f32 %v3080_v59, %v3016_v48  ;;  %v3018_v11 = vadd.f32 %v5654_v16, %v2996_v30  ;;  %v3035_v20 = vmul.f32 0.5, %v3019_v2 }
 0x71b   : > { %3191 = vst.msk [vmem:[%s5741_s19 + $0x58] sm:$0xff] %vm602_vm0, %v3175_v21  ;;  %v3067_v3 = vmul.f32 %v3051_v41, %v3019_v2  ;;  %v3157_v43 = vmul.f32 %v3141_v34, %v3029_v4  ;;  %v3172_v54 = vadd.f32 %v3869_v47, %v3156_v8 }
 0x71c   : > { %3844 = vtanh.f32 %v3113_v60  ;;  %v3112_v55 = vmul.f32 0.7978846, %v3096_v45  ;;  %v3050_v31 = vmul.f32 0.044715, %v3018_v11  ;;  %v3034_v24 = vmul.f32 0.5, %v3018_v11 }
 0x71d   : > { %v3083_v27 = vmul.f32 %v3067_v3, %v3019_v2  ;;  %v3173_v42 = vadd.f32 %v3870_v61, %v3157_v43  ;;  %3188 = vst.msk [vmem:[%s5741_s19 + $0x40] sm:$0xff] %vm602_vm0, %v3172_v54 }
 0x71e   : > { %3846 = vtanh.f32 %v3112_v55  ;;  %v3066_v52 = vmul.f32 %v3050_v31, %v3018_v11 }
 0x71f   : > { %v3099_v0 = vadd.f32 %v3083_v27, %v3019_v2  ;;  %3189 = vst.msk [vmem:[%s5741_s19 + $0x48] sm:$0xff] %vm602_vm0, %v3173_v42 }
 0x720   : > { %v3082_v35 = vmul.f32 %v3066_v52, %v3018_v11 }
 0x721   : > { %v3115_v36 = vmul.f32 0.7978846, %v3099_v0 }
 0x722   : > { %v3098_v16 = vadd.f32 %v3082_v35, %v3018_v11 }
 0x723   : > { %3848 = vtanh.f32 %v3115_v36 }
 0x724   : > { %v3114_v15 = vmul.f32 0.7978846, %v3098_v16 }
 0x726   : > { %3850 = vtanh.f32 %v3114_v15 }
 0x729   : > { %v3845_v18 = vpop.eup %3844 }
 0x72a   : > { %v3145_v63 = vadd.f32 1.0, %v3845_v18 }
 0x72b   : > { %v3847_v14 = vpop.eup %3846 }
 0x72c   : > { %v3161_v40 = vmul.f32 %v3145_v63, %v3033_v23  ;;  %v3144_v58 = vadd.f32 1.0, %v3847_v14 }
 0x72e   : > { %v3177_v29 = vadd.f32 %v3871_v19, %v3161_v40  ;;  %v3160_v39 = vmul.f32 %v3144_v58, %v3032_v53 }
 0x730   : > { %v3849_v32 = vpop.eup %3848  ;;  %3193 = vst.msk [vmem:[%s5741_s19 + $0x68] sm:$0xff] %vm602_vm0, %v3177_v29  ;;  %v3176_v17 = vadd.f32 %v3872_v26, %v3160_v39 }
 0x731   : > { %v3147_v37 = vadd.f32 1.0, %v3849_v32 }
 0x732   : > { %3192 = vst.msk [vmem:[%s5741_s19 + $0x60] sm:$0xff] %vm602_vm0, %v3176_v17 }
 0x733   : > { %v3163_v56 = vmul.f32 %v3147_v37, %v3035_v20  ;;  %v3851_v38 = vpop.eup %3850 }
 0x734   : > { %v3146_v57 = vadd.f32 1.0, %v3851_v38 }
 0x735   : > { %v3179_v48 = vadd.f32 %v3873_v13, %v3163_v56 }
 0x736   : > { %v3162_v49 = vmul.f32 %v3146_v57, %v3034_v24 }
 0x737   : > { %3195 = vst.msk [vmem:[%s5741_s19 + $0x78] sm:$0xff] %vm602_vm0, %v3179_v48 }
 0x738   : > { %v3178_v10 = vadd.f32 %v3874_v22, %v3162_v49 }
 0x73a   : > { %3194 = vst.msk [vmem:[%s5741_s19 + $0x70] sm:$0xff] %vm602_vm0, %v3178_v10 }
 0x73b PF: > { %s27_s24 = sadd.s32 1, %s3881_s24  }
 0x73c   : > { %p24_p4 = scmp.ge.s32.totalorder %s27_s24, 6  }
 0x73e   :  { %26 = sbr.rel (!%p24_p4) target bundleno = 3 (0x3), region = 118 }

</bundles_post_ra>
